<compile_context>
chip_gen: v6e
topology: v6e:2x2x1
jax: 0.10.0
libtpu: 0.0.40
codegen_flags: <defaults>
</compile_context>

<pallas_src>
import functools
import numpy as np
import jax
import jax.numpy as jnp
from jax.experimental import pallas as pl
from jax.experimental.pallas import tpu as pltpu


# ----------------------------- Pallas kernel -------------------------------
def gpg_fused_kernel(w_ref,       # (n, n, G)  100*W_nd[src j, tgt i, graph g]
                     denom_ref,   # (n, G)     100*diag(ybus)  (update denom == LC diag)
                     p_ref,       # (n, G)     x[:,0] - x[:,1]
                     ref_ref,     # (1, G)     int32 reference bus per graph
                     theta_ref,   # (n, G)     out: final voltage angles
                     err_ref,     # (L, G)     out: per-layer, per-graph |nodal error| sum
                     *, num_layers):
    L = num_layers + 1
    denom = denom_ref[...]
    p = p_ref[...]
    ref_ids = ref_ref[...]                                  # (1, G) int32
    n, G = p.shape

    # loop-invariant quantities, hoisted out of the layer loop
    row = jax.lax.broadcasted_iota(jnp.int32, (n, G), 0)
    ref_mask = row == ref_ids                               # one-hot of the reference bus
    denom_nz = denom != 0.0
    safe_den = jnp.where(denom_nz, denom, 1.0)
    inv_den = jnp.where(denom_nz, 1.0 / safe_den, 0.0)      # single exact divide, hoisted

    def matvec(theta):
        # aggr[i, g] = sum_j W[j, i, g] * theta[j, g]  — VPU broadcast-FMA over sources,
        # streaming W slabs from the VMEM ref (no whole-block value held live).
        acc = w_ref[0] * theta[0:1, :]
        for j in range(1, n):
            acc = acc + w_ref[j] * theta[j:j + 1, :]
        return acc

    def store_err(l, theta_now, aggr_now):
        # W_full @ theta = W_nd @ theta + diag * theta ; diag == denom (checked in wrapper)
        nodal = p - (aggr_now + theta_now * denom)
        err_ref[l:l + 1, :] = jnp.sum(jnp.abs(nodal), axis=0, keepdims=True)

    theta = jnp.zeros((n, G), jnp.float32)                  # theta_0 = zeros_like(y)
    for l in range(L):                                      # static unroll (L small)
        aggr = matvec(theta)
        if l > 0:
            store_err(l - 1, theta, aggr)                   # reuse: LC error of layer l-1
        div = (p - aggr) * inv_den                          # == 0 where denom == 0
        ref_val = jnp.sum(jnp.where(ref_mask, div, 0.0), axis=0, keepdims=True)
        theta = jnp.where(denom_nz, div - ref_val, 0.0)

    store_err(L - 1, theta, matvec(theta))                  # LC error of the last layer
    theta_ref[...] = theta.astype(theta_ref.dtype)


# ------------------------------ JAX wrapper --------------------------------
@functools.partial(jax.jit, static_argnames=("num_layers", "block_g"))
def _gpg_fused(w_l, denom, p, ref_ids, *, num_layers, block_g):
    n, _, Bp = w_l.shape
    L = num_layers + 1
    grid = (Bp // block_g,)

    params = dict(dimension_semantics=("parallel",))
    # double-buffered streams + outputs + a few (n, G) kernel temps
    vmem_est = 4 * block_g * (2 * n * n + 12 * n + 2 * L + 2) + (1 << 20)
    if vmem_est > 12 * 1024 * 1024:
        try:
            phys = int(pltpu.get_tpu_info().vmem_capacity_bytes)
        except Exception:
            phys = 64 * 1024 * 1024
        # generation-aware headroom: ~48 MiB cap on v7x (64 MiB VMEM), ~96 MiB on v5e/v6e
        params["vmem_limit_bytes"] = int(min(vmem_est * 5 // 4, phys * 3 // 4))
    compiler_params = pltpu.CompilerParams(**params)

    cost = pl.CostEstimate(
        flops=int(2 * n * n * (L + 1) * Bp),
        transcendentals=0,
        bytes_accessed=int(4 * Bp * (n * n + 3 * n + 1 + L)),
    )

    grid_spec = pltpu.PrefetchScalarGridSpec(
        num_scalar_prefetch=0,
        grid=grid,
        in_specs=[
            pl.BlockSpec((n, n, block_g), lambda b: (0, 0, b)),
            pl.BlockSpec((n, block_g), lambda b: (0, b)),
            pl.BlockSpec((n, block_g), lambda b: (0, b)),
            pl.BlockSpec((1, block_g), lambda b: (0, b)),
        ],
        out_specs=[
            pl.BlockSpec((n, block_g), lambda b: (0, b)),
            pl.BlockSpec((L, block_g), lambda b: (0, b)),
        ],
    )

    theta, errs = pl.pallas_call(
        functools.partial(gpg_fused_kernel, num_layers=num_layers),
        out_shape=(jax.ShapeDtypeStruct((n, Bp), jnp.float32),
                   jax.ShapeDtypeStruct((L, Bp), jnp.float32)),
        grid_spec=grid_spec,
        compiler_params=compiler_params,
        cost_estimate=cost,
    )(w_l, denom, p, ref_ids)
    return theta, errs


def _choose_block_g(B, n, L):
    """Graphs per grid step: lane-dense (multiple of 128), sized to ~8 MiB of VMEM
    for the double-buffered W stream, with >=2 grid steps when there is enough work
    (so v7x's two TensorCores both get a share of the 'parallel' axis)."""
    g_min = max(128, ((B + 127) // 128) * 128)
    per_g = 4 * (2 * n * n + 12 * n + 2 * L + 2)
    cap = max(128, ((8 * 1024 * 1024) // per_g) // 128 * 128)
    block_g = min(cap, g_min)
    if g_min // block_g < 2 and g_min >= 256:
        block_g = max(128, ((g_min // 2) // 128) * 128)
    Bp = ((B + block_g - 1) // block_g) * block_g
    return block_g, Bp
    # TODO(synk): for very large n_bus (block_g=128 no longer fits VMEM) add an
    # in-kernel column tiling of W instead of shrinking block_g further.


def edges_to_dense_src_tgt_graph(edge_index, edge_attr, B, n):
    """Scatter batched PyG-style edge lists into dense W[src j, tgt i, graph g] * 100."""
    src = edge_index[0]
    tgt = edge_index[1]
    g = tgt // n
    i = tgt % n
    j = src % n
    W = jnp.zeros((n, n, B), jnp.float32).at[j, i, g].add(edge_attr.astype(jnp.float32))
    return W * 100.0


def edges_to_diag(edge_index, edge_attr, B, n):
    """Diagonal (self-loop) entries of a PyG-style edge list, *100, laid out (n, B)."""
    src = edge_index[0]
    tgt = edge_index[1]
    is_diag = src == tgt
    g = tgt // n
    i = tgt % n
    vals = jnp.where(is_diag, edge_attr.astype(jnp.float32), 0.0)
    d = jnp.zeros((n, B), jnp.float32).at[i, g].add(vals)
    return d * 100.0


def gpg_model_without_nn_forward(x, y, ybus,
                                 edge_index_no_diag, edge_attr_no_diag,
                                 edge_index, edge_attr,
                                 ref_node, num_gnn_layers=10):
    """Pallas equivalent of GPGmodel_without_NN.forward(batch) -> (out, errors)."""
    B, n, _ = ybus.shape
    L = num_gnn_layers + 1

    # graph-in-lanes layout: nodes on sublanes, graphs on the lane axis
    w_l = edges_to_dense_src_tgt_graph(edge_index_no_diag, edge_attr_no_diag, B, n)  # (n, n, B)
    denom = (jnp.diagonal(ybus, axis1=1, axis2=2).T * 100.0).astype(jnp.float32)      # (n, B)
    p = (x[:, 0] - x[:, 1]).reshape(B, n).T.astype(jnp.float32)                        # (n, B)
    ref_ids = jnp.broadcast_to(
        jnp.asarray(ref_node, dtype=jnp.int32).reshape(-1), (B,)).reshape(1, B)

    # The LC layer's diagonal (100*diag of the full edge list) equals the update
    # denominator (100*diag(ybus)) by construction -> pass a single stream.
    diag_full = edges_to_diag(edge_index, edge_attr, B, n)
    try:
        diag_ok = bool(jnp.allclose(diag_full, denom, rtol=1e-5, atol=1e-4))
    except Exception:            # under tracing: skip the concrete check
        diag_ok = True
    if not diag_ok:
        raise ValueError("diag(edge_attr)*100 != 100*diag(ybus); cannot fold the LC "
                         "diagonal into the update denominator.")
    # TODO(synk): the LC reconstruction also assumes the off-diagonal entries of
    # edge_index/edge_attr match edge_index_no_diag/edge_attr_no_diag (true when
    # both are derived from ybus).
    # TODO(synk): optional bf16 W stream (f32 accumulation) would ~halve HBM bytes
    # in this HBM-bound kernel; kept f32 here to preserve the 1e-3 validation margin.

    block_g, Bp = _choose_block_g(B, n, L)
    if Bp != B:
        # Padded graphs have W=0, denom=0, p=0 -> theta=0 and zero error contribution;
        # the wrapper additionally only reduces over the first B lanes.
        pad = Bp - B
        w_l = jnp.pad(w_l, ((0, 0), (0, 0), (0, pad)))
        denom = jnp.pad(denom, ((0, 0), (0, pad)))
        p = jnp.pad(p, ((0, 0), (0, pad)))
        ref_ids = jnp.pad(ref_ids, ((0, 0), (0, pad)))

    theta, errs = _gpg_fused(w_l, denom, p, ref_ids,
                             num_layers=num_gnn_layers, block_g=block_g)

    out = theta[:, :B].T.reshape(-1, 1)                 # (B*n_bus, 1), graph-major
    err_per_layer = jnp.sum(errs[:, :B], axis=1)        # (L,) summed over the batch
    errors = [err_per_layer[l] for l in range(L)]
    return out, errors


# --------------------------- numpy reference --------------------------------
def reference_forward(x, ybus, ref_node, num_gnn_layers):
    B, n, _ = ybus.shape
    W_nd = (ybus - np.einsum('bii->bi', ybus)[:, :, None] * np.eye(n)[None]) * 100.0
    W_full = ybus * 100.0
    denom = np.einsum('bii->bi', ybus) * 100.0
    p = (x[:, 0] - x[:, 1]).reshape(B, n)
    out = np.zeros((B, n), np.float32)
    errors = []
    for _ in range(num_gnn_layers + 1):
        aggr = np.einsum('bij,bj->bi', W_nd, out)
        numer = p - aggr
        div = np.divide(numer, denom, out=np.zeros_like(numer), where=denom != 0)
        o = div - div[:, ref_node:ref_node + 1]
        o = np.where(denom == 0, 0.0, o)
        aggr_full = np.einsum('bij,bj->bi', W_full, o)
        errors.append(np.abs(p - aggr_full).sum())
        out = o
    return out.reshape(-1, 1), errors


# --------------------------------- main -------------------------------------
if __name__ == "__main__":
    B, n_bus = 2, 16
    ref_node = 0
    num_gnn_layers = 10
    N = B * n_bus

    key = jax.random.PRNGKey(0)
    k1, k2, k3, k4 = jax.random.split(key, 4)

    # synthetic "ybus": symmetric, negative off-diagonals, diag = -rowsum (Laplacian-like)
    A = jax.random.uniform(k1, (B, n_bus, n_bus), minval=0.1, maxval=1.0)
    A = 0.5 * (A + jnp.swapaxes(A, 1, 2))
    mask = jax.random.bernoulli(k2, 0.4, (B, n_bus, n_bus))
    mask = jnp.logical_or(mask, jnp.swapaxes(mask, 1, 2)).astype(jnp.float32)
    offdiag = -A * mask * (1.0 - jnp.eye(n_bus)[None])
    diag = -jnp.sum(offdiag, axis=2)
    ybus = (offdiag + jax.vmap(jnp.diag)(diag)).astype(jnp.float32)

    x = jax.random.normal(k3, (N, 2), dtype=jnp.float32)
    y = jax.random.normal(k4, (N, 1), dtype=jnp.float32)   # only dtype/shape used (theta=0)

    # build PyG-style (batched, block-diagonal) edge lists from ybus
    ybus_np = np.asarray(ybus)
    s_nd, t_nd, a_nd, s_f, t_f, a_f = [], [], [], [], [], []
    for b in range(B):
        for i in range(n_bus):
            for j in range(n_bus):
                v = float(ybus_np[b, i, j])
                if v != 0.0:
                    gi, gj = b * n_bus + i, b * n_bus + j
                    s_f.append(gj); t_f.append(gi); a_f.append(v)       # edge j -> i
                    if i != j:
                        s_nd.append(gj); t_nd.append(gi); a_nd.append(v)
    edge_index_no_diag = jnp.array([s_nd, t_nd], dtype=jnp.int32)
    edge_attr_no_diag = jnp.array(a_nd, dtype=jnp.float32)
    edge_index = jnp.array([s_f, t_f], dtype=jnp.int32)
    edge_attr = jnp.array(a_f, dtype=jnp.float32)

    out, errors = gpg_model_without_nn_forward(
        x, y, ybus, edge_index_no_diag, edge_attr_no_diag,
        edge_index, edge_attr, ref_node, num_gnn_layers)
    out = jax.block_until_ready(out)
    errors = [float(jax.block_until_ready(e)) for e in errors]

    # sanity check against a pure-numpy reference of the same math
    out_ref, errors_ref = reference_forward(np.asarray(x), ybus_np, ref_node, num_gnn_layers)
    np.testing.assert_allclose(np.asarray(out), out_ref, rtol=1e-3, atol=1e-4)
    np.testing.assert_allclose(np.asarray(errors), np.asarray(errors_ref), rtol=1e-3, atol=1e-3)

    print("KERNEL_OK")
</pallas_src>

<mosaic_0001>
module attributes {stable_mosaic.version = 11 : i64} {
  func.func @gpg_fused_kernel(%arg0: i32, %arg1: memref<16x16x128xf32, #tpu.memory_space<vmem>>, %arg2: memref<16x128xf32, #tpu.memory_space<vmem>>, %arg3: memref<16x128xf32, #tpu.memory_space<vmem>>, %arg4: memref<1x128xi32, #tpu.memory_space<vmem>>, %arg5: memref<16x128xf32, #tpu.memory_space<vmem>>, %arg6: memref<11x128xf32, #tpu.memory_space<vmem>>) attributes {dimension_semantics = [#tpu.dimension_semantics<parallel>], iteration_bounds = array<i64: 1>, scalar_prefetch = 0 : i64, scratch_operands = 0 : i64, tpu.core_type = #tpu.core_type<tc>, window_params = [{transform_indices = @transform_0, window_bounds = array<i64: 16, 16, 128>}, {transform_indices = @transform_1, window_bounds = array<i64: 16, 128>}, {transform_indices = @transform_2, window_bounds = array<i64: 16, 128>}, {transform_indices = @transform_3, window_bounds = array<i64: 1, 128>}, {transform_indices = @transform_4, window_bounds = array<i64: 16, 128>}, {transform_indices = @transform_5, window_bounds = array<i64: 11, 128>}]} {
    %c0 = arith.constant 0 : index
    %c0_0 = arith.constant 0 : index
    %0 = vector.load %arg2[%c0, %c0_0] : memref<16x128xf32, #tpu.memory_space<vmem>>, vector<16x128xf32>
    %c0_1 = arith.constant 0 : index
    %c0_2 = arith.constant 0 : index
    %1 = vector.load %arg3[%c0_1, %c0_2] : memref<16x128xf32, #tpu.memory_space<vmem>>, vector<16x128xf32>
    %c0_3 = arith.constant 0 : index
    %c0_4 = arith.constant 0 : index
    %2 = vector.load %arg4[%c0_3, %c0_4] : memref<1x128xi32, #tpu.memory_space<vmem>>, vector<1x128xi32>
    %3 = tpu.iota {dimensions = array<i32: 0>} : vector<16x128xi32>
    %4 = vector.broadcast %2 : vector<1x128xi32> to vector<16x128xi32>
    %5 = arith.cmpi eq, %3, %4 : vector<16x128xi32>
    %cst = arith.constant 0.000000e+00 : f32
    %6 = vector.broadcast %cst : f32 to vector<16x128xf32>
    %7 = arith.cmpf one, %0, %6 : vector<16x128xf32>
    %cst_5 = arith.constant 1.000000e+00 : f32
    %8 = vector.broadcast %cst_5 : f32 to vector<16x128xf32>
    %9 = arith.select %7, %0, %8 : vector<16x128xi1>, vector<16x128xf32>
    %cst_6 = arith.constant 1.000000e+00 : f32
    %10 = vector.broadcast %cst_6 : f32 to vector<16x128xf32>
    %11 = arith.divf %10, %9 : vector<16x128xf32>
    %cst_7 = arith.constant 0.000000e+00 : f32
    %12 = vector.broadcast %cst_7 : f32 to vector<16x128xf32>
    %13 = arith.select %7, %11, %12 : vector<16x128xi1>, vector<16x128xf32>
    %cst_8 = arith.constant 0.000000e+00 : f32
    %14 = vector.broadcast %cst_8 : f32 to vector<16x128xf32>
    %c0_9 = arith.constant 0 : index
    %c0_10 = arith.constant 0 : index
    %c0_11 = arith.constant 0 : index
    %15 = vector.load %arg1[%c0_9, %c0_10, %c0_11] : memref<16x16x128xf32, #tpu.memory_space<vmem>>, vector<1x16x128xf32>
    %16 = vector.shape_cast %15 : vector<1x16x128xf32> to vector<16x128xf32>
    %17 = vector.extract_strided_slice %14 {offsets = [0, 0], sizes = [1, 128], strides = [1, 1]} : vector<16x128xf32> to vector<1x128xf32>
    %18 = vector.broadcast %17 : vector<1x128xf32> to vector<16x128xf32>
    %19 = arith.mulf %16, %18 : vector<16x128xf32>
    %c1 = arith.constant 1 : index
    %c0_12 = arith.constant 0 : index
    %c0_13 = arith.constant 0 : index
    %20 = vector.load %arg1[%c1, %c0_12, %c0_13] : memref<16x16x128xf32, #tpu.memory_space<vmem>>, vector<1x16x128xf32>
    %21 = vector.shape_cast %20 : vector<1x16x128xf32> to vector<16x128xf32>
    %22 = vector.extract_strided_slice %14 {offsets = [1, 0], sizes = [1, 128], strides = [1, 1]} : vector<16x128xf32> to vector<1x128xf32>
    %23 = vector.broadcast %22 : vector<1x128xf32> to vector<16x128xf32>
    %24 = arith.mulf %21, %23 : vector<16x128xf32>
    %25 = arith.addf %19, %24 : vector<16x128xf32>
    %c2 = arith.constant 2 : index
    %c0_14 = arith.constant 0 : index
    %c0_15 = arith.constant 0 : index
    %26 = vector.load %arg1[%c2, %c0_14, %c0_15] : memref<16x16x128xf32, #tpu.memory_space<vmem>>, vector<1x16x128xf32>
    %27 = vector.shape_cast %26 : vector<1x16x128xf32> to vector<16x128xf32>
    %28 = vector.extract_strided_slice %14 {offsets = [2, 0], sizes = [1, 128], strides = [1, 1]} : vector<16x128xf32> to vector<1x128xf32>
    %29 = vector.broadcast %28 : vector<1x128xf32> to vector<16x128xf32>
    %30 = arith.mulf %27, %29 : vector<16x128xf32>
    %31 = arith.addf %25, %30 : vector<16x128xf32>
    %c3 = arith.constant 3 : index
    %c0_16 = arith.constant 0 : index
    %c0_17 = arith.constant 0 : index
    %32 = vector.load %arg1[%c3, %c0_16, %c0_17] : memref<16x16x128xf32, #tpu.memory_space<vmem>>, vector<1x16x128xf32>
    %33 = vector.shape_cast %32 : vector<1x16x128xf32> to vector<16x128xf32>
    %34 = vector.extract_strided_slice %14 {offsets = [3, 0], sizes = [1, 128], strides = [1, 1]} : vector<16x128xf32> to vector<1x128xf32>
    %35 = vector.broadcast %34 : vector<1x128xf32> to vector<16x128xf32>
    %36 = arith.mulf %33, %35 : vector<16x128xf32>
    %37 = arith.addf %31, %36 : vector<16x128xf32>
    %c4 = arith.constant 4 : index
    %c0_18 = arith.constant 0 : index
    %c0_19 = arith.constant 0 : index
    %38 = vector.load %arg1[%c4, %c0_18, %c0_19] : memref<16x16x128xf32, #tpu.memory_space<vmem>>, vector<1x16x128xf32>
    %39 = vector.shape_cast %38 : vector<1x16x128xf32> to vector<16x128xf32>
    %40 = vector.extract_strided_slice %14 {offsets = [4, 0], sizes = [1, 128], strides = [1, 1]} : vector<16x128xf32> to vector<1x128xf32>
    %41 = vector.broadcast %40 : vector<1x128xf32> to vector<16x128xf32>
    %42 = arith.mulf %39, %41 : vector<16x128xf32>
    %43 = arith.addf %37, %42 : vector<16x128xf32>
    %c5 = arith.constant 5 : index
    %c0_20 = arith.constant 0 : index
    %c0_21 = arith.constant 0 : index
    %44 = vector.load %arg1[%c5, %c0_20, %c0_21] : memref<16x16x128xf32, #tpu.memory_space<vmem>>, vector<1x16x128xf32>
    %45 = vector.shape_cast %44 : vector<1x16x128xf32> to vector<16x128xf32>
    %46 = vector.extract_strided_slice %14 {offsets = [5, 0], sizes = [1, 128], strides = [1, 1]} : vector<16x128xf32> to vector<1x128xf32>
    %47 = vector.broadcast %46 : vector<1x128xf32> to vector<16x128xf32>
    %48 = arith.mulf %45, %47 : vector<16x128xf32>
    %49 = arith.addf %43, %48 : vector<16x128xf32>
    %c6 = arith.constant 6 : index
    %c0_22 = arith.constant 0 : index
    %c0_23 = arith.constant 0 : index
    %50 = vector.load %arg1[%c6, %c0_22, %c0_23] : memref<16x16x128xf32, #tpu.memory_space<vmem>>, vector<1x16x128xf32>
    %51 = vector.shape_cast %50 : vector<1x16x128xf32> to vector<16x128xf32>
    %52 = vector.extract_strided_slice %14 {offsets = [6, 0], sizes = [1, 128], strides = [1, 1]} : vector<16x128xf32> to vector<1x128xf32>
    %53 = vector.broadcast %52 : vector<1x128xf32> to vector<16x128xf32>
    %54 = arith.mulf %51, %53 : vector<16x128xf32>
    %55 = arith.addf %49, %54 : vector<16x128xf32>
    %c7 = arith.constant 7 : index
    %c0_24 = arith.constant 0 : index
    %c0_25 = arith.constant 0 : index
    %56 = vector.load %arg1[%c7, %c0_24, %c0_25] : memref<16x16x128xf32, #tpu.memory_space<vmem>>, vector<1x16x128xf32>
    %57 = vector.shape_cast %56 : vector<1x16x128xf32> to vector<16x128xf32>
    %58 = vector.extract_strided_slice %14 {offsets = [7, 0], sizes = [1, 128], strides = [1, 1]} : vector<16x128xf32> to vector<1x128xf32>
    %59 = vector.broadcast %58 : vector<1x128xf32> to vector<16x128xf32>
    %60 = arith.mulf %57, %59 : vector<16x128xf32>
    %61 = arith.addf %55, %60 : vector<16x128xf32>
    %c8 = arith.constant 8 : index
    %c0_26 = arith.constant 0 : index
    %c0_27 = arith.constant 0 : index
    %62 = vector.load %arg1[%c8, %c0_26, %c0_27] : memref<16x16x128xf32, #tpu.memory_space<vmem>>, vector<1x16x128xf32>
    %63 = vector.shape_cast %62 : vector<1x16x128xf32> to vector<16x128xf32>
    %64 = vector.extract_strided_slice %14 {offsets = [8, 0], sizes = [1, 128], strides = [1, 1]} : vector<16x128xf32> to vector<1x128xf32>
    %65 = vector.broadcast %64 : vector<1x128xf32> to vector<16x128xf32>
    %66 = arith.mulf %63, %65 : vector<16x128xf32>
    %67 = arith.addf %61, %66 : vector<16x128xf32>
    %c9 = arith.constant 9 : index
    %c0_28 = arith.constant 0 : index
    %c0_29 = arith.constant 0 : index
    %68 = vector.load %arg1[%c9, %c0_28, %c0_29] : memref<16x16x128xf32, #tpu.memory_space<vmem>>, vector<1x16x128xf32>
    %69 = vector.shape_cast %68 : vector<1x16x128xf32> to vector<16x128xf32>
    %70 = vector.extract_strided_slice %14 {offsets = [9, 0], sizes = [1, 128], strides = [1, 1]} : vector<16x128xf32> to vector<1x128xf32>
    %71 = vector.broadcast %70 : vector<1x128xf32> to vector<16x128xf32>
    %72 = arith.mulf %69, %71 : vector<16x128xf32>
    %73 = arith.addf %67, %72 : vector<16x128xf32>
    %c10 = arith.constant 10 : index
    %c0_30 = arith.constant 0 : index
    %c0_31 = arith.constant 0 : index
    %74 = vector.load %arg1[%c10, %c0_30, %c0_31] : memref<16x16x128xf32, #tpu.memory_space<vmem>>, vector<1x16x128xf32>
    %75 = vector.shape_cast %74 : vector<1x16x128xf32> to vector<16x128xf32>
    %76 = vector.extract_strided_slice %14 {offsets = [10, 0], sizes = [1, 128], strides = [1, 1]} : vector<16x128xf32> to vector<1x128xf32>
    %77 = vector.broadcast %76 : vector<1x128xf32> to vector<16x128xf32>
    %78 = arith.mulf %75, %77 : vector<16x128xf32>
    %79 = arith.addf %73, %78 : vector<16x128xf32>
    %c11 = arith.constant 11 : index
    %c0_32 = arith.constant 0 : index
    %c0_33 = arith.constant 0 : index
    %80 = vector.load %arg1[%c11, %c0_32, %c0_33] : memref<16x16x128xf32, #tpu.memory_space<vmem>>, vector<1x16x128xf32>
    %81 = vector.shape_cast %80 : vector<1x16x128xf32> to vector<16x128xf32>
    %82 = vector.extract_strided_slice %14 {offsets = [11, 0], sizes = [1, 128], strides = [1, 1]} : vector<16x128xf32> to vector<1x128xf32>
    %83 = vector.broadcast %82 : vector<1x128xf32> to vector<16x128xf32>
    %84 = arith.mulf %81, %83 : vector<16x128xf32>
    %85 = arith.addf %79, %84 : vector<16x128xf32>
    %c12 = arith.constant 12 : index
    %c0_34 = arith.constant 0 : index
    %c0_35 = arith.constant 0 : index
    %86 = vector.load %arg1[%c12, %c0_34, %c0_35] : memref<16x16x128xf32, #tpu.memory_space<vmem>>, vector<1x16x128xf32>
    %87 = vector.shape_cast %86 : vector<1x16x128xf32> to vector<16x128xf32>
    %88 = vector.extract_strided_slice %14 {offsets = [12, 0], sizes = [1, 128], strides = [1, 1]} : vector<16x128xf32> to vector<1x128xf32>
    %89 = vector.broadcast %88 : vector<1x128xf32> to vector<16x128xf32>
    %90 = arith.mulf %87, %89 : vector<16x128xf32>
    %91 = arith.addf %85, %90 : vector<16x128xf32>
    %c13 = arith.constant 13 : index
    %c0_36 = arith.constant 0 : index
    %c0_37 = arith.constant 0 : index
    %92 = vector.load %arg1[%c13, %c0_36, %c0_37] : memref<16x16x128xf32, #tpu.memory_space<vmem>>, vector<1x16x128xf32>
    %93 = vector.shape_cast %92 : vector<1x16x128xf32> to vector<16x128xf32>
    %94 = vector.extract_strided_slice %14 {offsets = [13, 0], sizes = [1, 128], strides = [1, 1]} : vector<16x128xf32> to vector<1x128xf32>
    %95 = vector.broadcast %94 : vector<1x128xf32> to vector<16x128xf32>
    %96 = arith.mulf %93, %95 : vector<16x128xf32>
    %97 = arith.addf %91, %96 : vector<16x128xf32>
    %c14 = arith.constant 14 : index
    %c0_38 = arith.constant 0 : index
    %c0_39 = arith.constant 0 : index
    %98 = vector.load %arg1[%c14, %c0_38, %c0_39] : memref<16x16x128xf32, #tpu.memory_space<vmem>>, vector<1x16x128xf32>
    %99 = vector.shape_cast %98 : vector<1x16x128xf32> to vector<16x128xf32>
    %100 = vector.extract_strided_slice %14 {offsets = [14, 0], sizes = [1, 128], strides = [1, 1]} : vector<16x128xf32> to vector<1x128xf32>
    %101 = vector.broadcast %100 : vector<1x128xf32> to vector<16x128xf32>
    %102 = arith.mulf %99, %101 : vector<16x128xf32>
    %103 = arith.addf %97, %102 : vector<16x128xf32>
    %c15 = arith.constant 15 : index
    %c0_40 = arith.constant 0 : index
    %c0_41 = arith.constant 0 : index
    %104 = vector.load %arg1[%c15, %c0_40, %c0_41] : memref<16x16x128xf32, #tpu.memory_space<vmem>>, vector<1x16x128xf32>
    %105 = vector.shape_cast %104 : vector<1x16x128xf32> to vector<16x128xf32>
    %106 = vector.extract_strided_slice %14 {offsets = [15, 0], sizes = [1, 128], strides = [1, 1]} : vector<16x128xf32> to vector<1x128xf32>
    %107 = vector.broadcast %106 : vector<1x128xf32> to vector<16x128xf32>
    %108 = arith.mulf %105, %107 : vector<16x128xf32>
    %109 = arith.addf %103, %108 : vector<16x128xf32>
    %110 = arith.subf %1, %109 : vector<16x128xf32>
    %111 = arith.mulf %110, %13 : vector<16x128xf32>
    %cst_42 = arith.constant 0.000000e+00 : f32
    %112 = vector.broadcast %cst_42 : f32 to vector<16x128xf32>
    %113 = arith.select %5, %111, %112 : vector<16x128xi1>, vector<16x128xf32>
    %cst_43 = arith.constant dense<0.000000e+00> : vector<128xf32>
    %114 = vector.multi_reduction <add>, %113, %cst_43 [0] : vector<16x128xf32> to vector<128xf32>
    %115 = vector.shape_cast %114 : vector<128xf32> to vector<1x128xf32>
    %116 = vector.broadcast %115 : vector<1x128xf32> to vector<16x128xf32>
    %117 = arith.subf %111, %116 : vector<16x128xf32>
    %cst_44 = arith.constant 0.000000e+00 : f32
    %118 = vector.broadcast %cst_44 : f32 to vector<16x128xf32>
    %119 = arith.select %7, %117, %118 : vector<16x128xi1>, vector<16x128xf32>
    %c0_45 = arith.constant 0 : index
    %c0_46 = arith.constant 0 : index
    %c0_47 = arith.constant 0 : index
    %120 = vector.load %arg1[%c0_45, %c0_46, %c0_47] : memref<16x16x128xf32, #tpu.memory_space<vmem>>, vector<1x16x128xf32>
    %121 = vector.shape_cast %120 : vector<1x16x128xf32> to vector<16x128xf32>
    %122 = vector.extract_strided_slice %119 {offsets = [0, 0], sizes = [1, 128], strides = [1, 1]} : vector<16x128xf32> to vector<1x128xf32>
    %123 = vector.broadcast %122 : vector<1x128xf32> to vector<16x128xf32>
    %124 = arith.mulf %121, %123 : vector<16x128xf32>
    %c1_48 = arith.constant 1 : index
    %c0_49 = arith.constant 0 : index
    %c0_50 = arith.constant 0 : index
    %125 = vector.load %arg1[%c1_48, %c0_49, %c0_50] : memref<16x16x128xf32, #tpu.memory_space<vmem>>, vector<1x16x128xf32>
    %126 = vector.shape_cast %125 : vector<1x16x128xf32> to vector<16x128xf32>
    %127 = vector.extract_strided_slice %119 {offsets = [1, 0], sizes = [1, 128], strides = [1, 1]} : vector<16x128xf32> to vector<1x128xf32>
    %128 = vector.broadcast %127 : vector<1x128xf32> to vector<16x128xf32>
    %129 = arith.mulf %126, %128 : vector<16x128xf32>
    %130 = arith.addf %124, %129 : vector<16x128xf32>
    %c2_51 = arith.constant 2 : index
    %c0_52 = arith.constant 0 : index
    %c0_53 = arith.constant 0 : index
    %131 = vector.load %arg1[%c2_51, %c0_52, %c0_53] : memref<16x16x128xf32, #tpu.memory_space<vmem>>, vector<1x16x128xf32>
    %132 = vector.shape_cast %131 : vector<1x16x128xf32> to vector<16x128xf32>
    %133 = vector.extract_strided_slice %119 {offsets = [2, 0], sizes = [1, 128], strides = [1, 1]} : vector<16x128xf32> to vector<1x128xf32>
    %134 = vector.broadcast %133 : vector<1x128xf32> to vector<16x128xf32>
    %135 = arith.mulf %132, %134 : vector<16x128xf32>
    %136 = arith.addf %130, %135 : vector<16x128xf32>
    %c3_54 = arith.constant 3 : index
    %c0_55 = arith.constant 0 : index
    %c0_56 = arith.constant 0 : index
    %137 = vector.load %arg1[%c3_54, %c0_55, %c0_56] : memref<16x16x128xf32, #tpu.memory_space<vmem>>, vector<1x16x128xf32>
    %138 = vector.shape_cast %137 : vector<1x16x128xf32> to vector<16x128xf32>
    %139 = vector.extract_strided_slice %119 {offsets = [3, 0], sizes = [1, 128], strides = [1, 1]} : vector<16x128xf32> to vector<1x128xf32>
    %140 = vector.broadcast %139 : vector<1x128xf32> to vector<16x128xf32>
    %141 = arith.mulf %138, %140 : vector<16x128xf32>
    %142 = arith.addf %136, %141 : vector<16x128xf32>
    %c4_57 = arith.constant 4 : index
    %c0_58 = arith.constant 0 : index
    %c0_59 = arith.constant 0 : index
    %143 = vector.load %arg1[%c4_57, %c0_58, %c0_59] : memref<16x16x128xf32, #tpu.memory_space<vmem>>, vector<1x16x128xf32>
    %144 = vector.shape_cast %143 : vector<1x16x128xf32> to vector<16x128xf32>
    %145 = vector.extract_strided_slice %119 {offsets = [4, 0], sizes = [1, 128], strides = [1, 1]} : vector<16x128xf32> to vector<1x128xf32>
    %146 = vector.broadcast %145 : vector<1x128xf32> to vector<16x128xf32>
    %147 = arith.mulf %144, %146 : vector<16x128xf32>
    %148 = arith.addf %142, %147 : vector<16x128xf32>
    %c5_60 = arith.constant 5 : index
    %c0_61 = arith.constant 0 : index
    %c0_62 = arith.constant 0 : index
    %149 = vector.load %arg1[%c5_60, %c0_61, %c0_62] : memref<16x16x128xf32, #tpu.memory_space<vmem>>, vector<1x16x128xf32>
    %150 = vector.shape_cast %149 : vector<1x16x128xf32> to vector<16x128xf32>
    %151 = vector.extract_strided_slice %119 {offsets = [5, 0], sizes = [1, 128], strides = [1, 1]} : vector<16x128xf32> to vector<1x128xf32>
    %152 = vector.broadcast %151 : vector<1x128xf32> to vector<16x128xf32>
    %153 = arith.mulf %150, %152 : vector<16x128xf32>
    %154 = arith.addf %148, %153 : vector<16x128xf32>
    %c6_63 = arith.constant 6 : index
    %c0_64 = arith.constant 0 : index
    %c0_65 = arith.constant 0 : index
    %155 = vector.load %arg1[%c6_63, %c0_64, %c0_65] : memref<16x16x128xf32, #tpu.memory_space<vmem>>, vector<1x16x128xf32>
    %156 = vector.shape_cast %155 : vector<1x16x128xf32> to vector<16x128xf32>
    %157 = vector.extract_strided_slice %119 {offsets = [6, 0], sizes = [1, 128], strides = [1, 1]} : vector<16x128xf32> to vector<1x128xf32>
    %158 = vector.broadcast %157 : vector<1x128xf32> to vector<16x128xf32>
    %159 = arith.mulf %156, %158 : vector<16x128xf32>
    %160 = arith.addf %154, %159 : vector<16x128xf32>
    %c7_66 = arith.constant 7 : index
    %c0_67 = arith.constant 0 : index
    %c0_68 = arith.constant 0 : index
    %161 = vector.load %arg1[%c7_66, %c0_67, %c0_68] : memref<16x16x128xf32, #tpu.memory_space<vmem>>, vector<1x16x128xf32>
    %162 = vector.shape_cast %161 : vector<1x16x128xf32> to vector<16x128xf32>
    %163 = vector.extract_strided_slice %119 {offsets = [7, 0], sizes = [1, 128], strides = [1, 1]} : vector<16x128xf32> to vector<1x128xf32>
    %164 = vector.broadcast %163 : vector<1x128xf32> to vector<16x128xf32>
    %165 = arith.mulf %162, %164 : vector<16x128xf32>
    %166 = arith.addf %160, %165 : vector<16x128xf32>
    %c8_69 = arith.constant 8 : index
    %c0_70 = arith.constant 0 : index
    %c0_71 = arith.constant 0 : index
    %167 = vector.load %arg1[%c8_69, %c0_70, %c0_71] : memref<16x16x128xf32, #tpu.memory_space<vmem>>, vector<1x16x128xf32>
    %168 = vector.shape_cast %167 : vector<1x16x128xf32> to vector<16x128xf32>
    %169 = vector.extract_strided_slice %119 {offsets = [8, 0], sizes = [1, 128], strides = [1, 1]} : vector<16x128xf32> to vector<1x128xf32>
    %170 = vector.broadcast %169 : vector<1x128xf32> to vector<16x128xf32>
    %171 = arith.mulf %168, %170 : vector<16x128xf32>
    %172 = arith.addf %166, %171 : vector<16x128xf32>
    %c9_72 = arith.constant 9 : index
    %c0_73 = arith.constant 0 : index
    %c0_74 = arith.constant 0 : index
    %173 = vector.load %arg1[%c9_72, %c0_73, %c0_74] : memref<16x16x128xf32, #tpu.memory_space<vmem>>, vector<1x16x128xf32>
    %174 = vector.shape_cast %173 : vector<1x16x128xf32> to vector<16x128xf32>
    %175 = vector.extract_strided_slice %119 {offsets = [9, 0], sizes = [1, 128], strides = [1, 1]} : vector<16x128xf32> to vector<1x128xf32>
    %176 = vector.broadcast %175 : vector<1x128xf32> to vector<16x128xf32>
    %177 = arith.mulf %174, %176 : vector<16x128xf32>
    %178 = arith.addf %172, %177 : vector<16x128xf32>
    %c10_75 = arith.constant 10 : index
    %c0_76 = arith.constant 0 : index
    %c0_77 = arith.constant 0 : index
    %179 = vector.load %arg1[%c10_75, %c0_76, %c0_77] : memref<16x16x128xf32, #tpu.memory_space<vmem>>, vector<1x16x128xf32>
    %180 = vector.shape_cast %179 : vector<1x16x128xf32> to vector<16x128xf32>
    %181 = vector.extract_strided_slice %119 {offsets = [10, 0], sizes = [1, 128], strides = [1, 1]} : vector<16x128xf32> to vector<1x128xf32>
    %182 = vector.broadcast %181 : vector<1x128xf32> to vector<16x128xf32>
    %183 = arith.mulf %180, %182 : vector<16x128xf32>
    %184 = arith.addf %178, %183 : vector<16x128xf32>
    %c11_78 = arith.constant 11 : index
    %c0_79 = arith.constant 0 : index
    %c0_80 = arith.constant 0 : index
    %185 = vector.load %arg1[%c11_78, %c0_79, %c0_80] : memref<16x16x128xf32, #tpu.memory_space<vmem>>, vector<1x16x128xf32>
    %186 = vector.shape_cast %185 : vector<1x16x128xf32> to vector<16x128xf32>
    %187 = vector.extract_strided_slice %119 {offsets = [11, 0], sizes = [1, 128], strides = [1, 1]} : vector<16x128xf32> to vector<1x128xf32>
    %188 = vector.broadcast %187 : vector<1x128xf32> to vector<16x128xf32>
    %189 = arith.mulf %186, %188 : vector<16x128xf32>
    %190 = arith.addf %184, %189 : vector<16x128xf32>
    %c12_81 = arith.constant 12 : index
    %c0_82 = arith.constant 0 : index
    %c0_83 = arith.constant 0 : index
    %191 = vector.load %arg1[%c12_81, %c0_82, %c0_83] : memref<16x16x128xf32, #tpu.memory_space<vmem>>, vector<1x16x128xf32>
    %192 = vector.shape_cast %191 : vector<1x16x128xf32> to vector<16x128xf32>
    %193 = vector.extract_strided_slice %119 {offsets = [12, 0], sizes = [1, 128], strides = [1, 1]} : vector<16x128xf32> to vector<1x128xf32>
    %194 = vector.broadcast %193 : vector<1x128xf32> to vector<16x128xf32>
    %195 = arith.mulf %192, %194 : vector<16x128xf32>
    %196 = arith.addf %190, %195 : vector<16x128xf32>
    %c13_84 = arith.constant 13 : index
    %c0_85 = arith.constant 0 : index
    %c0_86 = arith.constant 0 : index
    %197 = vector.load %arg1[%c13_84, %c0_85, %c0_86] : memref<16x16x128xf32, #tpu.memory_space<vmem>>, vector<1x16x128xf32>
    %198 = vector.shape_cast %197 : vector<1x16x128xf32> to vector<16x128xf32>
    %199 = vector.extract_strided_slice %119 {offsets = [13, 0], sizes = [1, 128], strides = [1, 1]} : vector<16x128xf32> to vector<1x128xf32>
    %200 = vector.broadcast %199 : vector<1x128xf32> to vector<16x128xf32>
    %201 = arith.mulf %198, %200 : vector<16x128xf32>
    %202 = arith.addf %196, %201 : vector<16x128xf32>
    %c14_87 = arith.constant 14 : index
    %c0_88 = arith.constant 0 : index
    %c0_89 = arith.constant 0 : index
    %203 = vector.load %arg1[%c14_87, %c0_88, %c0_89] : memref<16x16x128xf32, #tpu.memory_space<vmem>>, vector<1x16x128xf32>
    %204 = vector.shape_cast %203 : vector<1x16x128xf32> to vector<16x128xf32>
    %205 = vector.extract_strided_slice %119 {offsets = [14, 0], sizes = [1, 128], strides = [1, 1]} : vector<16x128xf32> to vector<1x128xf32>
    %206 = vector.broadcast %205 : vector<1x128xf32> to vector<16x128xf32>
    %207 = arith.mulf %204, %206 : vector<16x128xf32>
    %208 = arith.addf %202, %207 : vector<16x128xf32>
    %c15_90 = arith.constant 15 : index
    %c0_91 = arith.constant 0 : index
    %c0_92 = arith.constant 0 : index
    %209 = vector.load %arg1[%c15_90, %c0_91, %c0_92] : memref<16x16x128xf32, #tpu.memory_space<vmem>>, vector<1x16x128xf32>
    %210 = vector.shape_cast %209 : vector<1x16x128xf32> to vector<16x128xf32>
    %211 = vector.extract_strided_slice %119 {offsets = [15, 0], sizes = [1, 128], strides = [1, 1]} : vector<16x128xf32> to vector<1x128xf32>
    %212 = vector.broadcast %211 : vector<1x128xf32> to vector<16x128xf32>
    %213 = arith.mulf %210, %212 : vector<16x128xf32>
    %214 = arith.addf %208, %213 : vector<16x128xf32>
    %215 = arith.mulf %119, %0 : vector<16x128xf32>
    %216 = arith.addf %214, %215 : vector<16x128xf32>
    %217 = arith.subf %1, %216 : vector<16x128xf32>
    %218 = math.absf %217 : vector<16x128xf32>
    %cst_93 = arith.constant dense<0.000000e+00> : vector<128xf32>
    %219 = vector.multi_reduction <add>, %218, %cst_93 [0] : vector<16x128xf32> to vector<128xf32>
    %220 = vector.shape_cast %219 : vector<128xf32> to vector<1x128xf32>
    %c0_94 = arith.constant 0 : index
    %c0_95 = arith.constant 0 : index
    %221 = vector.load %arg6[%c0_94, %c0_95] : memref<11x128xf32, #tpu.memory_space<vmem>>, vector<1x128xf32>
    tpu.vector_store %arg6[%c0_94, %c0_95], %220 {strides = array<i32>} : memref<11x128xf32, #tpu.memory_space<vmem>>, vector<1x128xf32>,
    %222 = arith.subf %1, %214 : vector<16x128xf32>
    %223 = arith.mulf %222, %13 : vector<16x128xf32>
    %cst_96 = arith.constant 0.000000e+00 : f32
    %224 = vector.broadcast %cst_96 : f32 to vector<16x128xf32>
    %225 = arith.select %5, %223, %224 : vector<16x128xi1>, vector<16x128xf32>
    %cst_97 = arith.constant dense<0.000000e+00> : vector<128xf32>
    %226 = vector.multi_reduction <add>, %225, %cst_97 [0] : vector<16x128xf32> to vector<128xf32>
    %227 = vector.shape_cast %226 : vector<128xf32> to vector<1x128xf32>
    %228 = vector.broadcast %227 : vector<1x128xf32> to vector<16x128xf32>
    %229 = arith.subf %223, %228 : vector<16x128xf32>
    %cst_98 = arith.constant 0.000000e+00 : f32
    %230 = vector.broadcast %cst_98 : f32 to vector<16x128xf32>
    %231 = arith.select %7, %229, %230 : vector<16x128xi1>, vector<16x128xf32>
    %c0_99 = arith.constant 0 : index
    %c0_100 = arith.constant 0 : index
    %c0_101 = arith.constant 0 : index
    %232 = vector.load %arg1[%c0_99, %c0_100, %c0_101] : memref<16x16x128xf32, #tpu.memory_space<vmem>>, vector<1x16x128xf32>
    %233 = vector.shape_cast %232 : vector<1x16x128xf32> to vector<16x128xf32>
    %234 = vector.extract_strided_slice %231 {offsets = [0, 0], sizes = [1, 128], strides = [1, 1]} : vector<16x128xf32> to vector<1x128xf32>
    %235 = vector.broadcast %234 : vector<1x128xf32> to vector<16x128xf32>
    %236 = arith.mulf %233, %235 : vector<16x128xf32>
    %c1_102 = arith.constant 1 : index
    %c0_103 = arith.constant 0 : index
    %c0_104 = arith.constant 0 : index
    %237 = vector.load %arg1[%c1_102, %c0_103, %c0_104] : memref<16x16x128xf32, #tpu.memory_space<vmem>>, vector<1x16x128xf32>
    %238 = vector.shape_cast %237 : vector<1x16x128xf32> to vector<16x128xf32>
    %239 = vector.extract_strided_slice %231 {offsets = [1, 0], sizes = [1, 128], strides = [1, 1]} : vector<16x128xf32> to vector<1x128xf32>
    %240 = vector.broadcast %239 : vector<1x128xf32> to vector<16x128xf32>
    %241 = arith.mulf %238, %240 : vector<16x128xf32>
    %242 = arith.addf %236, %241 : vector<16x128xf32>
    %c2_105 = arith.constant 2 : index
    %c0_106 = arith.constant 0 : index
    %c0_107 = arith.constant 0 : index
    %243 = vector.load %arg1[%c2_105, %c0_106, %c0_107] : memref<16x16x128xf32, #tpu.memory_space<vmem>>, vector<1x16x128xf32>
    %244 = vector.shape_cast %243 : vector<1x16x128xf32> to vector<16x128xf32>
    %245 = vector.extract_strided_slice %231 {offsets = [2, 0], sizes = [1, 128], strides = [1, 1]} : vector<16x128xf32> to vector<1x128xf32>
    %246 = vector.broadcast %245 : vector<1x128xf32> to vector<16x128xf32>
    %247 = arith.mulf %244, %246 : vector<16x128xf32>
    %248 = arith.addf %242, %247 : vector<16x128xf32>
    %c3_108 = arith.constant 3 : index
    %c0_109 = arith.constant 0 : index
    %c0_110 = arith.constant 0 : index
    %249 = vector.load %arg1[%c3_108, %c0_109, %c0_110] : memref<16x16x128xf32, #tpu.memory_space<vmem>>, vector<1x16x128xf32>
    %250 = vector.shape_cast %249 : vector<1x16x128xf32> to vector<16x128xf32>
    %251 = vector.extract_strided_slice %231 {offsets = [3, 0], sizes = [1, 128], strides = [1, 1]} : vector<16x128xf32> to vector<1x128xf32>
    %252 = vector.broadcast %251 : vector<1x128xf32> to vector<16x128xf32>
    %253 = arith.mulf %250, %252 : vector<16x128xf32>
    %254 = arith.addf %248, %253 : vector<16x128xf32>
    %c4_111 = arith.constant 4 : index
    %c0_112 = arith.constant 0 : index
    %c0_113 = arith.constant 0 : index
    %255 = vector.load %arg1[%c4_111, %c0_112, %c0_113] : memref<16x16x128xf32, #tpu.memory_space<vmem>>, vector<1x16x128xf32>
    %256 = vector.shape_cast %255 : vector<1x16x128xf32> to vector<16x128xf32>
    %257 = vector.extract_strided_slice %231 {offsets = [4, 0], sizes = [1, 128], strides = [1, 1]} : vector<16x128xf32> to vector<1x128xf32>
    %258 = vector.broadcast %257 : vector<1x128xf32> to vector<16x128xf32>
    %259 = arith.mulf %256, %258 : vector<16x128xf32>
    %260 = arith.addf %254, %259 : vector<16x128xf32>
    %c5_114 = arith.constant 5 : index
    %c0_115 = arith.constant 0 : index
    %c0_116 = arith.constant 0 : index
    %261 = vector.load %arg1[%c5_114, %c0_115, %c0_116] : memref<16x16x128xf32, #tpu.memory_space<vmem>>, vector<1x16x128xf32>
    %262 = vector.shape_cast %261 : vector<1x16x128xf32> to vector<16x128xf32>
    %263 = vector.extract_strided_slice %231 {offsets = [5, 0], sizes = [1, 128], strides = [1, 1]} : vector<16x128xf32> to vector<1x128xf32>
    %264 = vector.broadcast %263 : vector<1x128xf32> to vector<16x128xf32>
    %265 = arith.mulf %262, %264 : vector<16x128xf32>
    %266 = arith.addf %260, %265 : vector<16x128xf32>
    %c6_117 = arith.constant 6 : index
    %c0_118 = arith.constant 0 : index
    %c0_119 = arith.constant 0 : index
    %267 = vector.load %arg1[%c6_117, %c0_118, %c0_119] : memref<16x16x128xf32, #tpu.memory_space<vmem>>, vector<1x16x128xf32>
    %268 = vector.shape_cast %267 : vector<1x16x128xf32> to vector<16x128xf32>
    %269 = vector.extract_strided_slice %231 {offsets = [6, 0], sizes = [1, 128], strides = [1, 1]} : vector<16x128xf32> to vector<1x128xf32>
    %270 = vector.broadcast %269 : vector<1x128xf32> to vector<16x128xf32>
    %271 = arith.mulf %268, %270 : vector<16x128xf32>
    %272 = arith.addf %266, %271 : vector<16x128xf32>
    %c7_120 = arith.constant 7 : index
    %c0_121 = arith.constant 0 : index
    %c0_122 = arith.constant 0 : index
    %273 = vector.load %arg1[%c7_120, %c0_121, %c0_122] : memref<16x16x128xf32, #tpu.memory_space<vmem>>, vector<1x16x128xf32>
    %274 = vector.shape_cast %273 : vector<1x16x128xf32> to vector<16x128xf32>
    %275 = vector.extract_strided_slice %231 {offsets = [7, 0], sizes = [1, 128], strides = [1, 1]} : vector<16x128xf32> to vector<1x128xf32>
    %276 = vector.broadcast %275 : vector<1x128xf32> to vector<16x128xf32>
    %277 = arith.mulf %274, %276 : vector<16x128xf32>
    %278 = arith.addf %272, %277 : vector<16x128xf32>
    %c8_123 = arith.constant 8 : index
    %c0_124 = arith.constant 0 : index
    %c0_125 = arith.constant 0 : index
    %279 = vector.load %arg1[%c8_123, %c0_124, %c0_125] : memref<16x16x128xf32, #tpu.memory_space<vmem>>, vector<1x16x128xf32>
    %280 = vector.shape_cast %279 : vector<1x16x128xf32> to vector<16x128xf32>
    %281 = vector.extract_strided_slice %231 {offsets = [8, 0], sizes = [1, 128], strides = [1, 1]} : vector<16x128xf32> to vector<1x128xf32>
    %282 = vector.broadcast %281 : vector<1x128xf32> to vector<16x128xf32>
    %283 = arith.mulf %280, %282 : vector<16x128xf32>
    %284 = arith.addf %278, %283 : vector<16x128xf32>
    %c9_126 = arith.constant 9 : index
    %c0_127 = arith.constant 0 : index
    %c0_128 = arith.constant 0 : index
    %285 = vector.load %arg1[%c9_126, %c0_127, %c0_128] : memref<16x16x128xf32, #tpu.memory_space<vmem>>, vector<1x16x128xf32>
    %286 = vector.shape_cast %285 : vector<1x16x128xf32> to vector<16x128xf32>
    %287 = vector.extract_strided_slice %231 {offsets = [9, 0], sizes = [1, 128], strides = [1, 1]} : vector<16x128xf32> to vector<1x128xf32>
    %288 = vector.broadcast %287 : vector<1x128xf32> to vector<16x128xf32>
    %289 = arith.mulf %286, %288 : vector<16x128xf32>
    %290 = arith.addf %284, %289 : vector<16x128xf32>
    %c10_129 = arith.constant 10 : index
    %c0_130 = arith.constant 0 : index
    %c0_131 = arith.constant 0 : index
    %291 = vector.load %arg1[%c10_129, %c0_130, %c0_131] : memref<16x16x128xf32, #tpu.memory_space<vmem>>, vector<1x16x128xf32>
    %292 = vector.shape_cast %291 : vector<1x16x128xf32> to vector<16x128xf32>
    %293 = vector.extract_strided_slice %231 {offsets = [10, 0], sizes = [1, 128], strides = [1, 1]} : vector<16x128xf32> to vector<1x128xf32>
    %294 = vector.broadcast %293 : vector<1x128xf32> to vector<16x128xf32>
    %295 = arith.mulf %292, %294 : vector<16x128xf32>
    %296 = arith.addf %290, %295 : vector<16x128xf32>
    %c11_132 = arith.constant 11 : index
    %c0_133 = arith.constant 0 : index
    %c0_134 = arith.constant 0 : index
    %297 = vector.load %arg1[%c11_132, %c0_133, %c0_134] : memref<16x16x128xf32, #tpu.memory_space<vmem>>, vector<1x16x128xf32>
    %298 = vector.shape_cast %297 : vector<1x16x128xf32> to vector<16x128xf32>
    %299 = vector.extract_strided_slice %231 {offsets = [11, 0], sizes = [1, 128], strides = [1, 1]} : vector<16x128xf32> to vector<1x128xf32>
    %300 = vector.broadcast %299 : vector<1x128xf32> to vector<16x128xf32>
    %301 = arith.mulf %298, %300 : vector<16x128xf32>
    %302 = arith.addf %296, %301 : vector<16x128xf32>
    %c12_135 = arith.constant 12 : index
    %c0_136 = arith.constant 0 : index
    %c0_137 = arith.constant 0 : index
    %303 = vector.load %arg1[%c12_135, %c0_136, %c0_137] : memref<16x16x128xf32, #tpu.memory_space<vmem>>, vector<1x16x128xf32>
    %304 = vector.shape_cast %303 : vector<1x16x128xf32> to vector<16x128xf32>
    %305 = vector.extract_strided_slice %231 {offsets = [12, 0], sizes = [1, 128], strides = [1, 1]} : vector<16x128xf32> to vector<1x128xf32>
    %306 = vector.broadcast %305 : vector<1x128xf32> to vector<16x128xf32>
    %307 = arith.mulf %304, %306 : vector<16x128xf32>
    %308 = arith.addf %302, %307 : vector<16x128xf32>
    %c13_138 = arith.constant 13 : index
    %c0_139 = arith.constant 0 : index
    %c0_140 = arith.constant 0 : index
    %309 = vector.load %arg1[%c13_138, %c0_139, %c0_140] : memref<16x16x128xf32, #tpu.memory_space<vmem>>, vector<1x16x128xf32>
    %310 = vector.shape_cast %309 : vector<1x16x128xf32> to vector<16x128xf32>
    %311 = vector.extract_strided_slice %231 {offsets = [13, 0], sizes = [1, 128], strides = [1, 1]} : vector<16x128xf32> to vector<1x128xf32>
    %312 = vector.broadcast %311 : vector<1x128xf32> to vector<16x128xf32>
    %313 = arith.mulf %310, %312 : vector<16x128xf32>
    %314 = arith.addf %308, %313 : vector<16x128xf32>
    %c14_141 = arith.constant 14 : index
    %c0_142 = arith.constant 0 : index
    %c0_143 = arith.constant 0 : index
    %315 = vector.load %arg1[%c14_141, %c0_142, %c0_143] : memref<16x16x128xf32, #tpu.memory_space<vmem>>, vector<1x16x128xf32>
    %316 = vector.shape_cast %315 : vector<1x16x128xf32> to vector<16x128xf32>
    %317 = vector.extract_strided_slice %231 {offsets = [14, 0], sizes = [1, 128], strides = [1, 1]} : vector<16x128xf32> to vector<1x128xf32>
    %318 = vector.broadcast %317 : vector<1x128xf32> to vector<16x128xf32>
    %319 = arith.mulf %316, %318 : vector<16x128xf32>
    %320 = arith.addf %314, %319 : vector<16x128xf32>
    %c15_144 = arith.constant 15 : index
    %c0_145 = arith.constant 0 : index
    %c0_146 = arith.constant 0 : index
    %321 = vector.load %arg1[%c15_144, %c0_145, %c0_146] : memref<16x16x128xf32, #tpu.memory_space<vmem>>, vector<1x16x128xf32>
    %322 = vector.shape_cast %321 : vector<1x16x128xf32> to vector<16x128xf32>
    %323 = vector.extract_strided_slice %231 {offsets = [15, 0], sizes = [1, 128], strides = [1, 1]} : vector<16x128xf32> to vector<1x128xf32>
    %324 = vector.broadcast %323 : vector<1x128xf32> to vector<16x128xf32>
    %325 = arith.mulf %322, %324 : vector<16x128xf32>
    %326 = arith.addf %320, %325 : vector<16x128xf32>
    %327 = arith.mulf %231, %0 : vector<16x128xf32>
    %328 = arith.addf %326, %327 : vector<16x128xf32>
    %329 = arith.subf %1, %328 : vector<16x128xf32>
    %330 = math.absf %329 : vector<16x128xf32>
    %cst_147 = arith.constant dense<0.000000e+00> : vector<128xf32>
    %331 = vector.multi_reduction <add>, %330, %cst_147 [0] : vector<16x128xf32> to vector<128xf32>
    %332 = vector.shape_cast %331 : vector<128xf32> to vector<1x128xf32>
    %c1_148 = arith.constant 1 : index
    %c0_149 = arith.constant 0 : index
    %333 = vector.load %arg6[%c1_148, %c0_149] : memref<11x128xf32, #tpu.memory_space<vmem>>, vector<1x128xf32>
    tpu.vector_store %arg6[%c1_148, %c0_149], %332 {strides = array<i32>} : memref<11x128xf32, #tpu.memory_space<vmem>>, vector<1x128xf32>,
    %334 = arith.subf %1, %326 : vector<16x128xf32>
    %335 = arith.mulf %334, %13 : vector<16x128xf32>
    %cst_150 = arith.constant 0.000000e+00 : f32
    %336 = vector.broadcast %cst_150 : f32 to vector<16x128xf32>
    %337 = arith.select %5, %335, %336 : vector<16x128xi1>, vector<16x128xf32>
    %cst_151 = arith.constant dense<0.000000e+00> : vector<128xf32>
    %338 = vector.multi_reduction <add>, %337, %cst_151 [0] : vector<16x128xf32> to vector<128xf32>
    %339 = vector.shape_cast %338 : vector<128xf32> to vector<1x128xf32>
    %340 = vector.broadcast %339 : vector<1x128xf32> to vector<16x128xf32>
    %341 = arith.subf %335, %340 : vector<16x128xf32>
    %cst_152 = arith.constant 0.000000e+00 : f32
    %342 = vector.broadcast %cst_152 : f32 to vector<16x128xf32>
    %343 = arith.select %7, %341, %342 : vector<16x128xi1>, vector<16x128xf32>
    %c0_153 = arith.constant 0 : index
    %c0_154 = arith.constant 0 : index
    %c0_155 = arith.constant 0 : index
    %344 = vector.load %arg1[%c0_153, %c0_154, %c0_155] : memref<16x16x128xf32, #tpu.memory_space<vmem>>, vector<1x16x128xf32>
    %345 = vector.shape_cast %344 : vector<1x16x128xf32> to vector<16x128xf32>
    %346 = vector.extract_strided_slice %343 {offsets = [0, 0], sizes = [1, 128], strides = [1, 1]} : vector<16x128xf32> to vector<1x128xf32>
    %347 = vector.broadcast %346 : vector<1x128xf32> to vector<16x128xf32>
    %348 = arith.mulf %345, %347 : vector<16x128xf32>
    %c1_156 = arith.constant 1 : index
    %c0_157 = arith.constant 0 : index
    %c0_158 = arith.constant 0 : index
    %349 = vector.load %arg1[%c1_156, %c0_157, %c0_158] : memref<16x16x128xf32, #tpu.memory_space<vmem>>, vector<1x16x128xf32>
    %350 = vector.shape_cast %349 : vector<1x16x128xf32> to vector<16x128xf32>
    %351 = vector.extract_strided_slice %343 {offsets = [1, 0], sizes = [1, 128], strides = [1, 1]} : vector<16x128xf32> to vector<1x128xf32>
    %352 = vector.broadcast %351 : vector<1x128xf32> to vector<16x128xf32>
    %353 = arith.mulf %350, %352 : vector<16x128xf32>
    %354 = arith.addf %348, %353 : vector<16x128xf32>
    %c2_159 = arith.constant 2 : index
    %c0_160 = arith.constant 0 : index
    %c0_161 = arith.constant 0 : index
    %355 = vector.load %arg1[%c2_159, %c0_160, %c0_161] : memref<16x16x128xf32, #tpu.memory_space<vmem>>, vector<1x16x128xf32>
    %356 = vector.shape_cast %355 : vector<1x16x128xf32> to vector<16x128xf32>
    %357 = vector.extract_strided_slice %343 {offsets = [2, 0], sizes = [1, 128], strides = [1, 1]} : vector<16x128xf32> to vector<1x128xf32>
    %358 = vector.broadcast %357 : vector<1x128xf32> to vector<16x128xf32>
    %359 = arith.mulf %356, %358 : vector<16x128xf32>
    %360 = arith.addf %354, %359 : vector<16x128xf32>
    %c3_162 = arith.constant 3 : index
    %c0_163 = arith.constant 0 : index
    %c0_164 = arith.constant 0 : index
    %361 = vector.load %arg1[%c3_162, %c0_163, %c0_164] : memref<16x16x128xf32, #tpu.memory_space<vmem>>, vector<1x16x128xf32>
    %362 = vector.shape_cast %361 : vector<1x16x128xf32> to vector<16x128xf32>
    %363 = vector.extract_strided_slice %343 {offsets = [3, 0], sizes = [1, 128], strides = [1, 1]} : vector<16x128xf32> to vector<1x128xf32>
    %364 = vector.broadcast %363 : vector<1x128xf32> to vector<16x128xf32>
    %365 = arith.mulf %362, %364 : vector<16x128xf32>
    %366 = arith.addf %360, %365 : vector<16x128xf32>
    %c4_165 = arith.constant 4 : index
    %c0_166 = arith.constant 0 : index
    %c0_167 = arith.constant 0 : index
    %367 = vector.load %arg1[%c4_165, %c0_166, %c0_167] : memref<16x16x128xf32, #tpu.memory_space<vmem>>, vector<1x16x128xf32>
    %368 = vector.shape_cast %367 : vector<1x16x128xf32> to vector<16x128xf32>
    %369 = vector.extract_strided_slice %343 {offsets = [4, 0], sizes = [1, 128], strides = [1, 1]} : vector<16x128xf32> to vector<1x128xf32>
    %370 = vector.broadcast %369 : vector<1x128xf32> to vector<16x128xf32>
    %371 = arith.mulf %368, %370 : vector<16x128xf32>
    %372 = arith.addf %366, %371 : vector<16x128xf32>
    %c5_168 = arith.constant 5 : index
    %c0_169 = arith.constant 0 : index
    %c0_170 = arith.constant 0 : index
    %373 = vector.load %arg1[%c5_168, %c0_169, %c0_170] : memref<16x16x128xf32, #tpu.memory_space<vmem>>, vector<1x16x128xf32>
    %374 = vector.shape_cast %373 : vector<1x16x128xf32> to vector<16x128xf32>
    %375 = vector.extract_strided_slice %343 {offsets = [5, 0], sizes = [1, 128], strides = [1, 1]} : vector<16x128xf32> to vector<1x128xf32>
    %376 = vector.broadcast %375 : vector<1x128xf32> to vector<16x128xf32>
    %377 = arith.mulf %374, %376 : vector<16x128xf32>
    %378 = arith.addf %372, %377 : vector<16x128xf32>
    %c6_171 = arith.constant 6 : index
    %c0_172 = arith.constant 0 : index
    %c0_173 = arith.constant 0 : index
    %379 = vector.load %arg1[%c6_171, %c0_172, %c0_173] : memref<16x16x128xf32, #tpu.memory_space<vmem>>, vector<1x16x128xf32>
    %380 = vector.shape_cast %379 : vector<1x16x128xf32> to vector<16x128xf32>
    %381 = vector.extract_strided_slice %343 {offsets = [6, 0], sizes = [1, 128], strides = [1, 1]} : vector<16x128xf32> to vector<1x128xf32>
    %382 = vector.broadcast %381 : vector<1x128xf32> to vector<16x128xf32>
    %383 = arith.mulf %380, %382 : vector<16x128xf32>
    %384 = arith.addf %378, %383 : vector<16x128xf32>
    %c7_174 = arith.constant 7 : index
    %c0_175 = arith.constant 0 : index
    %c0_176 = arith.constant 0 : index
    %385 = vector.load %arg1[%c7_174, %c0_175, %c0_176] : memref<16x16x128xf32, #tpu.memory_space<vmem>>, vector<1x16x128xf32>
    %386 = vector.shape_cast %385 : vector<1x16x128xf32> to vector<16x128xf32>
    %387 = vector.extract_strided_slice %343 {offsets = [7, 0], sizes = [1, 128], strides = [1, 1]} : vector<16x128xf32> to vector<1x128xf32>
    %388 = vector.broadcast %387 : vector<1x128xf32> to vector<16x128xf32>
    %389 = arith.mulf %386, %388 : vector<16x128xf32>
    %390 = arith.addf %384, %389 : vector<16x128xf32>
    %c8_177 = arith.constant 8 : index
    %c0_178 = arith.constant 0 : index
    %c0_179 = arith.constant 0 : index
    %391 = vector.load %arg1[%c8_177, %c0_178, %c0_179] : memref<16x16x128xf32, #tpu.memory_space<vmem>>, vector<1x16x128xf32>
    %392 = vector.shape_cast %391 : vector<1x16x128xf32> to vector<16x128xf32>
    %393 = vector.extract_strided_slice %343 {offsets = [8, 0], sizes = [1, 128], strides = [1, 1]} : vector<16x128xf32> to vector<1x128xf32>
    %394 = vector.broadcast %393 : vector<1x128xf32> to vector<16x128xf32>
    %395 = arith.mulf %392, %394 : vector<16x128xf32>
    %396 = arith.addf %390, %395 : vector<16x128xf32>
    %c9_180 = arith.constant 9 : index
    %c0_181 = arith.constant 0 : index
    %c0_182 = arith.constant 0 : index
    %397 = vector.load %arg1[%c9_180, %c0_181, %c0_182] : memref<16x16x128xf32, #tpu.memory_space<vmem>>, vector<1x16x128xf32>
    %398 = vector.shape_cast %397 : vector<1x16x128xf32> to vector<16x128xf32>
    %399 = vector.extract_strided_slice %343 {offsets = [9, 0], sizes = [1, 128], strides = [1, 1]} : vector<16x128xf32> to vector<1x128xf32>
    %400 = vector.broadcast %399 : vector<1x128xf32> to vector<16x128xf32>
    %401 = arith.mulf %398, %400 : vector<16x128xf32>
    %402 = arith.addf %396, %401 : vector<16x128xf32>
    %c10_183 = arith.constant 10 : index
    %c0_184 = arith.constant 0 : index
    %c0_185 = arith.constant 0 : index
    %403 = vector.load %arg1[%c10_183, %c0_184, %c0_185] : memref<16x16x128xf32, #tpu.memory_space<vmem>>, vector<1x16x128xf32>
    %404 = vector.shape_cast %403 : vector<1x16x128xf32> to vector<16x128xf32>
    %405 = vector.extract_strided_slice %343 {offsets = [10, 0], sizes = [1, 128], strides = [1, 1]} : vector<16x128xf32> to vector<1x128xf32>
    %406 = vector.broadcast %405 : vector<1x128xf32> to vector<16x128xf32>
    %407 = arith.mulf %404, %406 : vector<16x128xf32>
    %408 = arith.addf %402, %407 : vector<16x128xf32>
    %c11_186 = arith.constant 11 : index
    %c0_187 = arith.constant 0 : index
    %c0_188 = arith.constant 0 : index
    %409 = vector.load %arg1[%c11_186, %c0_187, %c0_188] : memref<16x16x128xf32, #tpu.memory_space<vmem>>, vector<1x16x128xf32>
    %410 = vector.shape_cast %409 : vector<1x16x128xf32> to vector<16x128xf32>
    %411 = vector.extract_strided_slice %343 {offsets = [11, 0], sizes = [1, 128], strides = [1, 1]} : vector<16x128xf32> to vector<1x128xf32>
    %412 = vector.broadcast %411 : vector<1x128xf32> to vector<16x128xf32>
    %413 = arith.mulf %410, %412 : vector<16x128xf32>
    %414 = arith.addf %408, %413 : vector<16x128xf32>
    %c12_189 = arith.constant 12 : index
    %c0_190 = arith.constant 0 : index
    %c0_191 = arith.constant 0 : index
    %415 = vector.load %arg1[%c12_189, %c0_190, %c0_191] : memref<16x16x128xf32, #tpu.memory_space<vmem>>, vector<1x16x128xf32>
    %416 = vector.shape_cast %415 : vector<1x16x128xf32> to vector<16x128xf32>
    %417 = vector.extract_strided_slice %343 {offsets = [12, 0], sizes = [1, 128], strides = [1, 1]} : vector<16x128xf32> to vector<1x128xf32>
    %418 = vector.broadcast %417 : vector<1x128xf32> to vector<16x128xf32>
    %419 = arith.mulf %416, %418 : vector<16x128xf32>
    %420 = arith.addf %414, %419 : vector<16x128xf32>
    %c13_192 = arith.constant 13 : index
    %c0_193 = arith.constant 0 : index
    %c0_194 = arith.constant 0 : index
    %421 = vector.load %arg1[%c13_192, %c0_193, %c0_194] : memref<16x16x128xf32, #tpu.memory_space<vmem>>, vector<1x16x128xf32>
    %422 = vector.shape_cast %421 : vector<1x16x128xf32> to vector<16x128xf32>
    %423 = vector.extract_strided_slice %343 {offsets = [13, 0], sizes = [1, 128], strides = [1, 1]} : vector<16x128xf32> to vector<1x128xf32>
    %424 = vector.broadcast %423 : vector<1x128xf32> to vector<16x128xf32>
    %425 = arith.mulf %422, %424 : vector<16x128xf32>
    %426 = arith.addf %420, %425 : vector<16x128xf32>
    %c14_195 = arith.constant 14 : index
    %c0_196 = arith.constant 0 : index
    %c0_197 = arith.constant 0 : index
    %427 = vector.load %arg1[%c14_195, %c0_196, %c0_197] : memref<16x16x128xf32, #tpu.memory_space<vmem>>, vector<1x16x128xf32>
    %428 = vector.shape_cast %427 : vector<1x16x128xf32> to vector<16x128xf32>
    %429 = vector.extract_strided_slice %343 {offsets = [14, 0], sizes = [1, 128], strides = [1, 1]} : vector<16x128xf32> to vector<1x128xf32>
    %430 = vector.broadcast %429 : vector<1x128xf32> to vector<16x128xf32>
    %431 = arith.mulf %428, %430 : vector<16x128xf32>
    %432 = arith.addf %426, %431 : vector<16x128xf32>
    %c15_198 = arith.constant 15 : index
    %c0_199 = arith.constant 0 : index
    %c0_200 = arith.constant 0 : index
    %433 = vector.load %arg1[%c15_198, %c0_199, %c0_200] : memref<16x16x128xf32, #tpu.memory_space<vmem>>, vector<1x16x128xf32>
    %434 = vector.shape_cast %433 : vector<1x16x128xf32> to vector<16x128xf32>
    %435 = vector.extract_strided_slice %343 {offsets = [15, 0], sizes = [1, 128], strides = [1, 1]} : vector<16x128xf32> to vector<1x128xf32>
    %436 = vector.broadcast %435 : vector<1x128xf32> to vector<16x128xf32>
    %437 = arith.mulf %434, %436 : vector<16x128xf32>
    %438 = arith.addf %432, %437 : vector<16x128xf32>
    %439 = arith.mulf %343, %0 : vector<16x128xf32>
    %440 = arith.addf %438, %439 : vector<16x128xf32>
    %441 = arith.subf %1, %440 : vector<16x128xf32>
    %442 = math.absf %441 : vector<16x128xf32>
    %cst_201 = arith.constant dense<0.000000e+00> : vector<128xf32>
    %443 = vector.multi_reduction <add>, %442, %cst_201 [0] : vector<16x128xf32> to vector<128xf32>
    %444 = vector.shape_cast %443 : vector<128xf32> to vector<1x128xf32>
    %c2_202 = arith.constant 2 : index
    %c0_203 = arith.constant 0 : index
    %445 = vector.load %arg6[%c2_202, %c0_203] : memref<11x128xf32, #tpu.memory_space<vmem>>, vector<1x128xf32>
    tpu.vector_store %arg6[%c2_202, %c0_203], %444 {strides = array<i32>} : memref<11x128xf32, #tpu.memory_space<vmem>>, vector<1x128xf32>,
    %446 = arith.subf %1, %438 : vector<16x128xf32>
    %447 = arith.mulf %446, %13 : vector<16x128xf32>
    %cst_204 = arith.constant 0.000000e+00 : f32
    %448 = vector.broadcast %cst_204 : f32 to vector<16x128xf32>
    %449 = arith.select %5, %447, %448 : vector<16x128xi1>, vector<16x128xf32>
    %cst_205 = arith.constant dense<0.000000e+00> : vector<128xf32>
    %450 = vector.multi_reduction <add>, %449, %cst_205 [0] : vector<16x128xf32> to vector<128xf32>
    %451 = vector.shape_cast %450 : vector<128xf32> to vector<1x128xf32>
    %452 = vector.broadcast %451 : vector<1x128xf32> to vector<16x128xf32>
    %453 = arith.subf %447, %452 : vector<16x128xf32>
    %cst_206 = arith.constant 0.000000e+00 : f32
    %454 = vector.broadcast %cst_206 : f32 to vector<16x128xf32>
    %455 = arith.select %7, %453, %454 : vector<16x128xi1>, vector<16x128xf32>
    %c0_207 = arith.constant 0 : index
    %c0_208 = arith.constant 0 : index
    %c0_209 = arith.constant 0 : index
    %456 = vector.load %arg1[%c0_207, %c0_208, %c0_209] : memref<16x16x128xf32, #tpu.memory_space<vmem>>, vector<1x16x128xf32>
    %457 = vector.shape_cast %456 : vector<1x16x128xf32> to vector<16x128xf32>
    %458 = vector.extract_strided_slice %455 {offsets = [0, 0], sizes = [1, 128], strides = [1, 1]} : vector<16x128xf32> to vector<1x128xf32>
    %459 = vector.broadcast %458 : vector<1x128xf32> to vector<16x128xf32>
    %460 = arith.mulf %457, %459 : vector<16x128xf32>
    %c1_210 = arith.constant 1 : index
    %c0_211 = arith.constant 0 : index
    %c0_212 = arith.constant 0 : index
    %461 = vector.load %arg1[%c1_210, %c0_211, %c0_212] : memref<16x16x128xf32, #tpu.memory_space<vmem>>, vector<1x16x128xf32>
    %462 = vector.shape_cast %461 : vector<1x16x128xf32> to vector<16x128xf32>
    %463 = vector.extract_strided_slice %455 {offsets = [1, 0], sizes = [1, 128], strides = [1, 1]} : vector<16x128xf32> to vector<1x128xf32>
    %464 = vector.broadcast %463 : vector<1x128xf32> to vector<16x128xf32>
    %465 = arith.mulf %462, %464 : vector<16x128xf32>
    %466 = arith.addf %460, %465 : vector<16x128xf32>
    %c2_213 = arith.constant 2 : index
    %c0_214 = arith.constant 0 : index
    %c0_215 = arith.constant 0 : index
    %467 = vector.load %arg1[%c2_213, %c0_214, %c0_215] : memref<16x16x128xf32, #tpu.memory_space<vmem>>, vector<1x16x128xf32>
    %468 = vector.shape_cast %467 : vector<1x16x128xf32> to vector<16x128xf32>
    %469 = vector.extract_strided_slice %455 {offsets = [2, 0], sizes = [1, 128], strides = [1, 1]} : vector<16x128xf32> to vector<1x128xf32>
    %470 = vector.broadcast %469 : vector<1x128xf32> to vector<16x128xf32>
    %471 = arith.mulf %468, %470 : vector<16x128xf32>
    %472 = arith.addf %466, %471 : vector<16x128xf32>
    %c3_216 = arith.constant 3 : index
    %c0_217 = arith.constant 0 : index
    %c0_218 = arith.constant 0 : index
    %473 = vector.load %arg1[%c3_216, %c0_217, %c0_218] : memref<16x16x128xf32, #tpu.memory_space<vmem>>, vector<1x16x128xf32>
    %474 = vector.shape_cast %473 : vector<1x16x128xf32> to vector<16x128xf32>
    %475 = vector.extract_strided_slice %455 {offsets = [3, 0], sizes = [1, 128], strides = [1, 1]} : vector<16x128xf32> to vector<1x128xf32>
    %476 = vector.broadcast %475 : vector<1x128xf32> to vector<16x128xf32>
    %477 = arith.mulf %474, %476 : vector<16x128xf32>
    %478 = arith.addf %472, %477 : vector<16x128xf32>
    %c4_219 = arith.constant 4 : index
    %c0_220 = arith.constant 0 : index
    %c0_221 = arith.constant 0 : index
    %479 = vector.load %arg1[%c4_219, %c0_220, %c0_221] : memref<16x16x128xf32, #tpu.memory_space<vmem>>, vector<1x16x128xf32>
    %480 = vector.shape_cast %479 : vector<1x16x128xf32> to vector<16x128xf32>
    %481 = vector.extract_strided_slice %455 {offsets = [4, 0], sizes = [1, 128], strides = [1, 1]} : vector<16x128xf32> to vector<1x128xf32>
    %482 = vector.broadcast %481 : vector<1x128xf32> to vector<16x128xf32>
    %483 = arith.mulf %480, %482 : vector<16x128xf32>
    %484 = arith.addf %478, %483 : vector<16x128xf32>
    %c5_222 = arith.constant 5 : index
    %c0_223 = arith.constant 0 : index
    %c0_224 = arith.constant 0 : index
    %485 = vector.load %arg1[%c5_222, %c0_223, %c0_224] : memref<16x16x128xf32, #tpu.memory_space<vmem>>, vector<1x16x128xf32>
    %486 = vector.shape_cast %485 : vector<1x16x128xf32> to vector<16x128xf32>
    %487 = vector.extract_strided_slice %455 {offsets = [5, 0], sizes = [1, 128], strides = [1, 1]} : vector<16x128xf32> to vector<1x128xf32>
    %488 = vector.broadcast %487 : vector<1x128xf32> to vector<16x128xf32>
    %489 = arith.mulf %486, %488 : vector<16x128xf32>
    %490 = arith.addf %484, %489 : vector<16x128xf32>
    %c6_225 = arith.constant 6 : index
    %c0_226 = arith.constant 0 : index
    %c0_227 = arith.constant 0 : index
    %491 = vector.load %arg1[%c6_225, %c0_226, %c0_227] : memref<16x16x128xf32, #tpu.memory_space<vmem>>, vector<1x16x128xf32>
    %492 = vector.shape_cast %491 : vector<1x16x128xf32> to vector<16x128xf32>
    %493 = vector.extract_strided_slice %455 {offsets = [6, 0], sizes = [1, 128], strides = [1, 1]} : vector<16x128xf32> to vector<1x128xf32>
    %494 = vector.broadcast %493 : vector<1x128xf32> to vector<16x128xf32>
    %495 = arith.mulf %492, %494 : vector<16x128xf32>
    %496 = arith.addf %490, %495 : vector<16x128xf32>
    %c7_228 = arith.constant 7 : index
    %c0_229 = arith.constant 0 : index
    %c0_230 = arith.constant 0 : index
    %497 = vector.load %arg1[%c7_228, %c0_229, %c0_230] : memref<16x16x128xf32, #tpu.memory_space<vmem>>, vector<1x16x128xf32>
    %498 = vector.shape_cast %497 : vector<1x16x128xf32> to vector<16x128xf32>
    %499 = vector.extract_strided_slice %455 {offsets = [7, 0], sizes = [1, 128], strides = [1, 1]} : vector<16x128xf32> to vector<1x128xf32>
    %500 = vector.broadcast %499 : vector<1x128xf32> to vector<16x128xf32>
    %501 = arith.mulf %498, %500 : vector<16x128xf32>
    %502 = arith.addf %496, %501 : vector<16x128xf32>
    %c8_231 = arith.constant 8 : index
    %c0_232 = arith.constant 0 : index
    %c0_233 = arith.constant 0 : index
    %503 = vector.load %arg1[%c8_231, %c0_232, %c0_233] : memref<16x16x128xf32, #tpu.memory_space<vmem>>, vector<1x16x128xf32>
    %504 = vector.shape_cast %503 : vector<1x16x128xf32> to vector<16x128xf32>
    %505 = vector.extract_strided_slice %455 {offsets = [8, 0], sizes = [1, 128], strides = [1, 1]} : vector<16x128xf32> to vector<1x128xf32>
    %506 = vector.broadcast %505 : vector<1x128xf32> to vector<16x128xf32>
    %507 = arith.mulf %504, %506 : vector<16x128xf32>
    %508 = arith.addf %502, %507 : vector<16x128xf32>
    %c9_234 = arith.constant 9 : index
    %c0_235 = arith.constant 0 : index
    %c0_236 = arith.constant 0 : index
    %509 = vector.load %arg1[%c9_234, %c0_235, %c0_236] : memref<16x16x128xf32, #tpu.memory_space<vmem>>, vector<1x16x128xf32>
    %510 = vector.shape_cast %509 : vector<1x16x128xf32> to vector<16x128xf32>
    %511 = vector.extract_strided_slice %455 {offsets = [9, 0], sizes = [1, 128], strides = [1, 1]} : vector<16x128xf32> to vector<1x128xf32>
    %512 = vector.broadcast %511 : vector<1x128xf32> to vector<16x128xf32>
    %513 = arith.mulf %510, %512 : vector<16x128xf32>
    %514 = arith.addf %508, %513 : vector<16x128xf32>
    %c10_237 = arith.constant 10 : index
    %c0_238 = arith.constant 0 : index
    %c0_239 = arith.constant 0 : index
    %515 = vector.load %arg1[%c10_237, %c0_238, %c0_239] : memref<16x16x128xf32, #tpu.memory_space<vmem>>, vector<1x16x128xf32>
    %516 = vector.shape_cast %515 : vector<1x16x128xf32> to vector<16x128xf32>
    %517 = vector.extract_strided_slice %455 {offsets = [10, 0], sizes = [1, 128], strides = [1, 1]} : vector<16x128xf32> to vector<1x128xf32>
    %518 = vector.broadcast %517 : vector<1x128xf32> to vector<16x128xf32>
    %519 = arith.mulf %516, %518 : vector<16x128xf32>
    %520 = arith.addf %514, %519 : vector<16x128xf32>
    %c11_240 = arith.constant 11 : index
    %c0_241 = arith.constant 0 : index
    %c0_242 = arith.constant 0 : index
    %521 = vector.load %arg1[%c11_240, %c0_241, %c0_242] : memref<16x16x128xf32, #tpu.memory_space<vmem>>, vector<1x16x128xf32>
    %522 = vector.shape_cast %521 : vector<1x16x128xf32> to vector<16x128xf32>
    %523 = vector.extract_strided_slice %455 {offsets = [11, 0], sizes = [1, 128], strides = [1, 1]} : vector<16x128xf32> to vector<1x128xf32>
    %524 = vector.broadcast %523 : vector<1x128xf32> to vector<16x128xf32>
    %525 = arith.mulf %522, %524 : vector<16x128xf32>
    %526 = arith.addf %520, %525 : vector<16x128xf32>
    %c12_243 = arith.constant 12 : index
    %c0_244 = arith.constant 0 : index
    %c0_245 = arith.constant 0 : index
    %527 = vector.load %arg1[%c12_243, %c0_244, %c0_245] : memref<16x16x128xf32, #tpu.memory_space<vmem>>, vector<1x16x128xf32>
    %528 = vector.shape_cast %527 : vector<1x16x128xf32> to vector<16x128xf32>
    %529 = vector.extract_strided_slice %455 {offsets = [12, 0], sizes = [1, 128], strides = [1, 1]} : vector<16x128xf32> to vector<1x128xf32>
    %530 = vector.broadcast %529 : vector<1x128xf32> to vector<16x128xf32>
    %531 = arith.mulf %528, %530 : vector<16x128xf32>
    %532 = arith.addf %526, %531 : vector<16x128xf32>
    %c13_246 = arith.constant 13 : index
    %c0_247 = arith.constant 0 : index
    %c0_248 = arith.constant 0 : index
    %533 = vector.load %arg1[%c13_246, %c0_247, %c0_248] : memref<16x16x128xf32, #tpu.memory_space<vmem>>, vector<1x16x128xf32>
    %534 = vector.shape_cast %533 : vector<1x16x128xf32> to vector<16x128xf32>
    %535 = vector.extract_strided_slice %455 {offsets = [13, 0], sizes = [1, 128], strides = [1, 1]} : vector<16x128xf32> to vector<1x128xf32>
    %536 = vector.broadcast %535 : vector<1x128xf32> to vector<16x128xf32>
    %537 = arith.mulf %534, %536 : vector<16x128xf32>
    %538 = arith.addf %532, %537 : vector<16x128xf32>
    %c14_249 = arith.constant 14 : index
    %c0_250 = arith.constant 0 : index
    %c0_251 = arith.constant 0 : index
    %539 = vector.load %arg1[%c14_249, %c0_250, %c0_251] : memref<16x16x128xf32, #tpu.memory_space<vmem>>, vector<1x16x128xf32>
    %540 = vector.shape_cast %539 : vector<1x16x128xf32> to vector<16x128xf32>
    %541 = vector.extract_strided_slice %455 {offsets = [14, 0], sizes = [1, 128], strides = [1, 1]} : vector<16x128xf32> to vector<1x128xf32>
    %542 = vector.broadcast %541 : vector<1x128xf32> to vector<16x128xf32>
    %543 = arith.mulf %540, %542 : vector<16x128xf32>
    %544 = arith.addf %538, %543 : vector<16x128xf32>
    %c15_252 = arith.constant 15 : index
    %c0_253 = arith.constant 0 : index
    %c0_254 = arith.constant 0 : index
    %545 = vector.load %arg1[%c15_252, %c0_253, %c0_254] : memref<16x16x128xf32, #tpu.memory_space<vmem>>, vector<1x16x128xf32>
    %546 = vector.shape_cast %545 : vector<1x16x128xf32> to vector<16x128xf32>
    %547 = vector.extract_strided_slice %455 {offsets = [15, 0], sizes = [1, 128], strides = [1, 1]} : vector<16x128xf32> to vector<1x128xf32>
    %548 = vector.broadcast %547 : vector<1x128xf32> to vector<16x128xf32>
    %549 = arith.mulf %546, %548 : vector<16x128xf32>
    %550 = arith.addf %544, %549 : vector<16x128xf32>
    %551 = arith.mulf %455, %0 : vector<16x128xf32>
    %552 = arith.addf %550, %551 : vector<16x128xf32>
    %553 = arith.subf %1, %552 : vector<16x128xf32>
    %554 = math.absf %553 : vector<16x128xf32>
    %cst_255 = arith.constant dense<0.000000e+00> : vector<128xf32>
    %555 = vector.multi_reduction <add>, %554, %cst_255 [0] : vector<16x128xf32> to vector<128xf32>
    %556 = vector.shape_cast %555 : vector<128xf32> to vector<1x128xf32>
    %c3_256 = arith.constant 3 : index
    %c0_257 = arith.constant 0 : index
    %557 = vector.load %arg6[%c3_256, %c0_257] : memref<11x128xf32, #tpu.memory_space<vmem>>, vector<1x128xf32>
    tpu.vector_store %arg6[%c3_256, %c0_257], %556 {strides = array<i32>} : memref<11x128xf32, #tpu.memory_space<vmem>>, vector<1x128xf32>,
    %558 = arith.subf %1, %550 : vector<16x128xf32>
    %559 = arith.mulf %558, %13 : vector<16x128xf32>
    %cst_258 = arith.constant 0.000000e+00 : f32
    %560 = vector.broadcast %cst_258 : f32 to vector<16x128xf32>
    %561 = arith.select %5, %559, %560 : vector<16x128xi1>, vector<16x128xf32>
    %cst_259 = arith.constant dense<0.000000e+00> : vector<128xf32>
    %562 = vector.multi_reduction <add>, %561, %cst_259 [0] : vector<16x128xf32> to vector<128xf32>
    %563 = vector.shape_cast %562 : vector<128xf32> to vector<1x128xf32>
    %564 = vector.broadcast %563 : vector<1x128xf32> to vector<16x128xf32>
    %565 = arith.subf %559, %564 : vector<16x128xf32>
    %cst_260 = arith.constant 0.000000e+00 : f32
    %566 = vector.broadcast %cst_260 : f32 to vector<16x128xf32>
    %567 = arith.select %7, %565, %566 : vector<16x128xi1>, vector<16x128xf32>
    %c0_261 = arith.constant 0 : index
    %c0_262 = arith.constant 0 : index
    %c0_263 = arith.constant 0 : index
    %568 = vector.load %arg1[%c0_261, %c0_262, %c0_263] : memref<16x16x128xf32, #tpu.memory_space<vmem>>, vector<1x16x128xf32>
    %569 = vector.shape_cast %568 : vector<1x16x128xf32> to vector<16x128xf32>
    %570 = vector.extract_strided_slice %567 {offsets = [0, 0], sizes = [1, 128], strides = [1, 1]} : vector<16x128xf32> to vector<1x128xf32>
    %571 = vector.broadcast %570 : vector<1x128xf32> to vector<16x128xf32>
    %572 = arith.mulf %569, %571 : vector<16x128xf32>
    %c1_264 = arith.constant 1 : index
    %c0_265 = arith.constant 0 : index
    %c0_266 = arith.constant 0 : index
    %573 = vector.load %arg1[%c1_264, %c0_265, %c0_266] : memref<16x16x128xf32, #tpu.memory_space<vmem>>, vector<1x16x128xf32>
    %574 = vector.shape_cast %573 : vector<1x16x128xf32> to vector<16x128xf32>
    %575 = vector.extract_strided_slice %567 {offsets = [1, 0], sizes = [1, 128], strides = [1, 1]} : vector<16x128xf32> to vector<1x128xf32>
    %576 = vector.broadcast %575 : vector<1x128xf32> to vector<16x128xf32>
    %577 = arith.mulf %574, %576 : vector<16x128xf32>
    %578 = arith.addf %572, %577 : vector<16x128xf32>
    %c2_267 = arith.constant 2 : index
    %c0_268 = arith.constant 0 : index
    %c0_269 = arith.constant 0 : index
    %579 = vector.load %arg1[%c2_267, %c0_268, %c0_269] : memref<16x16x128xf32, #tpu.memory_space<vmem>>, vector<1x16x128xf32>
    %580 = vector.shape_cast %579 : vector<1x16x128xf32> to vector<16x128xf32>
    %581 = vector.extract_strided_slice %567 {offsets = [2, 0], sizes = [1, 128], strides = [1, 1]} : vector<16x128xf32> to vector<1x128xf32>
    %582 = vector.broadcast %581 : vector<1x128xf32> to vector<16x128xf32>
    %583 = arith.mulf %580, %582 : vector<16x128xf32>
    %584 = arith.addf %578, %583 : vector<16x128xf32>
    %c3_270 = arith.constant 3 : index
    %c0_271 = arith.constant 0 : index
    %c0_272 = arith.constant 0 : index
    %585 = vector.load %arg1[%c3_270, %c0_271, %c0_272] : memref<16x16x128xf32, #tpu.memory_space<vmem>>, vector<1x16x128xf32>
    %586 = vector.shape_cast %585 : vector<1x16x128xf32> to vector<16x128xf32>
    %587 = vector.extract_strided_slice %567 {offsets = [3, 0], sizes = [1, 128], strides = [1, 1]} : vector<16x128xf32> to vector<1x128xf32>
    %588 = vector.broadcast %587 : vector<1x128xf32> to vector<16x128xf32>
    %589 = arith.mulf %586, %588 : vector<16x128xf32>
    %590 = arith.addf %584, %589 : vector<16x128xf32>
    %c4_273 = arith.constant 4 : index
    %c0_274 = arith.constant 0 : index
    %c0_275 = arith.constant 0 : index
    %591 = vector.load %arg1[%c4_273, %c0_274, %c0_275] : memref<16x16x128xf32, #tpu.memory_space<vmem>>, vector<1x16x128xf32>
    %592 = vector.shape_cast %591 : vector<1x16x128xf32> to vector<16x128xf32>
    %593 = vector.extract_strided_slice %567 {offsets = [4, 0], sizes = [1, 128], strides = [1, 1]} : vector<16x128xf32> to vector<1x128xf32>
    %594 = vector.broadcast %593 : vector<1x128xf32> to vector<16x128xf32>
    %595 = arith.mulf %592, %594 : vector<16x128xf32>
    %596 = arith.addf %590, %595 : vector<16x128xf32>
    %c5_276 = arith.constant 5 : index
    %c0_277 = arith.constant 0 : index
    %c0_278 = arith.constant 0 : index
    %597 = vector.load %arg1[%c5_276, %c0_277, %c0_278] : memref<16x16x128xf32, #tpu.memory_space<vmem>>, vector<1x16x128xf32>
    %598 = vector.shape_cast %597 : vector<1x16x128xf32> to vector<16x128xf32>
    %599 = vector.extract_strided_slice %567 {offsets = [5, 0], sizes = [1, 128], strides = [1, 1]} : vector<16x128xf32> to vector<1x128xf32>
    %600 = vector.broadcast %599 : vector<1x128xf32> to vector<16x128xf32>
    %601 = arith.mulf %598, %600 : vector<16x128xf32>
    %602 = arith.addf %596, %601 : vector<16x128xf32>
    %c6_279 = arith.constant 6 : index
    %c0_280 = arith.constant 0 : index
    %c0_281 = arith.constant 0 : index
    %603 = vector.load %arg1[%c6_279, %c0_280, %c0_281] : memref<16x16x128xf32, #tpu.memory_space<vmem>>, vector<1x16x128xf32>
    %604 = vector.shape_cast %603 : vector<1x16x128xf32> to vector<16x128xf32>
    %605 = vector.extract_strided_slice %567 {offsets = [6, 0], sizes = [1, 128], strides = [1, 1]} : vector<16x128xf32> to vector<1x128xf32>
    %606 = vector.broadcast %605 : vector<1x128xf32> to vector<16x128xf32>
    %607 = arith.mulf %604, %606 : vector<16x128xf32>
    %608 = arith.addf %602, %607 : vector<16x128xf32>
    %c7_282 = arith.constant 7 : index
    %c0_283 = arith.constant 0 : index
    %c0_284 = arith.constant 0 : index
    %609 = vector.load %arg1[%c7_282, %c0_283, %c0_284] : memref<16x16x128xf32, #tpu.memory_space<vmem>>, vector<1x16x128xf32>
    %610 = vector.shape_cast %609 : vector<1x16x128xf32> to vector<16x128xf32>
    %611 = vector.extract_strided_slice %567 {offsets = [7, 0], sizes = [1, 128], strides = [1, 1]} : vector<16x128xf32> to vector<1x128xf32>
    %612 = vector.broadcast %611 : vector<1x128xf32> to vector<16x128xf32>
    %613 = arith.mulf %610, %612 : vector<16x128xf32>
    %614 = arith.addf %608, %613 : vector<16x128xf32>
    %c8_285 = arith.constant 8 : index
    %c0_286 = arith.constant 0 : index
    %c0_287 = arith.constant 0 : index
    %615 = vector.load %arg1[%c8_285, %c0_286, %c0_287] : memref<16x16x128xf32, #tpu.memory_space<vmem>>, vector<1x16x128xf32>
    %616 = vector.shape_cast %615 : vector<1x16x128xf32> to vector<16x128xf32>
    %617 = vector.extract_strided_slice %567 {offsets = [8, 0], sizes = [1, 128], strides = [1, 1]} : vector<16x128xf32> to vector<1x128xf32>
    %618 = vector.broadcast %617 : vector<1x128xf32> to vector<16x128xf32>
    %619 = arith.mulf %616, %618 : vector<16x128xf32>
    %620 = arith.addf %614, %619 : vector<16x128xf32>
    %c9_288 = arith.constant 9 : index
    %c0_289 = arith.constant 0 : index
    %c0_290 = arith.constant 0 : index
    %621 = vector.load %arg1[%c9_288, %c0_289, %c0_290] : memref<16x16x128xf32, #tpu.memory_space<vmem>>, vector<1x16x128xf32>
    %622 = vector.shape_cast %621 : vector<1x16x128xf32> to vector<16x128xf32>
    %623 = vector.extract_strided_slice %567 {offsets = [9, 0], sizes = [1, 128], strides = [1, 1]} : vector<16x128xf32> to vector<1x128xf32>
    %624 = vector.broadcast %623 : vector<1x128xf32> to vector<16x128xf32>
    %625 = arith.mulf %622, %624 : vector<16x128xf32>
    %626 = arith.addf %620, %625 : vector<16x128xf32>
    %c10_291 = arith.constant 10 : index
    %c0_292 = arith.constant 0 : index
    %c0_293 = arith.constant 0 : index
    %627 = vector.load %arg1[%c10_291, %c0_292, %c0_293] : memref<16x16x128xf32, #tpu.memory_space<vmem>>, vector<1x16x128xf32>
    %628 = vector.shape_cast %627 : vector<1x16x128xf32> to vector<16x128xf32>
    %629 = vector.extract_strided_slice %567 {offsets = [10, 0], sizes = [1, 128], strides = [1, 1]} : vector<16x128xf32> to vector<1x128xf32>
    %630 = vector.broadcast %629 : vector<1x128xf32> to vector<16x128xf32>
    %631 = arith.mulf %628, %630 : vector<16x128xf32>
    %632 = arith.addf %626, %631 : vector<16x128xf32>
    %c11_294 = arith.constant 11 : index
    %c0_295 = arith.constant 0 : index
    %c0_296 = arith.constant 0 : index
    %633 = vector.load %arg1[%c11_294, %c0_295, %c0_296] : memref<16x16x128xf32, #tpu.memory_space<vmem>>, vector<1x16x128xf32>
    %634 = vector.shape_cast %633 : vector<1x16x128xf32> to vector<16x128xf32>
    %635 = vector.extract_strided_slice %567 {offsets = [11, 0], sizes = [1, 128], strides = [1, 1]} : vector<16x128xf32> to vector<1x128xf32>
    %636 = vector.broadcast %635 : vector<1x128xf32> to vector<16x128xf32>
    %637 = arith.mulf %634, %636 : vector<16x128xf32>
    %638 = arith.addf %632, %637 : vector<16x128xf32>
    %c12_297 = arith.constant 12 : index
    %c0_298 = arith.constant 0 : index
    %c0_299 = arith.constant 0 : index
    %639 = vector.load %arg1[%c12_297, %c0_298, %c0_299] : memref<16x16x128xf32, #tpu.memory_space<vmem>>, vector<1x16x128xf32>
    %640 = vector.shape_cast %639 : vector<1x16x128xf32> to vector<16x128xf32>
    %641 = vector.extract_strided_slice %567 {offsets = [12, 0], sizes = [1, 128], strides = [1, 1]} : vector<16x128xf32> to vector<1x128xf32>
    %642 = vector.broadcast %641 : vector<1x128xf32> to vector<16x128xf32>
    %643 = arith.mulf %640, %642 : vector<16x128xf32>
    %644 = arith.addf %638, %643 : vector<16x128xf32>
    %c13_300 = arith.constant 13 : index
    %c0_301 = arith.constant 0 : index
    %c0_302 = arith.constant 0 : index
    %645 = vector.load %arg1[%c13_300, %c0_301, %c0_302] : memref<16x16x128xf32, #tpu.memory_space<vmem>>, vector<1x16x128xf32>
    %646 = vector.shape_cast %645 : vector<1x16x128xf32> to vector<16x128xf32>
    %647 = vector.extract_strided_slice %567 {offsets = [13, 0], sizes = [1, 128], strides = [1, 1]} : vector<16x128xf32> to vector<1x128xf32>
    %648 = vector.broadcast %647 : vector<1x128xf32> to vector<16x128xf32>
    %649 = arith.mulf %646, %648 : vector<16x128xf32>
    %650 = arith.addf %644, %649 : vector<16x128xf32>
    %c14_303 = arith.constant 14 : index
    %c0_304 = arith.constant 0 : index
    %c0_305 = arith.constant 0 : index
    %651 = vector.load %arg1[%c14_303, %c0_304, %c0_305] : memref<16x16x128xf32, #tpu.memory_space<vmem>>, vector<1x16x128xf32>
    %652 = vector.shape_cast %651 : vector<1x16x128xf32> to vector<16x128xf32>
    %653 = vector.extract_strided_slice %567 {offsets = [14, 0], sizes = [1, 128], strides = [1, 1]} : vector<16x128xf32> to vector<1x128xf32>
    %654 = vector.broadcast %653 : vector<1x128xf32> to vector<16x128xf32>
    %655 = arith.mulf %652, %654 : vector<16x128xf32>
    %656 = arith.addf %650, %655 : vector<16x128xf32>
    %c15_306 = arith.constant 15 : index
    %c0_307 = arith.constant 0 : index
    %c0_308 = arith.constant 0 : index
    %657 = vector.load %arg1[%c15_306, %c0_307, %c0_308] : memref<16x16x128xf32, #tpu.memory_space<vmem>>, vector<1x16x128xf32>
    %658 = vector.shape_cast %657 : vector<1x16x128xf32> to vector<16x128xf32>
    %659 = vector.extract_strided_slice %567 {offsets = [15, 0], sizes = [1, 128], strides = [1, 1]} : vector<16x128xf32> to vector<1x128xf32>
    %660 = vector.broadcast %659 : vector<1x128xf32> to vector<16x128xf32>
    %661 = arith.mulf %658, %660 : vector<16x128xf32>
    %662 = arith.addf %656, %661 : vector<16x128xf32>
    %663 = arith.mulf %567, %0 : vector<16x128xf32>
    %664 = arith.addf %662, %663 : vector<16x128xf32>
    %665 = arith.subf %1, %664 : vector<16x128xf32>
    %666 = math.absf %665 : vector<16x128xf32>
    %cst_309 = arith.constant dense<0.000000e+00> : vector<128xf32>
    %667 = vector.multi_reduction <add>, %666, %cst_309 [0] : vector<16x128xf32> to vector<128xf32>
    %668 = vector.shape_cast %667 : vector<128xf32> to vector<1x128xf32>
    %c4_310 = arith.constant 4 : index
    %c0_311 = arith.constant 0 : index
    %669 = vector.load %arg6[%c4_310, %c0_311] : memref<11x128xf32, #tpu.memory_space<vmem>>, vector<1x128xf32>
    tpu.vector_store %arg6[%c4_310, %c0_311], %668 {strides = array<i32>} : memref<11x128xf32, #tpu.memory_space<vmem>>, vector<1x128xf32>,
    %670 = arith.subf %1, %662 : vector<16x128xf32>
    %671 = arith.mulf %670, %13 : vector<16x128xf32>
    %cst_312 = arith.constant 0.000000e+00 : f32
    %672 = vector.broadcast %cst_312 : f32 to vector<16x128xf32>
    %673 = arith.select %5, %671, %672 : vector<16x128xi1>, vector<16x128xf32>
    %cst_313 = arith.constant dense<0.000000e+00> : vector<128xf32>
    %674 = vector.multi_reduction <add>, %673, %cst_313 [0] : vector<16x128xf32> to vector<128xf32>
    %675 = vector.shape_cast %674 : vector<128xf32> to vector<1x128xf32>
    %676 = vector.broadcast %675 : vector<1x128xf32> to vector<16x128xf32>
    %677 = arith.subf %671, %676 : vector<16x128xf32>
    %cst_314 = arith.constant 0.000000e+00 : f32
    %678 = vector.broadcast %cst_314 : f32 to vector<16x128xf32>
    %679 = arith.select %7, %677, %678 : vector<16x128xi1>, vector<16x128xf32>
    %c0_315 = arith.constant 0 : index
    %c0_316 = arith.constant 0 : index
    %c0_317 = arith.constant 0 : index
    %680 = vector.load %arg1[%c0_315, %c0_316, %c0_317] : memref<16x16x128xf32, #tpu.memory_space<vmem>>, vector<1x16x128xf32>
    %681 = vector.shape_cast %680 : vector<1x16x128xf32> to vector<16x128xf32>
    %682 = vector.extract_strided_slice %679 {offsets = [0, 0], sizes = [1, 128], strides = [1, 1]} : vector<16x128xf32> to vector<1x128xf32>
    %683 = vector.broadcast %682 : vector<1x128xf32> to vector<16x128xf32>
    %684 = arith.mulf %681, %683 : vector<16x128xf32>
    %c1_318 = arith.constant 1 : index
    %c0_319 = arith.constant 0 : index
    %c0_320 = arith.constant 0 : index
    %685 = vector.load %arg1[%c1_318, %c0_319, %c0_320] : memref<16x16x128xf32, #tpu.memory_space<vmem>>, vector<1x16x128xf32>
    %686 = vector.shape_cast %685 : vector<1x16x128xf32> to vector<16x128xf32>
    %687 = vector.extract_strided_slice %679 {offsets = [1, 0], sizes = [1, 128], strides = [1, 1]} : vector<16x128xf32> to vector<1x128xf32>
    %688 = vector.broadcast %687 : vector<1x128xf32> to vector<16x128xf32>
    %689 = arith.mulf %686, %688 : vector<16x128xf32>
    %690 = arith.addf %684, %689 : vector<16x128xf32>
    %c2_321 = arith.constant 2 : index
    %c0_322 = arith.constant 0 : index
    %c0_323 = arith.constant 0 : index
    %691 = vector.load %arg1[%c2_321, %c0_322, %c0_323] : memref<16x16x128xf32, #tpu.memory_space<vmem>>, vector<1x16x128xf32>
    %692 = vector.shape_cast %691 : vector<1x16x128xf32> to vector<16x128xf32>
    %693 = vector.extract_strided_slice %679 {offsets = [2, 0], sizes = [1, 128], strides = [1, 1]} : vector<16x128xf32> to vector<1x128xf32>
    %694 = vector.broadcast %693 : vector<1x128xf32> to vector<16x128xf32>
    %695 = arith.mulf %692, %694 : vector<16x128xf32>
    %696 = arith.addf %690, %695 : vector<16x128xf32>
    %c3_324 = arith.constant 3 : index
    %c0_325 = arith.constant 0 : index
    %c0_326 = arith.constant 0 : index
    %697 = vector.load %arg1[%c3_324, %c0_325, %c0_326] : memref<16x16x128xf32, #tpu.memory_space<vmem>>, vector<1x16x128xf32>
    %698 = vector.shape_cast %697 : vector<1x16x128xf32> to vector<16x128xf32>
    %699 = vector.extract_strided_slice %679 {offsets = [3, 0], sizes = [1, 128], strides = [1, 1]} : vector<16x128xf32> to vector<1x128xf32>
    %700 = vector.broadcast %699 : vector<1x128xf32> to vector<16x128xf32>
    %701 = arith.mulf %698, %700 : vector<16x128xf32>
    %702 = arith.addf %696, %701 : vector<16x128xf32>
    %c4_327 = arith.constant 4 : index
    %c0_328 = arith.constant 0 : index
    %c0_329 = arith.constant 0 : index
    %703 = vector.load %arg1[%c4_327, %c0_328, %c0_329] : memref<16x16x128xf32, #tpu.memory_space<vmem>>, vector<1x16x128xf32>
    %704 = vector.shape_cast %703 : vector<1x16x128xf32> to vector<16x128xf32>
    %705 = vector.extract_strided_slice %679 {offsets = [4, 0], sizes = [1, 128], strides = [1, 1]} : vector<16x128xf32> to vector<1x128xf32>
    %706 = vector.broadcast %705 : vector<1x128xf32> to vector<16x128xf32>
    %707 = arith.mulf %704, %706 : vector<16x128xf32>
    %708 = arith.addf %702, %707 : vector<16x128xf32>
    %c5_330 = arith.constant 5 : index
    %c0_331 = arith.constant 0 : index
    %c0_332 = arith.constant 0 : index
    %709 = vector.load %arg1[%c5_330, %c0_331, %c0_332] : memref<16x16x128xf32, #tpu.memory_space<vmem>>, vector<1x16x128xf32>
    %710 = vector.shape_cast %709 : vector<1x16x128xf32> to vector<16x128xf32>
    %711 = vector.extract_strided_slice %679 {offsets = [5, 0], sizes = [1, 128], strides = [1, 1]} : vector<16x128xf32> to vector<1x128xf32>
    %712 = vector.broadcast %711 : vector<1x128xf32> to vector<16x128xf32>
    %713 = arith.mulf %710, %712 : vector<16x128xf32>
    %714 = arith.addf %708, %713 : vector<16x128xf32>
    %c6_333 = arith.constant 6 : index
    %c0_334 = arith.constant 0 : index
    %c0_335 = arith.constant 0 : index
    %715 = vector.load %arg1[%c6_333, %c0_334, %c0_335] : memref<16x16x128xf32, #tpu.memory_space<vmem>>, vector<1x16x128xf32>
    %716 = vector.shape_cast %715 : vector<1x16x128xf32> to vector<16x128xf32>
    %717 = vector.extract_strided_slice %679 {offsets = [6, 0], sizes = [1, 128], strides = [1, 1]} : vector<16x128xf32> to vector<1x128xf32>
    %718 = vector.broadcast %717 : vector<1x128xf32> to vector<16x128xf32>
    %719 = arith.mulf %716, %718 : vector<16x128xf32>
    %720 = arith.addf %714, %719 : vector<16x128xf32>
    %c7_336 = arith.constant 7 : index
    %c0_337 = arith.constant 0 : index
    %c0_338 = arith.constant 0 : index
    %721 = vector.load %arg1[%c7_336, %c0_337, %c0_338] : memref<16x16x128xf32, #tpu.memory_space<vmem>>, vector<1x16x128xf32>
    %722 = vector.shape_cast %721 : vector<1x16x128xf32> to vector<16x128xf32>
    %723 = vector.extract_strided_slice %679 {offsets = [7, 0], sizes = [1, 128], strides = [1, 1]} : vector<16x128xf32> to vector<1x128xf32>
    %724 = vector.broadcast %723 : vector<1x128xf32> to vector<16x128xf32>
    %725 = arith.mulf %722, %724 : vector<16x128xf32>
    %726 = arith.addf %720, %725 : vector<16x128xf32>
    %c8_339 = arith.constant 8 : index
    %c0_340 = arith.constant 0 : index
    %c0_341 = arith.constant 0 : index
    %727 = vector.load %arg1[%c8_339, %c0_340, %c0_341] : memref<16x16x128xf32, #tpu.memory_space<vmem>>, vector<1x16x128xf32>
    %728 = vector.shape_cast %727 : vector<1x16x128xf32> to vector<16x128xf32>
    %729 = vector.extract_strided_slice %679 {offsets = [8, 0], sizes = [1, 128], strides = [1, 1]} : vector<16x128xf32> to vector<1x128xf32>
    %730 = vector.broadcast %729 : vector<1x128xf32> to vector<16x128xf32>
    %731 = arith.mulf %728, %730 : vector<16x128xf32>
    %732 = arith.addf %726, %731 : vector<16x128xf32>
    %c9_342 = arith.constant 9 : index
    %c0_343 = arith.constant 0 : index
    %c0_344 = arith.constant 0 : index
    %733 = vector.load %arg1[%c9_342, %c0_343, %c0_344] : memref<16x16x128xf32, #tpu.memory_space<vmem>>, vector<1x16x128xf32>
    %734 = vector.shape_cast %733 : vector<1x16x128xf32> to vector<16x128xf32>
    %735 = vector.extract_strided_slice %679 {offsets = [9, 0], sizes = [1, 128], strides = [1, 1]} : vector<16x128xf32> to vector<1x128xf32>
    %736 = vector.broadcast %735 : vector<1x128xf32> to vector<16x128xf32>
    %737 = arith.mulf %734, %736 : vector<16x128xf32>
    %738 = arith.addf %732, %737 : vector<16x128xf32>
    %c10_345 = arith.constant 10 : index
    %c0_346 = arith.constant 0 : index
    %c0_347 = arith.constant 0 : index
    %739 = vector.load %arg1[%c10_345, %c0_346, %c0_347] : memref<16x16x128xf32, #tpu.memory_space<vmem>>, vector<1x16x128xf32>
    %740 = vector.shape_cast %739 : vector<1x16x128xf32> to vector<16x128xf32>
    %741 = vector.extract_strided_slice %679 {offsets = [10, 0], sizes = [1, 128], strides = [1, 1]} : vector<16x128xf32> to vector<1x128xf32>
    %742 = vector.broadcast %741 : vector<1x128xf32> to vector<16x128xf32>
    %743 = arith.mulf %740, %742 : vector<16x128xf32>
    %744 = arith.addf %738, %743 : vector<16x128xf32>
    %c11_348 = arith.constant 11 : index
    %c0_349 = arith.constant 0 : index
    %c0_350 = arith.constant 0 : index
    %745 = vector.load %arg1[%c11_348, %c0_349, %c0_350] : memref<16x16x128xf32, #tpu.memory_space<vmem>>, vector<1x16x128xf32>
    %746 = vector.shape_cast %745 : vector<1x16x128xf32> to vector<16x128xf32>
    %747 = vector.extract_strided_slice %679 {offsets = [11, 0], sizes = [1, 128], strides = [1, 1]} : vector<16x128xf32> to vector<1x128xf32>
    %748 = vector.broadcast %747 : vector<1x128xf32> to vector<16x128xf32>
    %749 = arith.mulf %746, %748 : vector<16x128xf32>
    %750 = arith.addf %744, %749 : vector<16x128xf32>
    %c12_351 = arith.constant 12 : index
    %c0_352 = arith.constant 0 : index
    %c0_353 = arith.constant 0 : index
    %751 = vector.load %arg1[%c12_351, %c0_352, %c0_353] : memref<16x16x128xf32, #tpu.memory_space<vmem>>, vector<1x16x128xf32>
    %752 = vector.shape_cast %751 : vector<1x16x128xf32> to vector<16x128xf32>
    %753 = vector.extract_strided_slice %679 {offsets = [12, 0], sizes = [1, 128], strides = [1, 1]} : vector<16x128xf32> to vector<1x128xf32>
    %754 = vector.broadcast %753 : vector<1x128xf32> to vector<16x128xf32>
    %755 = arith.mulf %752, %754 : vector<16x128xf32>
    %756 = arith.addf %750, %755 : vector<16x128xf32>
    %c13_354 = arith.constant 13 : index
    %c0_355 = arith.constant 0 : index
    %c0_356 = arith.constant 0 : index
    %757 = vector.load %arg1[%c13_354, %c0_355, %c0_356] : memref<16x16x128xf32, #tpu.memory_space<vmem>>, vector<1x16x128xf32>
    %758 = vector.shape_cast %757 : vector<1x16x128xf32> to vector<16x128xf32>
    %759 = vector.extract_strided_slice %679 {offsets = [13, 0], sizes = [1, 128], strides = [1, 1]} : vector<16x128xf32> to vector<1x128xf32>
    %760 = vector.broadcast %759 : vector<1x128xf32> to vector<16x128xf32>
    %761 = arith.mulf %758, %760 : vector<16x128xf32>
    %762 = arith.addf %756, %761 : vector<16x128xf32>
    %c14_357 = arith.constant 14 : index
    %c0_358 = arith.constant 0 : index
    %c0_359 = arith.constant 0 : index
    %763 = vector.load %arg1[%c14_357, %c0_358, %c0_359] : memref<16x16x128xf32, #tpu.memory_space<vmem>>, vector<1x16x128xf32>
    %764 = vector.shape_cast %763 : vector<1x16x128xf32> to vector<16x128xf32>
    %765 = vector.extract_strided_slice %679 {offsets = [14, 0], sizes = [1, 128], strides = [1, 1]} : vector<16x128xf32> to vector<1x128xf32>
    %766 = vector.broadcast %765 : vector<1x128xf32> to vector<16x128xf32>
    %767 = arith.mulf %764, %766 : vector<16x128xf32>
    %768 = arith.addf %762, %767 : vector<16x128xf32>
    %c15_360 = arith.constant 15 : index
    %c0_361 = arith.constant 0 : index
    %c0_362 = arith.constant 0 : index
    %769 = vector.load %arg1[%c15_360, %c0_361, %c0_362] : memref<16x16x128xf32, #tpu.memory_space<vmem>>, vector<1x16x128xf32>
    %770 = vector.shape_cast %769 : vector<1x16x128xf32> to vector<16x128xf32>
    %771 = vector.extract_strided_slice %679 {offsets = [15, 0], sizes = [1, 128], strides = [1, 1]} : vector<16x128xf32> to vector<1x128xf32>
    %772 = vector.broadcast %771 : vector<1x128xf32> to vector<16x128xf32>
    %773 = arith.mulf %770, %772 : vector<16x128xf32>
    %774 = arith.addf %768, %773 : vector<16x128xf32>
    %775 = arith.mulf %679, %0 : vector<16x128xf32>
    %776 = arith.addf %774, %775 : vector<16x128xf32>
    %777 = arith.subf %1, %776 : vector<16x128xf32>
    %778 = math.absf %777 : vector<16x128xf32>
    %cst_363 = arith.constant dense<0.000000e+00> : vector<128xf32>
    %779 = vector.multi_reduction <add>, %778, %cst_363 [0] : vector<16x128xf32> to vector<128xf32>
    %780 = vector.shape_cast %779 : vector<128xf32> to vector<1x128xf32>
    %c5_364 = arith.constant 5 : index
    %c0_365 = arith.constant 0 : index
    %781 = vector.load %arg6[%c5_364, %c0_365] : memref<11x128xf32, #tpu.memory_space<vmem>>, vector<1x128xf32>
    tpu.vector_store %arg6[%c5_364, %c0_365], %780 {strides = array<i32>} : memref<11x128xf32, #tpu.memory_space<vmem>>, vector<1x128xf32>,
    %782 = arith.subf %1, %774 : vector<16x128xf32>
    %783 = arith.mulf %782, %13 : vector<16x128xf32>
    %cst_366 = arith.constant 0.000000e+00 : f32
    %784 = vector.broadcast %cst_366 : f32 to vector<16x128xf32>
    %785 = arith.select %5, %783, %784 : vector<16x128xi1>, vector<16x128xf32>
    %cst_367 = arith.constant dense<0.000000e+00> : vector<128xf32>
    %786 = vector.multi_reduction <add>, %785, %cst_367 [0] : vector<16x128xf32> to vector<128xf32>
    %787 = vector.shape_cast %786 : vector<128xf32> to vector<1x128xf32>
    %788 = vector.broadcast %787 : vector<1x128xf32> to vector<16x128xf32>
    %789 = arith.subf %783, %788 : vector<16x128xf32>
    %cst_368 = arith.constant 0.000000e+00 : f32
    %790 = vector.broadcast %cst_368 : f32 to vector<16x128xf32>
    %791 = arith.select %7, %789, %790 : vector<16x128xi1>, vector<16x128xf32>
    %c0_369 = arith.constant 0 : index
    %c0_370 = arith.constant 0 : index
    %c0_371 = arith.constant 0 : index
    %792 = vector.load %arg1[%c0_369, %c0_370, %c0_371] : memref<16x16x128xf32, #tpu.memory_space<vmem>>, vector<1x16x128xf32>
    %793 = vector.shape_cast %792 : vector<1x16x128xf32> to vector<16x128xf32>
    %794 = vector.extract_strided_slice %791 {offsets = [0, 0], sizes = [1, 128], strides = [1, 1]} : vector<16x128xf32> to vector<1x128xf32>
    %795 = vector.broadcast %794 : vector<1x128xf32> to vector<16x128xf32>
    %796 = arith.mulf %793, %795 : vector<16x128xf32>
    %c1_372 = arith.constant 1 : index
    %c0_373 = arith.constant 0 : index
    %c0_374 = arith.constant 0 : index
    %797 = vector.load %arg1[%c1_372, %c0_373, %c0_374] : memref<16x16x128xf32, #tpu.memory_space<vmem>>, vector<1x16x128xf32>
    %798 = vector.shape_cast %797 : vector<1x16x128xf32> to vector<16x128xf32>
    %799 = vector.extract_strided_slice %791 {offsets = [1, 0], sizes = [1, 128], strides = [1, 1]} : vector<16x128xf32> to vector<1x128xf32>
    %800 = vector.broadcast %799 : vector<1x128xf32> to vector<16x128xf32>
    %801 = arith.mulf %798, %800 : vector<16x128xf32>
    %802 = arith.addf %796, %801 : vector<16x128xf32>
    %c2_375 = arith.constant 2 : index
    %c0_376 = arith.constant 0 : index
    %c0_377 = arith.constant 0 : index
    %803 = vector.load %arg1[%c2_375, %c0_376, %c0_377] : memref<16x16x128xf32, #tpu.memory_space<vmem>>, vector<1x16x128xf32>
    %804 = vector.shape_cast %803 : vector<1x16x128xf32> to vector<16x128xf32>
    %805 = vector.extract_strided_slice %791 {offsets = [2, 0], sizes = [1, 128], strides = [1, 1]} : vector<16x128xf32> to vector<1x128xf32>
    %806 = vector.broadcast %805 : vector<1x128xf32> to vector<16x128xf32>
    %807 = arith.mulf %804, %806 : vector<16x128xf32>
    %808 = arith.addf %802, %807 : vector<16x128xf32>
    %c3_378 = arith.constant 3 : index
    %c0_379 = arith.constant 0 : index
    %c0_380 = arith.constant 0 : index
    %809 = vector.load %arg1[%c3_378, %c0_379, %c0_380] : memref<16x16x128xf32, #tpu.memory_space<vmem>>, vector<1x16x128xf32>
    %810 = vector.shape_cast %809 : vector<1x16x128xf32> to vector<16x128xf32>
    %811 = vector.extract_strided_slice %791 {offsets = [3, 0], sizes = [1, 128], strides = [1, 1]} : vector<16x128xf32> to vector<1x128xf32>
    %812 = vector.broadcast %811 : vector<1x128xf32> to vector<16x128xf32>
    %813 = arith.mulf %810, %812 : vector<16x128xf32>
    %814 = arith.addf %808, %813 : vector<16x128xf32>
    %c4_381 = arith.constant 4 : index
    %c0_382 = arith.constant 0 : index
    %c0_383 = arith.constant 0 : index
    %815 = vector.load %arg1[%c4_381, %c0_382, %c0_383] : memref<16x16x128xf32, #tpu.memory_space<vmem>>, vector<1x16x128xf32>
    %816 = vector.shape_cast %815 : vector<1x16x128xf32> to vector<16x128xf32>
    %817 = vector.extract_strided_slice %791 {offsets = [4, 0], sizes = [1, 128], strides = [1, 1]} : vector<16x128xf32> to vector<1x128xf32>
    %818 = vector.broadcast %817 : vector<1x128xf32> to vector<16x128xf32>
    %819 = arith.mulf %816, %818 : vector<16x128xf32>
    %820 = arith.addf %814, %819 : vector<16x128xf32>
    %c5_384 = arith.constant 5 : index
    %c0_385 = arith.constant 0 : index
    %c0_386 = arith.constant 0 : index
    %821 = vector.load %arg1[%c5_384, %c0_385, %c0_386] : memref<16x16x128xf32, #tpu.memory_space<vmem>>, vector<1x16x128xf32>
    %822 = vector.shape_cast %821 : vector<1x16x128xf32> to vector<16x128xf32>
    %823 = vector.extract_strided_slice %791 {offsets = [5, 0], sizes = [1, 128], strides = [1, 1]} : vector<16x128xf32> to vector<1x128xf32>
    %824 = vector.broadcast %823 : vector<1x128xf32> to vector<16x128xf32>
    %825 = arith.mulf %822, %824 : vector<16x128xf32>
    %826 = arith.addf %820, %825 : vector<16x128xf32>
    %c6_387 = arith.constant 6 : index
    %c0_388 = arith.constant 0 : index
    %c0_389 = arith.constant 0 : index
    %827 = vector.load %arg1[%c6_387, %c0_388, %c0_389] : memref<16x16x128xf32, #tpu.memory_space<vmem>>, vector<1x16x128xf32>
    %828 = vector.shape_cast %827 : vector<1x16x128xf32> to vector<16x128xf32>
    %829 = vector.extract_strided_slice %791 {offsets = [6, 0], sizes = [1, 128], strides = [1, 1]} : vector<16x128xf32> to vector<1x128xf32>
    %830 = vector.broadcast %829 : vector<1x128xf32> to vector<16x128xf32>
    %831 = arith.mulf %828, %830 : vector<16x128xf32>
    %832 = arith.addf %826, %831 : vector<16x128xf32>
    %c7_390 = arith.constant 7 : index
    %c0_391 = arith.constant 0 : index
    %c0_392 = arith.constant 0 : index
    %833 = vector.load %arg1[%c7_390, %c0_391, %c0_392] : memref<16x16x128xf32, #tpu.memory_space<vmem>>, vector<1x16x128xf32>
    %834 = vector.shape_cast %833 : vector<1x16x128xf32> to vector<16x128xf32>
    %835 = vector.extract_strided_slice %791 {offsets = [7, 0], sizes = [1, 128], strides = [1, 1]} : vector<16x128xf32> to vector<1x128xf32>
    %836 = vector.broadcast %835 : vector<1x128xf32> to vector<16x128xf32>
    %837 = arith.mulf %834, %836 : vector<16x128xf32>
    %838 = arith.addf %832, %837 : vector<16x128xf32>
    %c8_393 = arith.constant 8 : index
    %c0_394 = arith.constant 0 : index
    %c0_395 = arith.constant 0 : index
    %839 = vector.load %arg1[%c8_393, %c0_394, %c0_395] : memref<16x16x128xf32, #tpu.memory_space<vmem>>, vector<1x16x128xf32>
    %840 = vector.shape_cast %839 : vector<1x16x128xf32> to vector<16x128xf32>
    %841 = vector.extract_strided_slice %791 {offsets = [8, 0], sizes = [1, 128], strides = [1, 1]} : vector<16x128xf32> to vector<1x128xf32>
    %842 = vector.broadcast %841 : vector<1x128xf32> to vector<16x128xf32>
    %843 = arith.mulf %840, %842 : vector<16x128xf32>
    %844 = arith.addf %838, %843 : vector<16x128xf32>
    %c9_396 = arith.constant 9 : index
    %c0_397 = arith.constant 0 : index
    %c0_398 = arith.constant 0 : index
    %845 = vector.load %arg1[%c9_396, %c0_397, %c0_398] : memref<16x16x128xf32, #tpu.memory_space<vmem>>, vector<1x16x128xf32>
    %846 = vector.shape_cast %845 : vector<1x16x128xf32> to vector<16x128xf32>
    %847 = vector.extract_strided_slice %791 {offsets = [9, 0], sizes = [1, 128], strides = [1, 1]} : vector<16x128xf32> to vector<1x128xf32>
    %848 = vector.broadcast %847 : vector<1x128xf32> to vector<16x128xf32>
    %849 = arith.mulf %846, %848 : vector<16x128xf32>
    %850 = arith.addf %844, %849 : vector<16x128xf32>
    %c10_399 = arith.constant 10 : index
    %c0_400 = arith.constant 0 : index
    %c0_401 = arith.constant 0 : index
    %851 = vector.load %arg1[%c10_399, %c0_400, %c0_401] : memref<16x16x128xf32, #tpu.memory_space<vmem>>, vector<1x16x128xf32>
    %852 = vector.shape_cast %851 : vector<1x16x128xf32> to vector<16x128xf32>
    %853 = vector.extract_strided_slice %791 {offsets = [10, 0], sizes = [1, 128], strides = [1, 1]} : vector<16x128xf32> to vector<1x128xf32>
    %854 = vector.broadcast %853 : vector<1x128xf32> to vector<16x128xf32>
    %855 = arith.mulf %852, %854 : vector<16x128xf32>
    %856 = arith.addf %850, %855 : vector<16x128xf32>
    %c11_402 = arith.constant 11 : index
    %c0_403 = arith.constant 0 : index
    %c0_404 = arith.constant 0 : index
    %857 = vector.load %arg1[%c11_402, %c0_403, %c0_404] : memref<16x16x128xf32, #tpu.memory_space<vmem>>, vector<1x16x128xf32>
    %858 = vector.shape_cast %857 : vector<1x16x128xf32> to vector<16x128xf32>
    %859 = vector.extract_strided_slice %791 {offsets = [11, 0], sizes = [1, 128], strides = [1, 1]} : vector<16x128xf32> to vector<1x128xf32>
    %860 = vector.broadcast %859 : vector<1x128xf32> to vector<16x128xf32>
    %861 = arith.mulf %858, %860 : vector<16x128xf32>
    %862 = arith.addf %856, %861 : vector<16x128xf32>
    %c12_405 = arith.constant 12 : index
    %c0_406 = arith.constant 0 : index
    %c0_407 = arith.constant 0 : index
    %863 = vector.load %arg1[%c12_405, %c0_406, %c0_407] : memref<16x16x128xf32, #tpu.memory_space<vmem>>, vector<1x16x128xf32>
    %864 = vector.shape_cast %863 : vector<1x16x128xf32> to vector<16x128xf32>
    %865 = vector.extract_strided_slice %791 {offsets = [12, 0], sizes = [1, 128], strides = [1, 1]} : vector<16x128xf32> to vector<1x128xf32>
    %866 = vector.broadcast %865 : vector<1x128xf32> to vector<16x128xf32>
    %867 = arith.mulf %864, %866 : vector<16x128xf32>
    %868 = arith.addf %862, %867 : vector<16x128xf32>
    %c13_408 = arith.constant 13 : index
    %c0_409 = arith.constant 0 : index
    %c0_410 = arith.constant 0 : index
    %869 = vector.load %arg1[%c13_408, %c0_409, %c0_410] : memref<16x16x128xf32, #tpu.memory_space<vmem>>, vector<1x16x128xf32>
    %870 = vector.shape_cast %869 : vector<1x16x128xf32> to vector<16x128xf32>
    %871 = vector.extract_strided_slice %791 {offsets = [13, 0], sizes = [1, 128], strides = [1, 1]} : vector<16x128xf32> to vector<1x128xf32>
    %872 = vector.broadcast %871 : vector<1x128xf32> to vector<16x128xf32>
    %873 = arith.mulf %870, %872 : vector<16x128xf32>
    %874 = arith.addf %868, %873 : vector<16x128xf32>
    %c14_411 = arith.constant 14 : index
    %c0_412 = arith.constant 0 : index
    %c0_413 = arith.constant 0 : index
    %875 = vector.load %arg1[%c14_411, %c0_412, %c0_413] : memref<16x16x128xf32, #tpu.memory_space<vmem>>, vector<1x16x128xf32>
    %876 = vector.shape_cast %875 : vector<1x16x128xf32> to vector<16x128xf32>
    %877 = vector.extract_strided_slice %791 {offsets = [14, 0], sizes = [1, 128], strides = [1, 1]} : vector<16x128xf32> to vector<1x128xf32>
    %878 = vector.broadcast %877 : vector<1x128xf32> to vector<16x128xf32>
    %879 = arith.mulf %876, %878 : vector<16x128xf32>
    %880 = arith.addf %874, %879 : vector<16x128xf32>
    %c15_414 = arith.constant 15 : index
    %c0_415 = arith.constant 0 : index
    %c0_416 = arith.constant 0 : index
    %881 = vector.load %arg1[%c15_414, %c0_415, %c0_416] : memref<16x16x128xf32, #tpu.memory_space<vmem>>, vector<1x16x128xf32>
    %882 = vector.shape_cast %881 : vector<1x16x128xf32> to vector<16x128xf32>
    %883 = vector.extract_strided_slice %791 {offsets = [15, 0], sizes = [1, 128], strides = [1, 1]} : vector<16x128xf32> to vector<1x128xf32>
    %884 = vector.broadcast %883 : vector<1x128xf32> to vector<16x128xf32>
    %885 = arith.mulf %882, %884 : vector<16x128xf32>
    %886 = arith.addf %880, %885 : vector<16x128xf32>
    %887 = arith.mulf %791, %0 : vector<16x128xf32>
    %888 = arith.addf %886, %887 : vector<16x128xf32>
    %889 = arith.subf %1, %888 : vector<16x128xf32>
    %890 = math.absf %889 : vector<16x128xf32>
    %cst_417 = arith.constant dense<0.000000e+00> : vector<128xf32>
    %891 = vector.multi_reduction <add>, %890, %cst_417 [0] : vector<16x128xf32> to vector<128xf32>
    %892 = vector.shape_cast %891 : vector<128xf32> to vector<1x128xf32>
    %c6_418 = arith.constant 6 : index
    %c0_419 = arith.constant 0 : index
    %893 = vector.load %arg6[%c6_418, %c0_419] : memref<11x128xf32, #tpu.memory_space<vmem>>, vector<1x128xf32>
    tpu.vector_store %arg6[%c6_418, %c0_419], %892 {strides = array<i32>} : memref<11x128xf32, #tpu.memory_space<vmem>>, vector<1x128xf32>,
    %894 = arith.subf %1, %886 : vector<16x128xf32>
    %895 = arith.mulf %894, %13 : vector<16x128xf32>
    %cst_420 = arith.constant 0.000000e+00 : f32
    %896 = vector.broadcast %cst_420 : f32 to vector<16x128xf32>
    %897 = arith.select %5, %895, %896 : vector<16x128xi1>, vector<16x128xf32>
    %cst_421 = arith.constant dense<0.000000e+00> : vector<128xf32>
    %898 = vector.multi_reduction <add>, %897, %cst_421 [0] : vector<16x128xf32> to vector<128xf32>
    %899 = vector.shape_cast %898 : vector<128xf32> to vector<1x128xf32>
    %900 = vector.broadcast %899 : vector<1x128xf32> to vector<16x128xf32>
    %901 = arith.subf %895, %900 : vector<16x128xf32>
    %cst_422 = arith.constant 0.000000e+00 : f32
    %902 = vector.broadcast %cst_422 : f32 to vector<16x128xf32>
    %903 = arith.select %7, %901, %902 : vector<16x128xi1>, vector<16x128xf32>
    %c0_423 = arith.constant 0 : index
    %c0_424 = arith.constant 0 : index
    %c0_425 = arith.constant 0 : index
    %904 = vector.load %arg1[%c0_423, %c0_424, %c0_425] : memref<16x16x128xf32, #tpu.memory_space<vmem>>, vector<1x16x128xf32>
    %905 = vector.shape_cast %904 : vector<1x16x128xf32> to vector<16x128xf32>
    %906 = vector.extract_strided_slice %903 {offsets = [0, 0], sizes = [1, 128], strides = [1, 1]} : vector<16x128xf32> to vector<1x128xf32>
    %907 = vector.broadcast %906 : vector<1x128xf32> to vector<16x128xf32>
    %908 = arith.mulf %905, %907 : vector<16x128xf32>
    %c1_426 = arith.constant 1 : index
    %c0_427 = arith.constant 0 : index
    %c0_428 = arith.constant 0 : index
    %909 = vector.load %arg1[%c1_426, %c0_427, %c0_428] : memref<16x16x128xf32, #tpu.memory_space<vmem>>, vector<1x16x128xf32>
    %910 = vector.shape_cast %909 : vector<1x16x128xf32> to vector<16x128xf32>
    %911 = vector.extract_strided_slice %903 {offsets = [1, 0], sizes = [1, 128], strides = [1, 1]} : vector<16x128xf32> to vector<1x128xf32>
    %912 = vector.broadcast %911 : vector<1x128xf32> to vector<16x128xf32>
    %913 = arith.mulf %910, %912 : vector<16x128xf32>
    %914 = arith.addf %908, %913 : vector<16x128xf32>
    %c2_429 = arith.constant 2 : index
    %c0_430 = arith.constant 0 : index
    %c0_431 = arith.constant 0 : index
    %915 = vector.load %arg1[%c2_429, %c0_430, %c0_431] : memref<16x16x128xf32, #tpu.memory_space<vmem>>, vector<1x16x128xf32>
    %916 = vector.shape_cast %915 : vector<1x16x128xf32> to vector<16x128xf32>
    %917 = vector.extract_strided_slice %903 {offsets = [2, 0], sizes = [1, 128], strides = [1, 1]} : vector<16x128xf32> to vector<1x128xf32>
    %918 = vector.broadcast %917 : vector<1x128xf32> to vector<16x128xf32>
    %919 = arith.mulf %916, %918 : vector<16x128xf32>
    %920 = arith.addf %914, %919 : vector<16x128xf32>
    %c3_432 = arith.constant 3 : index
    %c0_433 = arith.constant 0 : index
    %c0_434 = arith.constant 0 : index
    %921 = vector.load %arg1[%c3_432, %c0_433, %c0_434] : memref<16x16x128xf32, #tpu.memory_space<vmem>>, vector<1x16x128xf32>
    %922 = vector.shape_cast %921 : vector<1x16x128xf32> to vector<16x128xf32>
    %923 = vector.extract_strided_slice %903 {offsets = [3, 0], sizes = [1, 128], strides = [1, 1]} : vector<16x128xf32> to vector<1x128xf32>
    %924 = vector.broadcast %923 : vector<1x128xf32> to vector<16x128xf32>
    %925 = arith.mulf %922, %924 : vector<16x128xf32>
    %926 = arith.addf %920, %925 : vector<16x128xf32>
    %c4_435 = arith.constant 4 : index
    %c0_436 = arith.constant 0 : index
    %c0_437 = arith.constant 0 : index
    %927 = vector.load %arg1[%c4_435, %c0_436, %c0_437] : memref<16x16x128xf32, #tpu.memory_space<vmem>>, vector<1x16x128xf32>
    %928 = vector.shape_cast %927 : vector<1x16x128xf32> to vector<16x128xf32>
    %929 = vector.extract_strided_slice %903 {offsets = [4, 0], sizes = [1, 128], strides = [1, 1]} : vector<16x128xf32> to vector<1x128xf32>
    %930 = vector.broadcast %929 : vector<1x128xf32> to vector<16x128xf32>
    %931 = arith.mulf %928, %930 : vector<16x128xf32>
    %932 = arith.addf %926, %931 : vector<16x128xf32>
    %c5_438 = arith.constant 5 : index
    %c0_439 = arith.constant 0 : index
    %c0_440 = arith.constant 0 : index
    %933 = vector.load %arg1[%c5_438, %c0_439, %c0_440] : memref<16x16x128xf32, #tpu.memory_space<vmem>>, vector<1x16x128xf32>
    %934 = vector.shape_cast %933 : vector<1x16x128xf32> to vector<16x128xf32>
    %935 = vector.extract_strided_slice %903 {offsets = [5, 0], sizes = [1, 128], strides = [1, 1]} : vector<16x128xf32> to vector<1x128xf32>
    %936 = vector.broadcast %935 : vector<1x128xf32> to vector<16x128xf32>
    %937 = arith.mulf %934, %936 : vector<16x128xf32>
    %938 = arith.addf %932, %937 : vector<16x128xf32>
    %c6_441 = arith.constant 6 : index
    %c0_442 = arith.constant 0 : index
    %c0_443 = arith.constant 0 : index
    %939 = vector.load %arg1[%c6_441, %c0_442, %c0_443] : memref<16x16x128xf32, #tpu.memory_space<vmem>>, vector<1x16x128xf32>
    %940 = vector.shape_cast %939 : vector<1x16x128xf32> to vector<16x128xf32>
    %941 = vector.extract_strided_slice %903 {offsets = [6, 0], sizes = [1, 128], strides = [1, 1]} : vector<16x128xf32> to vector<1x128xf32>
    %942 = vector.broadcast %941 : vector<1x128xf32> to vector<16x128xf32>
    %943 = arith.mulf %940, %942 : vector<16x128xf32>
    %944 = arith.addf %938, %943 : vector<16x128xf32>
    %c7_444 = arith.constant 7 : index
    %c0_445 = arith.constant 0 : index
    %c0_446 = arith.constant 0 : index
    %945 = vector.load %arg1[%c7_444, %c0_445, %c0_446] : memref<16x16x128xf32, #tpu.memory_space<vmem>>, vector<1x16x128xf32>
    %946 = vector.shape_cast %945 : vector<1x16x128xf32> to vector<16x128xf32>
    %947 = vector.extract_strided_slice %903 {offsets = [7, 0], sizes = [1, 128], strides = [1, 1]} : vector<16x128xf32> to vector<1x128xf32>
    %948 = vector.broadcast %947 : vector<1x128xf32> to vector<16x128xf32>
    %949 = arith.mulf %946, %948 : vector<16x128xf32>
    %950 = arith.addf %944, %949 : vector<16x128xf32>
    %c8_447 = arith.constant 8 : index
    %c0_448 = arith.constant 0 : index
    %c0_449 = arith.constant 0 : index
    %951 = vector.load %arg1[%c8_447, %c0_448, %c0_449] : memref<16x16x128xf32, #tpu.memory_space<vmem>>, vector<1x16x128xf32>
    %952 = vector.shape_cast %951 : vector<1x16x128xf32> to vector<16x128xf32>
    %953 = vector.extract_strided_slice %903 {offsets = [8, 0], sizes = [1, 128], strides = [1, 1]} : vector<16x128xf32> to vector<1x128xf32>
    %954 = vector.broadcast %953 : vector<1x128xf32> to vector<16x128xf32>
    %955 = arith.mulf %952, %954 : vector<16x128xf32>
    %956 = arith.addf %950, %955 : vector<16x128xf32>
    %c9_450 = arith.constant 9 : index
    %c0_451 = arith.constant 0 : index
    %c0_452 = arith.constant 0 : index
    %957 = vector.load %arg1[%c9_450, %c0_451, %c0_452] : memref<16x16x128xf32, #tpu.memory_space<vmem>>, vector<1x16x128xf32>
    %958 = vector.shape_cast %957 : vector<1x16x128xf32> to vector<16x128xf32>
    %959 = vector.extract_strided_slice %903 {offsets = [9, 0], sizes = [1, 128], strides = [1, 1]} : vector<16x128xf32> to vector<1x128xf32>
    %960 = vector.broadcast %959 : vector<1x128xf32> to vector<16x128xf32>
    %961 = arith.mulf %958, %960 : vector<16x128xf32>
    %962 = arith.addf %956, %961 : vector<16x128xf32>
    %c10_453 = arith.constant 10 : index
    %c0_454 = arith.constant 0 : index
    %c0_455 = arith.constant 0 : index
    %963 = vector.load %arg1[%c10_453, %c0_454, %c0_455] : memref<16x16x128xf32, #tpu.memory_space<vmem>>, vector<1x16x128xf32>
    %964 = vector.shape_cast %963 : vector<1x16x128xf32> to vector<16x128xf32>
    %965 = vector.extract_strided_slice %903 {offsets = [10, 0], sizes = [1, 128], strides = [1, 1]} : vector<16x128xf32> to vector<1x128xf32>
    %966 = vector.broadcast %965 : vector<1x128xf32> to vector<16x128xf32>
    %967 = arith.mulf %964, %966 : vector<16x128xf32>
    %968 = arith.addf %962, %967 : vector<16x128xf32>
    %c11_456 = arith.constant 11 : index
    %c0_457 = arith.constant 0 : index
    %c0_458 = arith.constant 0 : index
    %969 = vector.load %arg1[%c11_456, %c0_457, %c0_458] : memref<16x16x128xf32, #tpu.memory_space<vmem>>, vector<1x16x128xf32>
    %970 = vector.shape_cast %969 : vector<1x16x128xf32> to vector<16x128xf32>
    %971 = vector.extract_strided_slice %903 {offsets = [11, 0], sizes = [1, 128], strides = [1, 1]} : vector<16x128xf32> to vector<1x128xf32>
    %972 = vector.broadcast %971 : vector<1x128xf32> to vector<16x128xf32>
    %973 = arith.mulf %970, %972 : vector<16x128xf32>
    %974 = arith.addf %968, %973 : vector<16x128xf32>
    %c12_459 = arith.constant 12 : index
    %c0_460 = arith.constant 0 : index
    %c0_461 = arith.constant 0 : index
    %975 = vector.load %arg1[%c12_459, %c0_460, %c0_461] : memref<16x16x128xf32, #tpu.memory_space<vmem>>, vector<1x16x128xf32>
    %976 = vector.shape_cast %975 : vector<1x16x128xf32> to vector<16x128xf32>
    %977 = vector.extract_strided_slice %903 {offsets = [12, 0], sizes = [1, 128], strides = [1, 1]} : vector<16x128xf32> to vector<1x128xf32>
    %978 = vector.broadcast %977 : vector<1x128xf32> to vector<16x128xf32>
    %979 = arith.mulf %976, %978 : vector<16x128xf32>
    %980 = arith.addf %974, %979 : vector<16x128xf32>
    %c13_462 = arith.constant 13 : index
    %c0_463 = arith.constant 0 : index
    %c0_464 = arith.constant 0 : index
    %981 = vector.load %arg1[%c13_462, %c0_463, %c0_464] : memref<16x16x128xf32, #tpu.memory_space<vmem>>, vector<1x16x128xf32>
    %982 = vector.shape_cast %981 : vector<1x16x128xf32> to vector<16x128xf32>
    %983 = vector.extract_strided_slice %903 {offsets = [13, 0], sizes = [1, 128], strides = [1, 1]} : vector<16x128xf32> to vector<1x128xf32>
    %984 = vector.broadcast %983 : vector<1x128xf32> to vector<16x128xf32>
    %985 = arith.mulf %982, %984 : vector<16x128xf32>
    %986 = arith.addf %980, %985 : vector<16x128xf32>
    %c14_465 = arith.constant 14 : index
    %c0_466 = arith.constant 0 : index
    %c0_467 = arith.constant 0 : index
    %987 = vector.load %arg1[%c14_465, %c0_466, %c0_467] : memref<16x16x128xf32, #tpu.memory_space<vmem>>, vector<1x16x128xf32>
    %988 = vector.shape_cast %987 : vector<1x16x128xf32> to vector<16x128xf32>
    %989 = vector.extract_strided_slice %903 {offsets = [14, 0], sizes = [1, 128], strides = [1, 1]} : vector<16x128xf32> to vector<1x128xf32>
    %990 = vector.broadcast %989 : vector<1x128xf32> to vector<16x128xf32>
    %991 = arith.mulf %988, %990 : vector<16x128xf32>
    %992 = arith.addf %986, %991 : vector<16x128xf32>
    %c15_468 = arith.constant 15 : index
    %c0_469 = arith.constant 0 : index
    %c0_470 = arith.constant 0 : index
    %993 = vector.load %arg1[%c15_468, %c0_469, %c0_470] : memref<16x16x128xf32, #tpu.memory_space<vmem>>, vector<1x16x128xf32>
    %994 = vector.shape_cast %993 : vector<1x16x128xf32> to vector<16x128xf32>
    %995 = vector.extract_strided_slice %903 {offsets = [15, 0], sizes = [1, 128], strides = [1, 1]} : vector<16x128xf32> to vector<1x128xf32>
    %996 = vector.broadcast %995 : vector<1x128xf32> to vector<16x128xf32>
    %997 = arith.mulf %994, %996 : vector<16x128xf32>
    %998 = arith.addf %992, %997 : vector<16x128xf32>
    %999 = arith.mulf %903, %0 : vector<16x128xf32>
    %1000 = arith.addf %998, %999 : vector<16x128xf32>
    %1001 = arith.subf %1, %1000 : vector<16x128xf32>
    %1002 = math.absf %1001 : vector<16x128xf32>
    %cst_471 = arith.constant dense<0.000000e+00> : vector<128xf32>
    %1003 = vector.multi_reduction <add>, %1002, %cst_471 [0] : vector<16x128xf32> to vector<128xf32>
    %1004 = vector.shape_cast %1003 : vector<128xf32> to vector<1x128xf32>
    %c7_472 = arith.constant 7 : index
    %c0_473 = arith.constant 0 : index
    %1005 = vector.load %arg6[%c7_472, %c0_473] : memref<11x128xf32, #tpu.memory_space<vmem>>, vector<1x128xf32>
    tpu.vector_store %arg6[%c7_472, %c0_473], %1004 {strides = array<i32>} : memref<11x128xf32, #tpu.memory_space<vmem>>, vector<1x128xf32>,
    %1006 = arith.subf %1, %998 : vector<16x128xf32>
    %1007 = arith.mulf %1006, %13 : vector<16x128xf32>
    %cst_474 = arith.constant 0.000000e+00 : f32
    %1008 = vector.broadcast %cst_474 : f32 to vector<16x128xf32>
    %1009 = arith.select %5, %1007, %1008 : vector<16x128xi1>, vector<16x128xf32>
    %cst_475 = arith.constant dense<0.000000e+00> : vector<128xf32>
    %1010 = vector.multi_reduction <add>, %1009, %cst_475 [0] : vector<16x128xf32> to vector<128xf32>
    %1011 = vector.shape_cast %1010 : vector<128xf32> to vector<1x128xf32>
    %1012 = vector.broadcast %1011 : vector<1x128xf32> to vector<16x128xf32>
    %1013 = arith.subf %1007, %1012 : vector<16x128xf32>
    %cst_476 = arith.constant 0.000000e+00 : f32
    %1014 = vector.broadcast %cst_476 : f32 to vector<16x128xf32>
    %1015 = arith.select %7, %1013, %1014 : vector<16x128xi1>, vector<16x128xf32>
    %c0_477 = arith.constant 0 : index
    %c0_478 = arith.constant 0 : index
    %c0_479 = arith.constant 0 : index
    %1016 = vector.load %arg1[%c0_477, %c0_478, %c0_479] : memref<16x16x128xf32, #tpu.memory_space<vmem>>, vector<1x16x128xf32>
    %1017 = vector.shape_cast %1016 : vector<1x16x128xf32> to vector<16x128xf32>
    %1018 = vector.extract_strided_slice %1015 {offsets = [0, 0], sizes = [1, 128], strides = [1, 1]} : vector<16x128xf32> to vector<1x128xf32>
    %1019 = vector.broadcast %1018 : vector<1x128xf32> to vector<16x128xf32>
    %1020 = arith.mulf %1017, %1019 : vector<16x128xf32>
    %c1_480 = arith.constant 1 : index
    %c0_481 = arith.constant 0 : index
    %c0_482 = arith.constant 0 : index
    %1021 = vector.load %arg1[%c1_480, %c0_481, %c0_482] : memref<16x16x128xf32, #tpu.memory_space<vmem>>, vector<1x16x128xf32>
    %1022 = vector.shape_cast %1021 : vector<1x16x128xf32> to vector<16x128xf32>
    %1023 = vector.extract_strided_slice %1015 {offsets = [1, 0], sizes = [1, 128], strides = [1, 1]} : vector<16x128xf32> to vector<1x128xf32>
    %1024 = vector.broadcast %1023 : vector<1x128xf32> to vector<16x128xf32>
    %1025 = arith.mulf %1022, %1024 : vector<16x128xf32>
    %1026 = arith.addf %1020, %1025 : vector<16x128xf32>
    %c2_483 = arith.constant 2 : index
    %c0_484 = arith.constant 0 : index
    %c0_485 = arith.constant 0 : index
    %1027 = vector.load %arg1[%c2_483, %c0_484, %c0_485] : memref<16x16x128xf32, #tpu.memory_space<vmem>>, vector<1x16x128xf32>
    %1028 = vector.shape_cast %1027 : vector<1x16x128xf32> to vector<16x128xf32>
    %1029 = vector.extract_strided_slice %1015 {offsets = [2, 0], sizes = [1, 128], strides = [1, 1]} : vector<16x128xf32> to vector<1x128xf32>
    %1030 = vector.broadcast %1029 : vector<1x128xf32> to vector<16x128xf32>
    %1031 = arith.mulf %1028, %1030 : vector<16x128xf32>
    %1032 = arith.addf %1026, %1031 : vector<16x128xf32>
    %c3_486 = arith.constant 3 : index
    %c0_487 = arith.constant 0 : index
    %c0_488 = arith.constant 0 : index
    %1033 = vector.load %arg1[%c3_486, %c0_487, %c0_488] : memref<16x16x128xf32, #tpu.memory_space<vmem>>, vector<1x16x128xf32>
    %1034 = vector.shape_cast %1033 : vector<1x16x128xf32> to vector<16x128xf32>
    %1035 = vector.extract_strided_slice %1015 {offsets = [3, 0], sizes = [1, 128], strides = [1, 1]} : vector<16x128xf32> to vector<1x128xf32>
    %1036 = vector.broadcast %1035 : vector<1x128xf32> to vector<16x128xf32>
    %1037 = arith.mulf %1034, %1036 : vector<16x128xf32>
    %1038 = arith.addf %1032, %1037 : vector<16x128xf32>
    %c4_489 = arith.constant 4 : index
    %c0_490 = arith.constant 0 : index
    %c0_491 = arith.constant 0 : index
    %1039 = vector.load %arg1[%c4_489, %c0_490, %c0_491] : memref<16x16x128xf32, #tpu.memory_space<vmem>>, vector<1x16x128xf32>
    %1040 = vector.shape_cast %1039 : vector<1x16x128xf32> to vector<16x128xf32>
    %1041 = vector.extract_strided_slice %1015 {offsets = [4, 0], sizes = [1, 128], strides = [1, 1]} : vector<16x128xf32> to vector<1x128xf32>
    %1042 = vector.broadcast %1041 : vector<1x128xf32> to vector<16x128xf32>
    %1043 = arith.mulf %1040, %1042 : vector<16x128xf32>
    %1044 = arith.addf %1038, %1043 : vector<16x128xf32>
    %c5_492 = arith.constant 5 : index
    %c0_493 = arith.constant 0 : index
    %c0_494 = arith.constant 0 : index
    %1045 = vector.load %arg1[%c5_492, %c0_493, %c0_494] : memref<16x16x128xf32, #tpu.memory_space<vmem>>, vector<1x16x128xf32>
    %1046 = vector.shape_cast %1045 : vector<1x16x128xf32> to vector<16x128xf32>
    %1047 = vector.extract_strided_slice %1015 {offsets = [5, 0], sizes = [1, 128], strides = [1, 1]} : vector<16x128xf32> to vector<1x128xf32>
    %1048 = vector.broadcast %1047 : vector<1x128xf32> to vector<16x128xf32>
    %1049 = arith.mulf %1046, %1048 : vector<16x128xf32>
    %1050 = arith.addf %1044, %1049 : vector<16x128xf32>
    %c6_495 = arith.constant 6 : index
    %c0_496 = arith.constant 0 : index
    %c0_497 = arith.constant 0 : index
    %1051 = vector.load %arg1[%c6_495, %c0_496, %c0_497] : memref<16x16x128xf32, #tpu.memory_space<vmem>>, vector<1x16x128xf32>
    %1052 = vector.shape_cast %1051 : vector<1x16x128xf32> to vector<16x128xf32>
    %1053 = vector.extract_strided_slice %1015 {offsets = [6, 0], sizes = [1, 128], strides = [1, 1]} : vector<16x128xf32> to vector<1x128xf32>
    %1054 = vector.broadcast %1053 : vector<1x128xf32> to vector<16x128xf32>
    %1055 = arith.mulf %1052, %1054 : vector<16x128xf32>
    %1056 = arith.addf %1050, %1055 : vector<16x128xf32>
    %c7_498 = arith.constant 7 : index
    %c0_499 = arith.constant 0 : index
    %c0_500 = arith.constant 0 : index
    %1057 = vector.load %arg1[%c7_498, %c0_499, %c0_500] : memref<16x16x128xf32, #tpu.memory_space<vmem>>, vector<1x16x128xf32>
    %1058 = vector.shape_cast %1057 : vector<1x16x128xf32> to vector<16x128xf32>
    %1059 = vector.extract_strided_slice %1015 {offsets = [7, 0], sizes = [1, 128], strides = [1, 1]} : vector<16x128xf32> to vector<1x128xf32>
    %1060 = vector.broadcast %1059 : vector<1x128xf32> to vector<16x128xf32>
    %1061 = arith.mulf %1058, %1060 : vector<16x128xf32>
    %1062 = arith.addf %1056, %1061 : vector<16x128xf32>
    %c8_501 = arith.constant 8 : index
    %c0_502 = arith.constant 0 : index
    %c0_503 = arith.constant 0 : index
    %1063 = vector.load %arg1[%c8_501, %c0_502, %c0_503] : memref<16x16x128xf32, #tpu.memory_space<vmem>>, vector<1x16x128xf32>
    %1064 = vector.shape_cast %1063 : vector<1x16x128xf32> to vector<16x128xf32>
    %1065 = vector.extract_strided_slice %1015 {offsets = [8, 0], sizes = [1, 128], strides = [1, 1]} : vector<16x128xf32> to vector<1x128xf32>
    %1066 = vector.broadcast %1065 : vector<1x128xf32> to vector<16x128xf32>
    %1067 = arith.mulf %1064, %1066 : vector<16x128xf32>
    %1068 = arith.addf %1062, %1067 : vector<16x128xf32>
    %c9_504 = arith.constant 9 : index
    %c0_505 = arith.constant 0 : index
    %c0_506 = arith.constant 0 : index
    %1069 = vector.load %arg1[%c9_504, %c0_505, %c0_506] : memref<16x16x128xf32, #tpu.memory_space<vmem>>, vector<1x16x128xf32>
    %1070 = vector.shape_cast %1069 : vector<1x16x128xf32> to vector<16x128xf32>
    %1071 = vector.extract_strided_slice %1015 {offsets = [9, 0], sizes = [1, 128], strides = [1, 1]} : vector<16x128xf32> to vector<1x128xf32>
    %1072 = vector.broadcast %1071 : vector<1x128xf32> to vector<16x128xf32>
    %1073 = arith.mulf %1070, %1072 : vector<16x128xf32>
    %1074 = arith.addf %1068, %1073 : vector<16x128xf32>
    %c10_507 = arith.constant 10 : index
    %c0_508 = arith.constant 0 : index
    %c0_509 = arith.constant 0 : index
    %1075 = vector.load %arg1[%c10_507, %c0_508, %c0_509] : memref<16x16x128xf32, #tpu.memory_space<vmem>>, vector<1x16x128xf32>
    %1076 = vector.shape_cast %1075 : vector<1x16x128xf32> to vector<16x128xf32>
    %1077 = vector.extract_strided_slice %1015 {offsets = [10, 0], sizes = [1, 128], strides = [1, 1]} : vector<16x128xf32> to vector<1x128xf32>
    %1078 = vector.broadcast %1077 : vector<1x128xf32> to vector<16x128xf32>
    %1079 = arith.mulf %1076, %1078 : vector<16x128xf32>
    %1080 = arith.addf %1074, %1079 : vector<16x128xf32>
    %c11_510 = arith.constant 11 : index
    %c0_511 = arith.constant 0 : index
    %c0_512 = arith.constant 0 : index
    %1081 = vector.load %arg1[%c11_510, %c0_511, %c0_512] : memref<16x16x128xf32, #tpu.memory_space<vmem>>, vector<1x16x128xf32>
    %1082 = vector.shape_cast %1081 : vector<1x16x128xf32> to vector<16x128xf32>
    %1083 = vector.extract_strided_slice %1015 {offsets = [11, 0], sizes = [1, 128], strides = [1, 1]} : vector<16x128xf32> to vector<1x128xf32>
    %1084 = vector.broadcast %1083 : vector<1x128xf32> to vector<16x128xf32>
    %1085 = arith.mulf %1082, %1084 : vector<16x128xf32>
    %1086 = arith.addf %1080, %1085 : vector<16x128xf32>
    %c12_513 = arith.constant 12 : index
    %c0_514 = arith.constant 0 : index
    %c0_515 = arith.constant 0 : index
    %1087 = vector.load %arg1[%c12_513, %c0_514, %c0_515] : memref<16x16x128xf32, #tpu.memory_space<vmem>>, vector<1x16x128xf32>
    %1088 = vector.shape_cast %1087 : vector<1x16x128xf32> to vector<16x128xf32>
    %1089 = vector.extract_strided_slice %1015 {offsets = [12, 0], sizes = [1, 128], strides = [1, 1]} : vector<16x128xf32> to vector<1x128xf32>
    %1090 = vector.broadcast %1089 : vector<1x128xf32> to vector<16x128xf32>
    %1091 = arith.mulf %1088, %1090 : vector<16x128xf32>
    %1092 = arith.addf %1086, %1091 : vector<16x128xf32>
    %c13_516 = arith.constant 13 : index
    %c0_517 = arith.constant 0 : index
    %c0_518 = arith.constant 0 : index
    %1093 = vector.load %arg1[%c13_516, %c0_517, %c0_518] : memref<16x16x128xf32, #tpu.memory_space<vmem>>, vector<1x16x128xf32>
    %1094 = vector.shape_cast %1093 : vector<1x16x128xf32> to vector<16x128xf32>
    %1095 = vector.extract_strided_slice %1015 {offsets = [13, 0], sizes = [1, 128], strides = [1, 1]} : vector<16x128xf32> to vector<1x128xf32>
    %1096 = vector.broadcast %1095 : vector<1x128xf32> to vector<16x128xf32>
    %1097 = arith.mulf %1094, %1096 : vector<16x128xf32>
    %1098 = arith.addf %1092, %1097 : vector<16x128xf32>
    %c14_519 = arith.constant 14 : index
    %c0_520 = arith.constant 0 : index
    %c0_521 = arith.constant 0 : index
    %1099 = vector.load %arg1[%c14_519, %c0_520, %c0_521] : memref<16x16x128xf32, #tpu.memory_space<vmem>>, vector<1x16x128xf32>
    %1100 = vector.shape_cast %1099 : vector<1x16x128xf32> to vector<16x128xf32>
    %1101 = vector.extract_strided_slice %1015 {offsets = [14, 0], sizes = [1, 128], strides = [1, 1]} : vector<16x128xf32> to vector<1x128xf32>
    %1102 = vector.broadcast %1101 : vector<1x128xf32> to vector<16x128xf32>
    %1103 = arith.mulf %1100, %1102 : vector<16x128xf32>
    %1104 = arith.addf %1098, %1103 : vector<16x128xf32>
    %c15_522 = arith.constant 15 : index
    %c0_523 = arith.constant 0 : index
    %c0_524 = arith.constant 0 : index
    %1105 = vector.load %arg1[%c15_522, %c0_523, %c0_524] : memref<16x16x128xf32, #tpu.memory_space<vmem>>, vector<1x16x128xf32>
    %1106 = vector.shape_cast %1105 : vector<1x16x128xf32> to vector<16x128xf32>
    %1107 = vector.extract_strided_slice %1015 {offsets = [15, 0], sizes = [1, 128], strides = [1, 1]} : vector<16x128xf32> to vector<1x128xf32>
    %1108 = vector.broadcast %1107 : vector<1x128xf32> to vector<16x128xf32>
    %1109 = arith.mulf %1106, %1108 : vector<16x128xf32>
    %1110 = arith.addf %1104, %1109 : vector<16x128xf32>
    %1111 = arith.mulf %1015, %0 : vector<16x128xf32>
    %1112 = arith.addf %1110, %1111 : vector<16x128xf32>
    %1113 = arith.subf %1, %1112 : vector<16x128xf32>
    %1114 = math.absf %1113 : vector<16x128xf32>
    %cst_525 = arith.constant dense<0.000000e+00> : vector<128xf32>
    %1115 = vector.multi_reduction <add>, %1114, %cst_525 [0] : vector<16x128xf32> to vector<128xf32>
    %1116 = vector.shape_cast %1115 : vector<128xf32> to vector<1x128xf32>
    %c8_526 = arith.constant 8 : index
    %c0_527 = arith.constant 0 : index
    %1117 = vector.load %arg6[%c8_526, %c0_527] : memref<11x128xf32, #tpu.memory_space<vmem>>, vector<1x128xf32>
    tpu.vector_store %arg6[%c8_526, %c0_527], %1116 {strides = array<i32>} : memref<11x128xf32, #tpu.memory_space<vmem>>, vector<1x128xf32>,
    %1118 = arith.subf %1, %1110 : vector<16x128xf32>
    %1119 = arith.mulf %1118, %13 : vector<16x128xf32>
    %cst_528 = arith.constant 0.000000e+00 : f32
    %1120 = vector.broadcast %cst_528 : f32 to vector<16x128xf32>
    %1121 = arith.select %5, %1119, %1120 : vector<16x128xi1>, vector<16x128xf32>
    %cst_529 = arith.constant dense<0.000000e+00> : vector<128xf32>
    %1122 = vector.multi_reduction <add>, %1121, %cst_529 [0] : vector<16x128xf32> to vector<128xf32>
    %1123 = vector.shape_cast %1122 : vector<128xf32> to vector<1x128xf32>
    %1124 = vector.broadcast %1123 : vector<1x128xf32> to vector<16x128xf32>
    %1125 = arith.subf %1119, %1124 : vector<16x128xf32>
    %cst_530 = arith.constant 0.000000e+00 : f32
    %1126 = vector.broadcast %cst_530 : f32 to vector<16x128xf32>
    %1127 = arith.select %7, %1125, %1126 : vector<16x128xi1>, vector<16x128xf32>
    %c0_531 = arith.constant 0 : index
    %c0_532 = arith.constant 0 : index
    %c0_533 = arith.constant 0 : index
    %1128 = vector.load %arg1[%c0_531, %c0_532, %c0_533] : memref<16x16x128xf32, #tpu.memory_space<vmem>>, vector<1x16x128xf32>
    %1129 = vector.shape_cast %1128 : vector<1x16x128xf32> to vector<16x128xf32>
    %1130 = vector.extract_strided_slice %1127 {offsets = [0, 0], sizes = [1, 128], strides = [1, 1]} : vector<16x128xf32> to vector<1x128xf32>
    %1131 = vector.broadcast %1130 : vector<1x128xf32> to vector<16x128xf32>
    %1132 = arith.mulf %1129, %1131 : vector<16x128xf32>
    %c1_534 = arith.constant 1 : index
    %c0_535 = arith.constant 0 : index
    %c0_536 = arith.constant 0 : index
    %1133 = vector.load %arg1[%c1_534, %c0_535, %c0_536] : memref<16x16x128xf32, #tpu.memory_space<vmem>>, vector<1x16x128xf32>
    %1134 = vector.shape_cast %1133 : vector<1x16x128xf32> to vector<16x128xf32>
    %1135 = vector.extract_strided_slice %1127 {offsets = [1, 0], sizes = [1, 128], strides = [1, 1]} : vector<16x128xf32> to vector<1x128xf32>
    %1136 = vector.broadcast %1135 : vector<1x128xf32> to vector<16x128xf32>
    %1137 = arith.mulf %1134, %1136 : vector<16x128xf32>
    %1138 = arith.addf %1132, %1137 : vector<16x128xf32>
    %c2_537 = arith.constant 2 : index
    %c0_538 = arith.constant 0 : index
    %c0_539 = arith.constant 0 : index
    %1139 = vector.load %arg1[%c2_537, %c0_538, %c0_539] : memref<16x16x128xf32, #tpu.memory_space<vmem>>, vector<1x16x128xf32>
    %1140 = vector.shape_cast %1139 : vector<1x16x128xf32> to vector<16x128xf32>
    %1141 = vector.extract_strided_slice %1127 {offsets = [2, 0], sizes = [1, 128], strides = [1, 1]} : vector<16x128xf32> to vector<1x128xf32>
    %1142 = vector.broadcast %1141 : vector<1x128xf32> to vector<16x128xf32>
    %1143 = arith.mulf %1140, %1142 : vector<16x128xf32>
    %1144 = arith.addf %1138, %1143 : vector<16x128xf32>
    %c3_540 = arith.constant 3 : index
    %c0_541 = arith.constant 0 : index
    %c0_542 = arith.constant 0 : index
    %1145 = vector.load %arg1[%c3_540, %c0_541, %c0_542] : memref<16x16x128xf32, #tpu.memory_space<vmem>>, vector<1x16x128xf32>
    %1146 = vector.shape_cast %1145 : vector<1x16x128xf32> to vector<16x128xf32>
    %1147 = vector.extract_strided_slice %1127 {offsets = [3, 0], sizes = [1, 128], strides = [1, 1]} : vector<16x128xf32> to vector<1x128xf32>
    %1148 = vector.broadcast %1147 : vector<1x128xf32> to vector<16x128xf32>
    %1149 = arith.mulf %1146, %1148 : vector<16x128xf32>
    %1150 = arith.addf %1144, %1149 : vector<16x128xf32>
    %c4_543 = arith.constant 4 : index
    %c0_544 = arith.constant 0 : index
    %c0_545 = arith.constant 0 : index
    %1151 = vector.load %arg1[%c4_543, %c0_544, %c0_545] : memref<16x16x128xf32, #tpu.memory_space<vmem>>, vector<1x16x128xf32>
    %1152 = vector.shape_cast %1151 : vector<1x16x128xf32> to vector<16x128xf32>
    %1153 = vector.extract_strided_slice %1127 {offsets = [4, 0], sizes = [1, 128], strides = [1, 1]} : vector<16x128xf32> to vector<1x128xf32>
    %1154 = vector.broadcast %1153 : vector<1x128xf32> to vector<16x128xf32>
    %1155 = arith.mulf %1152, %1154 : vector<16x128xf32>
    %1156 = arith.addf %1150, %1155 : vector<16x128xf32>
    %c5_546 = arith.constant 5 : index
    %c0_547 = arith.constant 0 : index
    %c0_548 = arith.constant 0 : index
    %1157 = vector.load %arg1[%c5_546, %c0_547, %c0_548] : memref<16x16x128xf32, #tpu.memory_space<vmem>>, vector<1x16x128xf32>
    %1158 = vector.shape_cast %1157 : vector<1x16x128xf32> to vector<16x128xf32>
    %1159 = vector.extract_strided_slice %1127 {offsets = [5, 0], sizes = [1, 128], strides = [1, 1]} : vector<16x128xf32> to vector<1x128xf32>
    %1160 = vector.broadcast %1159 : vector<1x128xf32> to vector<16x128xf32>
    %1161 = arith.mulf %1158, %1160 : vector<16x128xf32>
    %1162 = arith.addf %1156, %1161 : vector<16x128xf32>
    %c6_549 = arith.constant 6 : index
    %c0_550 = arith.constant 0 : index
    %c0_551 = arith.constant 0 : index
    %1163 = vector.load %arg1[%c6_549, %c0_550, %c0_551] : memref<16x16x128xf32, #tpu.memory_space<vmem>>, vector<1x16x128xf32>
    %1164 = vector.shape_cast %1163 : vector<1x16x128xf32> to vector<16x128xf32>
    %1165 = vector.extract_strided_slice %1127 {offsets = [6, 0], sizes = [1, 128], strides = [1, 1]} : vector<16x128xf32> to vector<1x128xf32>
    %1166 = vector.broadcast %1165 : vector<1x128xf32> to vector<16x128xf32>
    %1167 = arith.mulf %1164, %1166 : vector<16x128xf32>
    %1168 = arith.addf %1162, %1167 : vector<16x128xf32>
    %c7_552 = arith.constant 7 : index
    %c0_553 = arith.constant 0 : index
    %c0_554 = arith.constant 0 : index
    %1169 = vector.load %arg1[%c7_552, %c0_553, %c0_554] : memref<16x16x128xf32, #tpu.memory_space<vmem>>, vector<1x16x128xf32>
    %1170 = vector.shape_cast %1169 : vector<1x16x128xf32> to vector<16x128xf32>
    %1171 = vector.extract_strided_slice %1127 {offsets = [7, 0], sizes = [1, 128], strides = [1, 1]} : vector<16x128xf32> to vector<1x128xf32>
    %1172 = vector.broadcast %1171 : vector<1x128xf32> to vector<16x128xf32>
    %1173 = arith.mulf %1170, %1172 : vector<16x128xf32>
    %1174 = arith.addf %1168, %1173 : vector<16x128xf32>
    %c8_555 = arith.constant 8 : index
    %c0_556 = arith.constant 0 : index
    %c0_557 = arith.constant 0 : index
    %1175 = vector.load %arg1[%c8_555, %c0_556, %c0_557] : memref<16x16x128xf32, #tpu.memory_space<vmem>>, vector<1x16x128xf32>
    %1176 = vector.shape_cast %1175 : vector<1x16x128xf32> to vector<16x128xf32>
    %1177 = vector.extract_strided_slice %1127 {offsets = [8, 0], sizes = [1, 128], strides = [1, 1]} : vector<16x128xf32> to vector<1x128xf32>
    %1178 = vector.broadcast %1177 : vector<1x128xf32> to vector<16x128xf32>
    %1179 = arith.mulf %1176, %1178 : vector<16x128xf32>
    %1180 = arith.addf %1174, %1179 : vector<16x128xf32>
    %c9_558 = arith.constant 9 : index
    %c0_559 = arith.constant 0 : index
    %c0_560 = arith.constant 0 : index
    %1181 = vector.load %arg1[%c9_558, %c0_559, %c0_560] : memref<16x16x128xf32, #tpu.memory_space<vmem>>, vector<1x16x128xf32>
    %1182 = vector.shape_cast %1181 : vector<1x16x128xf32> to vector<16x128xf32>
    %1183 = vector.extract_strided_slice %1127 {offsets = [9, 0], sizes = [1, 128], strides = [1, 1]} : vector<16x128xf32> to vector<1x128xf32>
    %1184 = vector.broadcast %1183 : vector<1x128xf32> to vector<16x128xf32>
    %1185 = arith.mulf %1182, %1184 : vector<16x128xf32>
    %1186 = arith.addf %1180, %1185 : vector<16x128xf32>
    %c10_561 = arith.constant 10 : index
    %c0_562 = arith.constant 0 : index
    %c0_563 = arith.constant 0 : index
    %1187 = vector.load %arg1[%c10_561, %c0_562, %c0_563] : memref<16x16x128xf32, #tpu.memory_space<vmem>>, vector<1x16x128xf32>
    %1188 = vector.shape_cast %1187 : vector<1x16x128xf32> to vector<16x128xf32>
    %1189 = vector.extract_strided_slice %1127 {offsets = [10, 0], sizes = [1, 128], strides = [1, 1]} : vector<16x128xf32> to vector<1x128xf32>
    %1190 = vector.broadcast %1189 : vector<1x128xf32> to vector<16x128xf32>
    %1191 = arith.mulf %1188, %1190 : vector<16x128xf32>
    %1192 = arith.addf %1186, %1191 : vector<16x128xf32>
    %c11_564 = arith.constant 11 : index
    %c0_565 = arith.constant 0 : index
    %c0_566 = arith.constant 0 : index
    %1193 = vector.load %arg1[%c11_564, %c0_565, %c0_566] : memref<16x16x128xf32, #tpu.memory_space<vmem>>, vector<1x16x128xf32>
    %1194 = vector.shape_cast %1193 : vector<1x16x128xf32> to vector<16x128xf32>
    %1195 = vector.extract_strided_slice %1127 {offsets = [11, 0], sizes = [1, 128], strides = [1, 1]} : vector<16x128xf32> to vector<1x128xf32>
    %1196 = vector.broadcast %1195 : vector<1x128xf32> to vector<16x128xf32>
    %1197 = arith.mulf %1194, %1196 : vector<16x128xf32>
    %1198 = arith.addf %1192, %1197 : vector<16x128xf32>
    %c12_567 = arith.constant 12 : index
    %c0_568 = arith.constant 0 : index
    %c0_569 = arith.constant 0 : index
    %1199 = vector.load %arg1[%c12_567, %c0_568, %c0_569] : memref<16x16x128xf32, #tpu.memory_space<vmem>>, vector<1x16x128xf32>
    %1200 = vector.shape_cast %1199 : vector<1x16x128xf32> to vector<16x128xf32>
    %1201 = vector.extract_strided_slice %1127 {offsets = [12, 0], sizes = [1, 128], strides = [1, 1]} : vector<16x128xf32> to vector<1x128xf32>
    %1202 = vector.broadcast %1201 : vector<1x128xf32> to vector<16x128xf32>
    %1203 = arith.mulf %1200, %1202 : vector<16x128xf32>
    %1204 = arith.addf %1198, %1203 : vector<16x128xf32>
    %c13_570 = arith.constant 13 : index
    %c0_571 = arith.constant 0 : index
    %c0_572 = arith.constant 0 : index
    %1205 = vector.load %arg1[%c13_570, %c0_571, %c0_572] : memref<16x16x128xf32, #tpu.memory_space<vmem>>, vector<1x16x128xf32>
    %1206 = vector.shape_cast %1205 : vector<1x16x128xf32> to vector<16x128xf32>
    %1207 = vector.extract_strided_slice %1127 {offsets = [13, 0], sizes = [1, 128], strides = [1, 1]} : vector<16x128xf32> to vector<1x128xf32>
    %1208 = vector.broadcast %1207 : vector<1x128xf32> to vector<16x128xf32>
    %1209 = arith.mulf %1206, %1208 : vector<16x128xf32>
    %1210 = arith.addf %1204, %1209 : vector<16x128xf32>
    %c14_573 = arith.constant 14 : index
    %c0_574 = arith.constant 0 : index
    %c0_575 = arith.constant 0 : index
    %1211 = vector.load %arg1[%c14_573, %c0_574, %c0_575] : memref<16x16x128xf32, #tpu.memory_space<vmem>>, vector<1x16x128xf32>
    %1212 = vector.shape_cast %1211 : vector<1x16x128xf32> to vector<16x128xf32>
    %1213 = vector.extract_strided_slice %1127 {offsets = [14, 0], sizes = [1, 128], strides = [1, 1]} : vector<16x128xf32> to vector<1x128xf32>
    %1214 = vector.broadcast %1213 : vector<1x128xf32> to vector<16x128xf32>
    %1215 = arith.mulf %1212, %1214 : vector<16x128xf32>
    %1216 = arith.addf %1210, %1215 : vector<16x128xf32>
    %c15_576 = arith.constant 15 : index
    %c0_577 = arith.constant 0 : index
    %c0_578 = arith.constant 0 : index
    %1217 = vector.load %arg1[%c15_576, %c0_577, %c0_578] : memref<16x16x128xf32, #tpu.memory_space<vmem>>, vector<1x16x128xf32>
    %1218 = vector.shape_cast %1217 : vector<1x16x128xf32> to vector<16x128xf32>
    %1219 = vector.extract_strided_slice %1127 {offsets = [15, 0], sizes = [1, 128], strides = [1, 1]} : vector<16x128xf32> to vector<1x128xf32>
    %1220 = vector.broadcast %1219 : vector<1x128xf32> to vector<16x128xf32>
    %1221 = arith.mulf %1218, %1220 : vector<16x128xf32>
    %1222 = arith.addf %1216, %1221 : vector<16x128xf32>
    %1223 = arith.mulf %1127, %0 : vector<16x128xf32>
    %1224 = arith.addf %1222, %1223 : vector<16x128xf32>
    %1225 = arith.subf %1, %1224 : vector<16x128xf32>
    %1226 = math.absf %1225 : vector<16x128xf32>
    %cst_579 = arith.constant dense<0.000000e+00> : vector<128xf32>
    %1227 = vector.multi_reduction <add>, %1226, %cst_579 [0] : vector<16x128xf32> to vector<128xf32>
    %1228 = vector.shape_cast %1227 : vector<128xf32> to vector<1x128xf32>
    %c9_580 = arith.constant 9 : index
    %c0_581 = arith.constant 0 : index
    %1229 = vector.load %arg6[%c9_580, %c0_581] : memref<11x128xf32, #tpu.memory_space<vmem>>, vector<1x128xf32>
    tpu.vector_store %arg6[%c9_580, %c0_581], %1228 {strides = array<i32>} : memref<11x128xf32, #tpu.memory_space<vmem>>, vector<1x128xf32>,
    %1230 = arith.subf %1, %1222 : vector<16x128xf32>
    %1231 = arith.mulf %1230, %13 : vector<16x128xf32>
    %cst_582 = arith.constant 0.000000e+00 : f32
    %1232 = vector.broadcast %cst_582 : f32 to vector<16x128xf32>
    %1233 = arith.select %5, %1231, %1232 : vector<16x128xi1>, vector<16x128xf32>
    %cst_583 = arith.constant dense<0.000000e+00> : vector<128xf32>
    %1234 = vector.multi_reduction <add>, %1233, %cst_583 [0] : vector<16x128xf32> to vector<128xf32>
    %1235 = vector.shape_cast %1234 : vector<128xf32> to vector<1x128xf32>
    %1236 = vector.broadcast %1235 : vector<1x128xf32> to vector<16x128xf32>
    %1237 = arith.subf %1231, %1236 : vector<16x128xf32>
    %cst_584 = arith.constant 0.000000e+00 : f32
    %1238 = vector.broadcast %cst_584 : f32 to vector<16x128xf32>
    %1239 = arith.select %7, %1237, %1238 : vector<16x128xi1>, vector<16x128xf32>
    %c0_585 = arith.constant 0 : index
    %c0_586 = arith.constant 0 : index
    %c0_587 = arith.constant 0 : index
    %1240 = vector.load %arg1[%c0_585, %c0_586, %c0_587] : memref<16x16x128xf32, #tpu.memory_space<vmem>>, vector<1x16x128xf32>
    %1241 = vector.shape_cast %1240 : vector<1x16x128xf32> to vector<16x128xf32>
    %1242 = vector.extract_strided_slice %1239 {offsets = [0, 0], sizes = [1, 128], strides = [1, 1]} : vector<16x128xf32> to vector<1x128xf32>
    %1243 = vector.broadcast %1242 : vector<1x128xf32> to vector<16x128xf32>
    %1244 = arith.mulf %1241, %1243 : vector<16x128xf32>
    %c1_588 = arith.constant 1 : index
    %c0_589 = arith.constant 0 : index
    %c0_590 = arith.constant 0 : index
    %1245 = vector.load %arg1[%c1_588, %c0_589, %c0_590] : memref<16x16x128xf32, #tpu.memory_space<vmem>>, vector<1x16x128xf32>
    %1246 = vector.shape_cast %1245 : vector<1x16x128xf32> to vector<16x128xf32>
    %1247 = vector.extract_strided_slice %1239 {offsets = [1, 0], sizes = [1, 128], strides = [1, 1]} : vector<16x128xf32> to vector<1x128xf32>
    %1248 = vector.broadcast %1247 : vector<1x128xf32> to vector<16x128xf32>
    %1249 = arith.mulf %1246, %1248 : vector<16x128xf32>
    %1250 = arith.addf %1244, %1249 : vector<16x128xf32>
    %c2_591 = arith.constant 2 : index
    %c0_592 = arith.constant 0 : index
    %c0_593 = arith.constant 0 : index
    %1251 = vector.load %arg1[%c2_591, %c0_592, %c0_593] : memref<16x16x128xf32, #tpu.memory_space<vmem>>, vector<1x16x128xf32>
    %1252 = vector.shape_cast %1251 : vector<1x16x128xf32> to vector<16x128xf32>
    %1253 = vector.extract_strided_slice %1239 {offsets = [2, 0], sizes = [1, 128], strides = [1, 1]} : vector<16x128xf32> to vector<1x128xf32>
    %1254 = vector.broadcast %1253 : vector<1x128xf32> to vector<16x128xf32>
    %1255 = arith.mulf %1252, %1254 : vector<16x128xf32>
    %1256 = arith.addf %1250, %1255 : vector<16x128xf32>
    %c3_594 = arith.constant 3 : index
    %c0_595 = arith.constant 0 : index
    %c0_596 = arith.constant 0 : index
    %1257 = vector.load %arg1[%c3_594, %c0_595, %c0_596] : memref<16x16x128xf32, #tpu.memory_space<vmem>>, vector<1x16x128xf32>
    %1258 = vector.shape_cast %1257 : vector<1x16x128xf32> to vector<16x128xf32>
    %1259 = vector.extract_strided_slice %1239 {offsets = [3, 0], sizes = [1, 128], strides = [1, 1]} : vector<16x128xf32> to vector<1x128xf32>
    %1260 = vector.broadcast %1259 : vector<1x128xf32> to vector<16x128xf32>
    %1261 = arith.mulf %1258, %1260 : vector<16x128xf32>
    %1262 = arith.addf %1256, %1261 : vector<16x128xf32>
    %c4_597 = arith.constant 4 : index
    %c0_598 = arith.constant 0 : index
    %c0_599 = arith.constant 0 : index
    %1263 = vector.load %arg1[%c4_597, %c0_598, %c0_599] : memref<16x16x128xf32, #tpu.memory_space<vmem>>, vector<1x16x128xf32>
    %1264 = vector.shape_cast %1263 : vector<1x16x128xf32> to vector<16x128xf32>
    %1265 = vector.extract_strided_slice %1239 {offsets = [4, 0], sizes = [1, 128], strides = [1, 1]} : vector<16x128xf32> to vector<1x128xf32>
    %1266 = vector.broadcast %1265 : vector<1x128xf32> to vector<16x128xf32>
    %1267 = arith.mulf %1264, %1266 : vector<16x128xf32>
    %1268 = arith.addf %1262, %1267 : vector<16x128xf32>
    %c5_600 = arith.constant 5 : index
    %c0_601 = arith.constant 0 : index
    %c0_602 = arith.constant 0 : index
    %1269 = vector.load %arg1[%c5_600, %c0_601, %c0_602] : memref<16x16x128xf32, #tpu.memory_space<vmem>>, vector<1x16x128xf32>
    %1270 = vector.shape_cast %1269 : vector<1x16x128xf32> to vector<16x128xf32>
    %1271 = vector.extract_strided_slice %1239 {offsets = [5, 0], sizes = [1, 128], strides = [1, 1]} : vector<16x128xf32> to vector<1x128xf32>
    %1272 = vector.broadcast %1271 : vector<1x128xf32> to vector<16x128xf32>
    %1273 = arith.mulf %1270, %1272 : vector<16x128xf32>
    %1274 = arith.addf %1268, %1273 : vector<16x128xf32>
    %c6_603 = arith.constant 6 : index
    %c0_604 = arith.constant 0 : index
    %c0_605 = arith.constant 0 : index
    %1275 = vector.load %arg1[%c6_603, %c0_604, %c0_605] : memref<16x16x128xf32, #tpu.memory_space<vmem>>, vector<1x16x128xf32>
    %1276 = vector.shape_cast %1275 : vector<1x16x128xf32> to vector<16x128xf32>
    %1277 = vector.extract_strided_slice %1239 {offsets = [6, 0], sizes = [1, 128], strides = [1, 1]} : vector<16x128xf32> to vector<1x128xf32>
    %1278 = vector.broadcast %1277 : vector<1x128xf32> to vector<16x128xf32>
    %1279 = arith.mulf %1276, %1278 : vector<16x128xf32>
    %1280 = arith.addf %1274, %1279 : vector<16x128xf32>
    %c7_606 = arith.constant 7 : index
    %c0_607 = arith.constant 0 : index
    %c0_608 = arith.constant 0 : index
    %1281 = vector.load %arg1[%c7_606, %c0_607, %c0_608] : memref<16x16x128xf32, #tpu.memory_space<vmem>>, vector<1x16x128xf32>
    %1282 = vector.shape_cast %1281 : vector<1x16x128xf32> to vector<16x128xf32>
    %1283 = vector.extract_strided_slice %1239 {offsets = [7, 0], sizes = [1, 128], strides = [1, 1]} : vector<16x128xf32> to vector<1x128xf32>
    %1284 = vector.broadcast %1283 : vector<1x128xf32> to vector<16x128xf32>
    %1285 = arith.mulf %1282, %1284 : vector<16x128xf32>
    %1286 = arith.addf %1280, %1285 : vector<16x128xf32>
    %c8_609 = arith.constant 8 : index
    %c0_610 = arith.constant 0 : index
    %c0_611 = arith.constant 0 : index
    %1287 = vector.load %arg1[%c8_609, %c0_610, %c0_611] : memref<16x16x128xf32, #tpu.memory_space<vmem>>, vector<1x16x128xf32>
    %1288 = vector.shape_cast %1287 : vector<1x16x128xf32> to vector<16x128xf32>
    %1289 = vector.extract_strided_slice %1239 {offsets = [8, 0], sizes = [1, 128], strides = [1, 1]} : vector<16x128xf32> to vector<1x128xf32>
    %1290 = vector.broadcast %1289 : vector<1x128xf32> to vector<16x128xf32>
    %1291 = arith.mulf %1288, %1290 : vector<16x128xf32>
    %1292 = arith.addf %1286, %1291 : vector<16x128xf32>
    %c9_612 = arith.constant 9 : index
    %c0_613 = arith.constant 0 : index
    %c0_614 = arith.constant 0 : index
    %1293 = vector.load %arg1[%c9_612, %c0_613, %c0_614] : memref<16x16x128xf32, #tpu.memory_space<vmem>>, vector<1x16x128xf32>
    %1294 = vector.shape_cast %1293 : vector<1x16x128xf32> to vector<16x128xf32>
    %1295 = vector.extract_strided_slice %1239 {offsets = [9, 0], sizes = [1, 128], strides = [1, 1]} : vector<16x128xf32> to vector<1x128xf32>
    %1296 = vector.broadcast %1295 : vector<1x128xf32> to vector<16x128xf32>
    %1297 = arith.mulf %1294, %1296 : vector<16x128xf32>
    %1298 = arith.addf %1292, %1297 : vector<16x128xf32>
    %c10_615 = arith.constant 10 : index
    %c0_616 = arith.constant 0 : index
    %c0_617 = arith.constant 0 : index
    %1299 = vector.load %arg1[%c10_615, %c0_616, %c0_617] : memref<16x16x128xf32, #tpu.memory_space<vmem>>, vector<1x16x128xf32>
    %1300 = vector.shape_cast %1299 : vector<1x16x128xf32> to vector<16x128xf32>
    %1301 = vector.extract_strided_slice %1239 {offsets = [10, 0], sizes = [1, 128], strides = [1, 1]} : vector<16x128xf32> to vector<1x128xf32>
    %1302 = vector.broadcast %1301 : vector<1x128xf32> to vector<16x128xf32>
    %1303 = arith.mulf %1300, %1302 : vector<16x128xf32>
    %1304 = arith.addf %1298, %1303 : vector<16x128xf32>
    %c11_618 = arith.constant 11 : index
    %c0_619 = arith.constant 0 : index
    %c0_620 = arith.constant 0 : index
    %1305 = vector.load %arg1[%c11_618, %c0_619, %c0_620] : memref<16x16x128xf32, #tpu.memory_space<vmem>>, vector<1x16x128xf32>
    %1306 = vector.shape_cast %1305 : vector<1x16x128xf32> to vector<16x128xf32>
    %1307 = vector.extract_strided_slice %1239 {offsets = [11, 0], sizes = [1, 128], strides = [1, 1]} : vector<16x128xf32> to vector<1x128xf32>
    %1308 = vector.broadcast %1307 : vector<1x128xf32> to vector<16x128xf32>
    %1309 = arith.mulf %1306, %1308 : vector<16x128xf32>
    %1310 = arith.addf %1304, %1309 : vector<16x128xf32>
    %c12_621 = arith.constant 12 : index
    %c0_622 = arith.constant 0 : index
    %c0_623 = arith.constant 0 : index
    %1311 = vector.load %arg1[%c12_621, %c0_622, %c0_623] : memref<16x16x128xf32, #tpu.memory_space<vmem>>, vector<1x16x128xf32>
    %1312 = vector.shape_cast %1311 : vector<1x16x128xf32> to vector<16x128xf32>
    %1313 = vector.extract_strided_slice %1239 {offsets = [12, 0], sizes = [1, 128], strides = [1, 1]} : vector<16x128xf32> to vector<1x128xf32>
    %1314 = vector.broadcast %1313 : vector<1x128xf32> to vector<16x128xf32>
    %1315 = arith.mulf %1312, %1314 : vector<16x128xf32>
    %1316 = arith.addf %1310, %1315 : vector<16x128xf32>
    %c13_624 = arith.constant 13 : index
    %c0_625 = arith.constant 0 : index
    %c0_626 = arith.constant 0 : index
    %1317 = vector.load %arg1[%c13_624, %c0_625, %c0_626] : memref<16x16x128xf32, #tpu.memory_space<vmem>>, vector<1x16x128xf32>
    %1318 = vector.shape_cast %1317 : vector<1x16x128xf32> to vector<16x128xf32>
    %1319 = vector.extract_strided_slice %1239 {offsets = [13, 0], sizes = [1, 128], strides = [1, 1]} : vector<16x128xf32> to vector<1x128xf32>
    %1320 = vector.broadcast %1319 : vector<1x128xf32> to vector<16x128xf32>
    %1321 = arith.mulf %1318, %1320 : vector<16x128xf32>
    %1322 = arith.addf %1316, %1321 : vector<16x128xf32>
    %c14_627 = arith.constant 14 : index
    %c0_628 = arith.constant 0 : index
    %c0_629 = arith.constant 0 : index
    %1323 = vector.load %arg1[%c14_627, %c0_628, %c0_629] : memref<16x16x128xf32, #tpu.memory_space<vmem>>, vector<1x16x128xf32>
    %1324 = vector.shape_cast %1323 : vector<1x16x128xf32> to vector<16x128xf32>
    %1325 = vector.extract_strided_slice %1239 {offsets = [14, 0], sizes = [1, 128], strides = [1, 1]} : vector<16x128xf32> to vector<1x128xf32>
    %1326 = vector.broadcast %1325 : vector<1x128xf32> to vector<16x128xf32>
    %1327 = arith.mulf %1324, %1326 : vector<16x128xf32>
    %1328 = arith.addf %1322, %1327 : vector<16x128xf32>
    %c15_630 = arith.constant 15 : index
    %c0_631 = arith.constant 0 : index
    %c0_632 = arith.constant 0 : index
    %1329 = vector.load %arg1[%c15_630, %c0_631, %c0_632] : memref<16x16x128xf32, #tpu.memory_space<vmem>>, vector<1x16x128xf32>
    %1330 = vector.shape_cast %1329 : vector<1x16x128xf32> to vector<16x128xf32>
    %1331 = vector.extract_strided_slice %1239 {offsets = [15, 0], sizes = [1, 128], strides = [1, 1]} : vector<16x128xf32> to vector<1x128xf32>
    %1332 = vector.broadcast %1331 : vector<1x128xf32> to vector<16x128xf32>
    %1333 = arith.mulf %1330, %1332 : vector<16x128xf32>
    %1334 = arith.addf %1328, %1333 : vector<16x128xf32>
    %1335 = arith.mulf %1239, %0 : vector<16x128xf32>
    %1336 = arith.addf %1334, %1335 : vector<16x128xf32>
    %1337 = arith.subf %1, %1336 : vector<16x128xf32>
    %1338 = math.absf %1337 : vector<16x128xf32>
    %cst_633 = arith.constant dense<0.000000e+00> : vector<128xf32>
    %1339 = vector.multi_reduction <add>, %1338, %cst_633 [0] : vector<16x128xf32> to vector<128xf32>
    %1340 = vector.shape_cast %1339 : vector<128xf32> to vector<1x128xf32>
    %c10_634 = arith.constant 10 : index
    %c0_635 = arith.constant 0 : index
    %1341 = vector.load %arg6[%c10_634, %c0_635] : memref<11x128xf32, #tpu.memory_space<vmem>>, vector<1x128xf32>
    tpu.vector_store %arg6[%c10_634, %c0_635], %1340 {strides = array<i32>} : memref<11x128xf32, #tpu.memory_space<vmem>>, vector<1x128xf32>,
    %c0_636 = arith.constant 0 : index
    %c0_637 = arith.constant 0 : index
    %1342 = vector.load %arg5[%c0_636, %c0_637] : memref<16x128xf32, #tpu.memory_space<vmem>>, vector<16x128xf32>
    tpu.vector_store %arg5[%c0_636, %c0_637], %1239 {strides = array<i32>} : memref<16x128xf32, #tpu.memory_space<vmem>>, vector<16x128xf32>,
    return
  }
  func.func @transform_0(%arg0: i32) -> (i32, i32, i32) {
    %c0_i32 = arith.constant 0 : i32
    %c0_i32_0 = arith.constant 0 : i32
    %c0_i32_1 = arith.constant 0 : i32
    return %c0_i32, %c0_i32_0, %arg0 : i32, i32, i32
  }
  func.func @transform_1(%arg0: i32) -> (i32, i32) {
    %c0_i32 = arith.constant 0 : i32
    %c0_i32_0 = arith.constant 0 : i32
    return %c0_i32, %arg0 : i32, i32
  }
  func.func @transform_2(%arg0: i32) -> (i32, i32) {
    %c0_i32 = arith.constant 0 : i32
    %c0_i32_0 = arith.constant 0 : i32
    return %c0_i32, %arg0 : i32, i32
  }
  func.func @transform_3(%arg0: i32) -> (i32, i32) {
    %c0_i32 = arith.constant 0 : i32
    %c0_i32_0 = arith.constant 0 : i32
    return %c0_i32, %arg0 : i32, i32
  }
  func.func @transform_4(%arg0: i32) -> (i32, i32) {
    %c0_i32 = arith.constant 0 : i32
    %c0_i32_0 = arith.constant 0 : i32
    return %c0_i32, %arg0 : i32, i32
  }
  func.func @transform_5(%arg0: i32) -> (i32, i32) {
    %c0_i32 = arith.constant 0 : i32
    %c0_i32_0 = arith.constant 0 : i32
    return %c0_i32, %arg0 : i32, i32
  }
}

</mosaic_0001>

<bundles_post_ra>
// kernel: _gpg_fused.1
= control target key start
LH: loop header
LB: loop body
LE: loop exit
PB: predicated region body
PF: predicated region fallthrough
CT: control target
= control target key end

     0   :  { %11 = vsyncpa [#allocation3], 0  ;;  %s3646_s0 = inlined_call_operand.hbm [shape: f32[16,16,128], index: 0, kind: input, shape index: {}]   ;;  %s3647_s1 = inlined_call_operand.hbm [shape: f32[16,128], index: 1, kind: input, shape index: {}]   ;;  %s3648_s2 = inlined_call_operand.hbm [shape: f32[16,128], index: 2, kind: input, shape index: {}]   ;;  %s3649_s3 = inlined_call_operand.vmem [shape: s32[1,128], index: 3, kind: input, shape index: {}]   ;;  %s3650_s4 = inlined_call_operand.hbm [shape: f32[16,128], index: 4, kind: output, shape index: {0}]   ;;  %s3651_s5 = inlined_call_operand.hbm [shape: f32[11,128], index: 5, kind: output, shape index: {1}]  }
   0x1   :  { %12 = vsyncpa [#allocation6], 0 }
   0x2   :  { %13 = vsyncpa [#allocation4], 0 }
   0x3   :  { %14 = vsyncpa [#allocation10], 0  ;;  %s2428_s18 = smov [#allocation5]   ;;  %s2429_s20 = smov [#allocation2]  }
   0x4   :  { %s32_s19 = sshll.u32 %s2428_s18, 4  ;;  %s20_s21 = sshll.u32 %s2429_s20, 4  ;;  %s33_s19 = int_to_ptr.vmem [resolvable:$true] %s32_s19  ;;  %s21_s21 = int_to_ptr.vmem [resolvable:$true] %s20_s21 }
   0x5   :  { %s2328_s22 = scalar_lea.vmem %s33_s19, 256  ;;  %p2333_p1 = scmp.lt.s32.totalorder %s33_s19, %s33_s19 }
   0x6   :  { %p2329_p0 = scmp.ne.s32.totalorder %s33_s19, %s2328_s22  ;;  %p2334_p2 = scmp.lt.s32.totalorder %s2328_s22, %s2328_s22 }
   0x8   :  { %p2335_p3 = por %p2334_p2, %p2333_p1 }
   0xa   :  { %p2336_p4 = pnand %p2335_p3, %p2329_p0 }
   0xc   :  { %2339 = shalt.err (!%p2336_p4)
}
   0xd   :  { %s2430_s23 = smov 128   ;;  %s2431_s24 = smov 8  }
   0xe   :  { %38 = dma.hbm_to_vmem [thread:$0]  %s3647_s1, 256, %s33_s19, [#allocation6], %s2430_s23, %s2430_s23, %s2431_s24  }
   0xf   :  { %s2348_s27 = scalar_lea.vmem %s21_s21, 4096  ;;  %p2353_p6 = scmp.lt.s32.totalorder %s21_s21, %s21_s21 }
  0x10   :  { %p2349_p5 = scmp.ne.s32.totalorder %s21_s21, %s2348_s27  ;;  %p2354_p7 = scmp.lt.s32.totalorder %s2348_s27, %s2348_s27 }
  0x12   :  { %p2355_p8 = por %p2354_p7, %p2353_p6 }
  0x14   :  { %p2356_p9 = pnand %p2355_p8, %p2349_p5 }
  0x16   :  { %2359 = shalt.err (!%p2356_p9)
}
  0x17   :  { %26 = dma.hbm_to_vmem [thread:$0]  %s3646_s0, 4096, %s21_s21, [#allocation3], %s2430_s23, %s2430_s23, %s2431_s24  }
  0x18   :  { %s2432_s30 = smov [#allocation7]  }
  0x19   :  { %s44_s6 = sshll.u32 %s2432_s30, 4  ;;  %s45_s6 = int_to_ptr.vmem [resolvable:$true] %s44_s6 }
  0x1a   :  { %s2368_s7 = scalar_lea.vmem %s45_s6, 256  ;;  %p2373_p11 = scmp.lt.s32.totalorder %s45_s6, %s45_s6 }
  0x1b   :  { %p2369_p10 = scmp.ne.s32.totalorder %s45_s6, %s2368_s7  ;;  %p2374_p12 = scmp.lt.s32.totalorder %s2368_s7, %s2368_s7 }
  0x1d   :  { %p2375_p13 = por %p2374_p12, %p2373_p11 }
  0x1f   :  { %p2376_p0 = pnand %p2375_p13, %p2369_p10 }
  0x21   :  { %2379 = shalt.err (!%p2376_p0)
}
  0x22   :  { %50 = dma.hbm_to_vmem [thread:$0]  %s3648_s2, 256, %s45_s6, [#allocation6], %s2430_s23, %s2430_s23, %s2431_s24  }
  0x23   :  { %2420 = dma.done.wait [#allocation3], 4096  }
  0x24   :  { %2421 = vsyncadd [#allocation3], 4294963200 }
  0x25   :  { %2422 = dma.done.wait [#allocation6], 512  }
  0x26   :  { %2423 = vsyncadd [#allocation6], 4294966784  ;;  %v2483_v0 = vld [vmem:[#allocation2] sm:$0xff]  ;;  %v2485_v1 = vld [vmem:[#allocation2 + $0x8] sm:$0xff] }
  0x27   :  { %3739 = vst [vmem:[#allocation15_spill] sm:$0xff] %v2483_v0  ;;  %3740 = vst [vmem:[#allocation16_spill] sm:$0xff] %v2485_v1  ;;  %v2487_v2 = vld [vmem:[#allocation2 + $0x10] sm:$0xff]  ;;  %v2489_v3 = vld [vmem:[#allocation2 + $0x18] sm:$0xff]  ;;  %v88_v4 = vmul.f32 0.0, %v2483_v0  ;;  %v89_v5 = vmul.f32 0.0, %v2485_v1 }
  0x28   :  { %3741 = vst [vmem:[#allocation17_spill] sm:$0xff] %v2487_v2  ;;  %v93_v6 = vmul.f32 0.0, %v2487_v2  ;;  %v2494_v7 = vld [vmem:[#allocation2 + $0x20] sm:$0xff]  ;;  %v2496_v8 = vld [vmem:[#allocation2 + $0x28] sm:$0xff]  ;;  %v2498_v9 = vld [vmem:[#allocation2 + $0x30] sm:$0xff]  ;;  %v94_v10 = vmul.f32 0.0, %v2489_v3 }
  0x29   :  { %3742 = vst [vmem:[#allocation18_spill] sm:$0xff] %v2494_v7  ;;  %v100_v11 = vmul.f32 0.0, %v2494_v7  ;;  %v101_v12 = vmul.f32 0.0, %v2496_v8  ;;  %v2503_v13 = vld [vmem:[#allocation2 + $0x38] sm:$0xff]  ;;  %v2505_v14 = vld [vmem:[#allocation2 + $0x40] sm:$0xff]  ;;  %v107_v16 = vmul.f32 0.0, %v2498_v9 }
  0x2a   :  { %3743 = vst [vmem:[#allocation19_spill] sm:$0xff] %v2503_v13  ;;  %3744 = vst [vmem:[#allocation20_spill] sm:$0xff] %v2505_v14  ;;  %v95_v15 = vadd.f32 %v93_v6, %v88_v4  ;;  %v2508_v17 = vld [vmem:[#allocation2 + $0x48] sm:$0xff]  ;;  %v96_v18 = vadd.f32 %v94_v10, %v89_v5  ;;  %v108_v19 = vmul.f32 0.0, %v2503_v13  ;;  %v2511_v20 = vld [vmem:[#allocation2 + $0x50] sm:$0xff]  ;;  %v114_v22 = vmul.f32 0.0, %v2505_v14 }
  0x2b   :  { %3745 = vst [vmem:[#allocation21_spill] sm:$0xff] %v2508_v17  ;;  %v2514_v23 = vld [vmem:[#allocation2 + $0x58] sm:$0xff]  ;;  %v115_v25 = vmul.f32 0.0, %v2508_v17  ;;  %v2517_v26 = vld [vmem:[#allocation2 + $0x60] sm:$0xff]  ;;  %v121_v29 = vmul.f32 0.0, %v2511_v20  ;;  %v2522_v30 = vld [vmem:[#allocation2 + $0x68] sm:$0xff] }
  0x2c   :  { %v102_v21 = vadd.f32 %v100_v11, %v95_v15  ;;  %v103_v24 = vadd.f32 %v101_v12, %v96_v18  ;;  %v2519_v27 = vld [vmem:[#allocation5] sm:$0xff]  ;;  %v2524_v31 = vld [vmem:[#allocation5 + $0x8] sm:$0xff]  ;;  %v122_v33 = vmul.f32 0.0, %v2514_v23  ;;  %v2527_v34 = vld [vmem:[#allocation2 + $0x70] sm:$0xff]  ;;  %v128_v36 = vmul.f32 0.0, %v2517_v26 }
  0x2d   :  { %3746 = vst [vmem:[#allocation22_spill] sm:$0xff] %v2524_v31  ;;  %v2530_v37 = vld [vmem:[#allocation2 + $0x78] sm:$0xff]  ;;  %vm76_vm0 = vcmp.ne.f32.partialorder %v2519_v27, 0.0  ;;  %v129_v39 = vmul.f32 0.0, %v2522_v30  ;;  %v2534_v40 = vld [vmem:[#allocation2 + $0x80] sm:$0xff]  ;;  %vm77_vm1 = vcmp.ne.f32.partialorder %v2524_v31, 0.0 }
  0x2e   :  { %v109_v28 = vadd.f32 %v107_v16, %v102_v21  ;;  %v110_v32 = vadd.f32 %v108_v19, %v103_v24  ;;  %v135_v42 = vmul.f32 0.0, %v2527_v34  ;;  %v2538_v43 = vld [vmem:[#allocation2 + $0x88] sm:$0xff]  ;;  %v136_v45 = vmul.f32 0.0, %v2530_v37  ;;  %v2541_v46 = vld [vmem:[#allocation2 + $0x90] sm:$0xff]  ;;  %v2547_v50 = vld [vmem:[#allocation2 + $0x98] sm:$0xff] }
  0x2f   :  { %v78_v47 = vsel %vm76_vm0, %v2519_v27, 1.0  ;;  %v142_v49 = vmul.f32 0.0, %v2534_v40  ;;  %v79_v51 = vsel %vm77_vm1, %v2524_v31, 1.0  ;;  %v143_v53 = vmul.f32 0.0, %v2538_v43  ;;  %v2553_v54 = vld [vmem:[#allocation2 + $0xa0] sm:$0xff]  ;;  %v2556_v57 = vld [vmem:[#allocation2 + $0xa8] sm:$0xff] }
  0x30   :  { %v116_v35 = vadd.f32 %v114_v22, %v109_v28  ;;  %v117_v38 = vadd.f32 %v115_v25, %v110_v32  ;;  %v149_v56 = vmul.f32 0.0, %v2541_v46  ;;  %3747 = vst [vmem:[#allocation23_spill] sm:$0xff] %v2556_v57  ;;  %2308 = vrcp.f32 %v78_v47  ;;  %v2559_v60 = vld [vmem:[#allocation2 + $0xb0] sm:$0xff]  ;;  %v2562_v63 = vld [vmem:[#allocation2 + $0xb8] sm:$0xff]  ;;  %v2565_v6 = vld [vmem:[#allocation2 + $0xc0] sm:$0xff] }
  0x31   :  { %v150_v59 = vmul.f32 0.0, %v2547_v50  ;;  %2310 = vrcp.f32 %v79_v51  ;;  %v156_v62 = vmul.f32 0.0, %v2553_v54  ;;  %v157_v5 = vmul.f32 0.0, %v2556_v57  ;;  %v2568_v12 = vld [vmem:[#allocation2 + $0xc8] sm:$0xff]  ;;  %v2571_v18 = vld [vmem:[#allocation2 + $0xd0] sm:$0xff]  ;;  %v2574_v22 = vld [vmem:[#allocation2 + $0xd8] sm:$0xff] }
  0x32   :  { %v123_v41 = vadd.f32 %v121_v29, %v116_v35  ;;  %v124_v44 = vadd.f32 %v122_v33, %v117_v38  ;;  %v163_v11 = vmul.f32 0.0, %v2559_v60  ;;  %v164_v16 = vmul.f32 0.0, %v2562_v63  ;;  %3748 = vst [vmem:[#allocation24_spill] sm:$0xff] %v2571_v18  ;;  %v2577_v28 = vld [vmem:[#allocation2 + $0xe0] sm:$0xff]  ;;  %v2580_v35 = vld [vmem:[#allocation2 + $0xe8] sm:$0xff] }
  0x33   :  { %v170_v21 = vmul.f32 0.0, %v2565_v6  ;;  %v171_v25 = vmul.f32 0.0, %v2568_v12  ;;  %v67_v29 = vlaneseq  ;;  %v177_v33 = vmul.f32 0.0, %v2571_v18 }
  0x34   :  { %v130_v48 = vadd.f32 %v128_v36, %v123_v41  ;;  %v131_v52 = vadd.f32 %v129_v39, %v124_v44  ;;  %v178_v38 = vmul.f32 0.0, %v2574_v22  ;;  %v2583_v39 = vld [vmem:[#allocation2 + $0xf0] sm:$0xff]  ;;  %v2586_v44 = vld [vmem:[#allocation2 + $0xf8] sm:$0xff]  ;;  %v185_v47 = vmul.f32 0.0, %v2580_v35 }
  0x35   :  { %v191_v51 = vmul.f32 0.0, %v2583_v39 }
  0x36   :  { %v137_v55 = vadd.f32 %v135_v42, %v130_v48  ;;  %v138_v58 = vadd.f32 %v136_v45, %v131_v52  ;;  %v184_v42 = vmul.f32 0.0, %v2577_v28  ;;  %v68_v48 = vshrl.u32 %v67_v29, 7 }
  0x38   :  { %v144_v61 = vadd.f32 %v142_v49, %v137_v55  ;;  %v145_v4 = vadd.f32 %v143_v53, %v138_v58  ;;  %v192_v53 = vmul.f32 0.0, %v2586_v44 }
  0x3a   :  { %v151_v10 = vadd.f32 %v149_v56, %v144_v61  ;;  %v152_v15 = vadd.f32 %v150_v59, %v145_v4  ;;  %v2591_v59 = vld [vmem:[#allocation7] sm:$0xff]  ;;  %v2300_v4 = vld [vmem:[%s3649_s3] ss:$0 sm:$0xff]  ;;  %s2433_s3 = smov [#allocation8]  }
  0x3b   :  { %vm2607_vm2 = vcmp.eq.s32.totalorder %v68_v48, %v2300_v4  ;;  %s2271_s9 = sshll.u32 %s2433_s3, 4  ;;  %s2272_s9 = int_to_ptr.vmem [resolvable:$true] %s2271_s9 }
  0x3c   :  { %v158_v19 = vadd.f32 %v156_v62, %v151_v10  ;;  %v159_v24 = vadd.f32 %v157_v5, %v152_v15  ;;  %v2593_v62 = vld [vmem:[#allocation7 + $0x8] sm:$0xff]  ;;  %v69_v5 = vadd.s32 8, %v68_v48  ;;  %s2380_s10 = scalar_lea.vmem %s2272_s9, 256  ;;  %p2385_p2 = scmp.lt.s32.totalorder %s2272_s9, %s2272_s9 }
  0x3d   :  { %v2309_v55 = vpop.eup %2308  ;;  %p2381_p1 = scmp.ne.s32.totalorder %s2272_s9, %s2380_s10  ;;  %p2386_p3 = scmp.lt.s32.totalorder %s2380_s10, %s2380_s10 }
  0x3e   :  { %v165_v32 = vadd.f32 %v163_v11, %v158_v19  ;;  %v166_v36 = vadd.f32 %v164_v16, %v159_v24  ;;  %v2311_v58 = vpop.eup %2310  ;;  %v2600_v11 = vsel %vm76_vm0, %v2309_v55, 0.0  ;;  %vm2612_vm3 = vcmp.eq.s32.totalorder %v69_v5, %v2300_v4 }
  0x3f   :  { %v2604_v16 = vsel %vm77_vm1, %v2311_v58, 0.0  ;;  %v2626_v55 = vsub.s32 2, %v68_v48  ;;  %v2636_v5 = vsub.s32 5, %v68_v48  ;;  %p2387_p4 = por %p2386_p3, %p2385_p2 }
  0x40   :  { %v172_v41 = vadd.f32 %v170_v21, %v165_v32  ;;  %v173_v45 = vadd.f32 %v171_v25, %v166_v36  ;;  %3749 = vst [vmem:[#allocation25_spill] sm:$0xff] %v2604_v16  ;;  %v3750_v21 = vmov 0  ;;  %v3753_v25 = vmov 0 }
  0x41   :  { %v3751_v21 = vsel %vm2607_vm2, 4294967295, %v3750_v21  ;;  %v3754_v25 = vsel %vm2612_vm3, 4294967295, %v3753_v25  ;;  %p2388_p5 = pnand %p2387_p4, %p2381_p1 }
  0x42   :  { %v179_v49 = vadd.f32 %v177_v33, %v172_v41  ;;  %v180_v52 = vadd.f32 %v178_v38, %v173_v45  ;;  %3752 = vst [vmem:[#allocation26_spill] sm:$0xff] %v3751_v21  ;;  %3755 = vst [vmem:[#allocation27_spill] sm:$0xff] %v3754_v25 }
  0x44   :  { %v186_v56 = vadd.f32 %v184_v42, %v179_v49  ;;  %v187_v61 = vadd.f32 %v185_v47, %v180_v52  ;;  %v2622_v52 = vsub.s32 0, %v68_v48 }
  0x46   :  { %v193_v10 = vadd.f32 %v191_v51, %v186_v56  ;;  %v194_v15 = vadd.f32 %v192_v53, %v187_v61  ;;  %v2624_v53 = vsub.s32 1, %v68_v48  ;;  %v2628_v56 = vsub.s32 3, %v68_v48 }
  0x47   :  { %v2630_v61 = vsub.s32 4, %v68_v48 }
  0x48   :  { %v195_v19 = vsub.f32 %v2591_v59, %v193_v10  ;;  %v196_v24 = vsub.f32 %v2593_v62, %v194_v15 }
  0x4a   :  { %v197_v29 = vmul.f32 %v195_v19, %v2600_v11  ;;  %v198_v32 = vmul.f32 %v196_v24, %v2604_v16 }
  0x4c   :  { %v199_v33 = vsel %vm2607_vm2, %v197_v29, 0.0  ;;  %v200_v36 = vsel %vm2612_vm3, %v198_v32, 0.0 }
  0x4d   :  { %v201_v38 = vadd.f32 %v200_v36, %v199_v33  ;;  %v2648_v33 = vsub.s32 6, %v68_v48  ;;  %v2650_v36 = vsub.s32 7, %v68_v48 }
  0x4f   :  { %v202_v41 = vrot.slane %v201_v38, 4 }
  0x51   :  { %v203_v42 = vadd.f32 %v202_v41, %v201_v38 }
  0x53   :  { %v204_v45 = vrot.slane %v203_v42, 2 }
  0x55   :  { %v205_v47 = vadd.f32 %v204_v45, %v203_v42 }
  0x57   :  { %v206_v49 = vrot.slane %v205_v47, 1 }
  0x59   :  { %v207_v51 = vadd.f32 %v206_v49, %v205_v47 }
  0x5b   :  { %v208_v58 = vsub.f32 %v197_v29, %v207_v51  ;;  %v209_v47 = vsub.f32 %v198_v32, %v207_v51 }
  0x5d   :  { %v2634_v4 = vsel %vm76_vm0, %v208_v58, 0.0 }
  0x5e   :  { %v215_v10 = vrot.slane %v2634_v4, %v2622_v52  ;;  %v221_v15 = vrot.slane %v2634_v4, %v2624_v53  ;;  %v229_v19 = vrot.slane %v2634_v4, %v2626_v55  ;;  %v237_v24 = vrot.slane %v2634_v4, %v2628_v56 }
  0x5f   :  { %v245_v29 = vrot.slane %v2634_v4, %v2630_v61  ;;  %v253_v25 = vrot.slane %v2634_v4, %v2636_v5 }
  0x60   :  { %v216_v38 = vmul.f32 %v215_v10, %v2483_v0  ;;  %v217_v41 = vmul.f32 %v215_v10, %v2485_v1  ;;  %v222_v42 = vmul.f32 %v221_v15, %v2487_v2  ;;  %v223_v45 = vmul.f32 %v221_v15, %v2489_v3 }
  0x61   :  { %v230_v49 = vmul.f32 %v229_v19, %v2494_v7  ;;  %v231_v58 = vmul.f32 %v229_v19, %v2496_v8  ;;  %v238_v48 = vmul.f32 %v237_v24, %v2498_v9  ;;  %v239_v0 = vmul.f32 %v237_v24, %v2503_v13 }
  0x62   :  { %v224_v21 = vadd.f32 %v222_v42, %v216_v38  ;;  %v225_v16 = vadd.f32 %v223_v45, %v217_v41  ;;  %v261_v10 = vrot.slane %v2634_v4, %v2648_v33  ;;  %v246_v32 = vmul.f32 %v245_v29, %v2505_v14 }
  0x63   :  { %v247_v51 = vmul.f32 %v245_v29, %v2508_v17  ;;  %v211_v15 = vsel %vm77_vm1, %v209_v47, 0.0  ;;  %v269_v19 = vrot.slane %v2634_v4, %v2650_v36  ;;  %v254_v42 = vmul.f32 %v253_v25, %v2511_v20 }
  0x64   :  { %v232_v2 = vadd.f32 %v230_v49, %v224_v21  ;;  %v233_v1 = vadd.f32 %v231_v58, %v225_v16  ;;  %v255_v24 = vmul.f32 %v253_v25, %v2514_v23  ;;  %v262_v45 = vmul.f32 %v261_v10, %v2517_v26 }
  0x65   :  { %v263_v49 = vmul.f32 %v261_v10, %v2522_v30  ;;  %v277_v29 = vrot.slane %v211_v15, %v2622_v52  ;;  %v270_v58 = vmul.f32 %v269_v19, %v2527_v34  ;;  %v271_v14 = vmul.f32 %v269_v19, %v2530_v37 }
  0x66   :  { %v240_v38 = vadd.f32 %v238_v48, %v232_v2  ;;  %v241_v41 = vadd.f32 %v239_v0, %v233_v1  ;;  %v285_v0 = vrot.slane %v211_v15, %v2624_v53  ;;  %v293_v1 = vrot.slane %v211_v15, %v2626_v55 }
  0x67   :  { %v278_v48 = vmul.f32 %v277_v29, %v2534_v40  ;;  %v301_v10 = vrot.slane %v211_v15, %v2628_v56  ;;  %v309_v19 = vrot.slane %v211_v15, %v2630_v61 }
  0x68   :  { %v248_v21 = vadd.f32 %v246_v32, %v240_v38  ;;  %v249_v16 = vadd.f32 %v247_v51, %v241_v41  ;;  %v279_v32 = vmul.f32 %v277_v29, %v2538_v43  ;;  %v286_v41 = vmul.f32 %v285_v0, %v2541_v46 }
  0x6a   :  { %v256_v47 = vadd.f32 %v254_v42, %v248_v21  ;;  %v257_v17 = vadd.f32 %v255_v24, %v249_v16  ;;  %v287_v42 = vmul.f32 %v285_v0, %v2547_v50  ;;  %v294_v16 = vmul.f32 %v293_v1, %v2553_v54 }
  0x6c   :  { %v264_v2 = vadd.f32 %v262_v45, %v256_v47  ;;  %v265_v25 = vadd.f32 %v263_v49, %v257_v17  ;;  %v295_v17 = vmul.f32 %v293_v1, %v2556_v57  ;;  %v317_v45 = vrot.slane %v211_v15, %v2636_v5 }
  0x6d   :  { %v302_v47 = vmul.f32 %v301_v10, %v2559_v60 }
  0x6e   :  { %v272_v51 = vadd.f32 %v270_v58, %v264_v2  ;;  %v273_v38 = vadd.f32 %v271_v14, %v265_v25  ;;  %v303_v14 = vmul.f32 %v301_v10, %v2562_v63  ;;  %v310_v58 = vmul.f32 %v309_v19, %v2565_v6 }
  0x6f   :  { %v311_v25 = vmul.f32 %v309_v19, %v2568_v12 }
  0x70   :  { %v280_v24 = vadd.f32 %v278_v48, %v272_v51  ;;  %v281_v21 = vadd.f32 %v279_v32, %v273_v38  ;;  %v325_v48 = vrot.slane %v211_v15, %v2648_v33  ;;  %v318_v32 = vmul.f32 %v317_v45, %v2571_v18 }
  0x71   :  { %v319_v38 = vmul.f32 %v317_v45, %v2574_v22  ;;  %v339_v45 = vmul.f32 %v211_v15, %v2524_v31 }
  0x72   :  { %v288_v49 = vadd.f32 %v286_v41, %v280_v24  ;;  %v289_v29 = vadd.f32 %v287_v42, %v281_v21  ;;  %v333_v41 = vrot.slane %v211_v15, %v2650_v36  ;;  %v326_v10 = vmul.f32 %v325_v48, %v2577_v28 }
  0x73   :  { %v327_v21 = vmul.f32 %v325_v48, %v2580_v35 }
  0x74   :  { %v296_v2 = vadd.f32 %v294_v16, %v288_v49  ;;  %v297_v0 = vadd.f32 %v295_v17, %v289_v29  ;;  %v334_v19 = vmul.f32 %v333_v41, %v2583_v39  ;;  %v335_v49 = vmul.f32 %v333_v41, %v2586_v44 }
  0x76   :  { %v304_v51 = vadd.f32 %v302_v47, %v296_v2  ;;  %v305_v1 = vadd.f32 %v303_v14, %v297_v0  ;;  %v338_v47 = vmul.f32 %v2634_v4, %v2519_v27 }
  0x78   :  { %v312_v42 = vadd.f32 %v310_v58, %v304_v51  ;;  %v313_v24 = vadd.f32 %v311_v25, %v305_v1 }
  0x7a   :  { %v320_v16 = vadd.f32 %v318_v32, %v312_v42  ;;  %v321_v17 = vadd.f32 %v319_v38, %v313_v24  ;;  %v3756_v38 = vld [vmem:[#allocation25_spill] sm:$0xff] }
  0x7c   :  { %v328_v29 = vadd.f32 %v326_v10, %v320_v16  ;;  %v329_v18 = vadd.f32 %v327_v21, %v321_v17 }
  0x7e   :  { %v336_v14 = vadd.f32 %v334_v19, %v328_v29  ;;  %v337_v58 = vadd.f32 %v335_v49, %v329_v18 }
  0x80   :  { %v340_v2 = vadd.f32 %v338_v47, %v336_v14  ;;  %v341_v0 = vadd.f32 %v339_v45, %v337_v58  ;;  %v354_v25 = vsub.f32 %v2591_v59, %v336_v14  ;;  %v355_v48 = vsub.f32 %v2593_v62, %v337_v58 }
  0x82   :  { %v342_v32 = vsub.f32 %v2591_v59, %v340_v2  ;;  %v343_v51 = vsub.f32 %v2593_v62, %v341_v0  ;;  %v356_v1 = vmul.f32 %v354_v25, %v2600_v11  ;;  %v357_v41 = vmul.f32 %v355_v48, %v3756_v38 }
  0x84   :  { %v344_v42 = vand.u32 2147483647, %v342_v32  ;;  %v345_v4 = vand.u32 2147483647, %v343_v51  ;;  %v358_v15 = vsel %vm2607_vm2, %v356_v1, 0.0  ;;  %v359_v10 = vsel %vm2612_vm3, %v357_v41, 0.0 }
  0x85   :  { %v360_v21 = vadd.f32 %v359_v10, %v358_v15 }
  0x86   :  { %v346_v16 = vadd.f32 %v345_v4, %v344_v42 }
  0x87   :  { %v361_v17 = vrot.slane %v360_v21, 4 }
  0x88   :  { %v347_v19 = vrot.slane %v346_v16, 4 }
  0x89   :  { %v362_v49 = vadd.f32 %v361_v17, %v360_v21  ;;  %v3759_v21 = vld [vmem:[#allocation15_spill] sm:$0xff]  ;;  %v3760_v17 = vld [vmem:[#allocation16_spill] sm:$0xff] }
  0x8a   :  { %v348_v29 = vadd.f32 %v347_v19, %v346_v16 }
  0x8b   :  { %v363_v47 = vrot.slane %v362_v49, 2 }
  0x8c   :  { %v349_v45 = vrot.slane %v348_v29, 2 }
  0x8d   :  { %v364_v14 = vadd.f32 %v363_v47, %v362_v49  ;;  %v3761_v49 = vld [vmem:[#allocation17_spill] sm:$0xff] }
  0x8e   :  { %v350_v58 = vadd.f32 %v349_v45, %v348_v29 }
  0x8f   :  { %v365_v2 = vrot.slane %v364_v14, 1 }
  0x90   :  { %v351_v0 = vrot.slane %v350_v58, 1 }
  0x91   :  { %v366_v25 = vadd.f32 %v365_v2, %v364_v14 }
  0x92   :  { %v352_v48 = vadd.f32 %v351_v0, %v350_v58 }
  0x93   :  { %v367_v32 = vsub.f32 %v356_v1, %v366_v25  ;;  %v368_v45 = vsub.f32 %v357_v41, %v366_v25  ;;  %v3763_v25 = vld [vmem:[#allocation21_spill] sm:$0xff] }
  0x94   :  { %353 = vst [vmem:[#allocation9] sm:$0x1] %v352_v48 }
  0x95   :  { %v2715_v51 = vsel %vm76_vm0, %v367_v32, 0.0 }
  0x96   :  { %v376_v42 = vrot.slane %v2715_v51, %v2622_v52  ;;  %v384_v4 = vrot.slane %v2715_v51, %v2624_v53  ;;  %v394_v15 = vrot.slane %v2715_v51, %v2626_v55  ;;  %v404_v10 = vrot.slane %v2715_v51, %v2628_v56 }
  0x97   :  { %v414_v1 = vrot.slane %v2715_v51, %v2630_v61  ;;  %v424_v2 = vrot.slane %v2715_v51, %v2636_v5 }
  0x98   :  { %v377_v16 = vmul.f32 %v376_v42, %v3759_v21  ;;  %v378_v19 = vmul.f32 %v376_v42, %v3760_v17  ;;  %v385_v29 = vmul.f32 %v384_v4, %v3761_v49  ;;  %v386_v47 = vmul.f32 %v384_v4, %v2489_v3  ;;  %v3762_v4 = vld [vmem:[#allocation20_spill] sm:$0xff] }
  0x99   :  { %v395_v14 = vmul.f32 %v394_v15, %v2494_v7  ;;  %v396_v58 = vmul.f32 %v394_v15, %v2496_v8  ;;  %v405_v32 = vmul.f32 %v404_v10, %v2498_v9  ;;  %v406_v21 = vmul.f32 %v404_v10, %v2503_v13 }
  0x9a   :  { %v387_v0 = vadd.f32 %v385_v29, %v377_v16  ;;  %v388_v48 = vadd.f32 %v386_v47, %v378_v19  ;;  %v434_v42 = vrot.slane %v2715_v51, %v2648_v33  ;;  %v415_v41 = vmul.f32 %v414_v1, %v3762_v4 }
  0x9b   :  { %v416_v7 = vmul.f32 %v414_v1, %v3763_v25  ;;  %v370_v15 = vsel %vm77_vm1, %v368_v45, 0.0  ;;  %v444_v16 = vrot.slane %v2715_v51, %v2650_v36  ;;  %v425_v47 = vmul.f32 %v424_v2, %v2511_v20 }
  0x9c   :  { %v397_v49 = vadd.f32 %v395_v14, %v387_v0  ;;  %v398_v17 = vadd.f32 %v396_v58, %v388_v48  ;;  %v426_v10 = vmul.f32 %v424_v2, %v2514_v23  ;;  %v435_v13 = vmul.f32 %v434_v42, %v2517_v26 }
  0x9d   :  { %v436_v0 = vmul.f32 %v434_v42, %v2522_v30  ;;  %v454_v1 = vrot.slane %v370_v15, %v2622_v52  ;;  %v445_v48 = vmul.f32 %v444_v16, %v2527_v34  ;;  %v446_v4 = vmul.f32 %v444_v16, %v2530_v37 }
  0x9e   :  { %v407_v19 = vadd.f32 %v405_v32, %v397_v49  ;;  %v408_v29 = vadd.f32 %v406_v21, %v398_v17  ;;  %v464_v21 = vrot.slane %v370_v15, %v2624_v53  ;;  %v474_v17 = vrot.slane %v370_v15, %v2626_v55 }
  0x9f   :  { %v455_v32 = vmul.f32 %v454_v1, %v2534_v40  ;;  %v484_v42 = vrot.slane %v370_v15, %v2628_v56  ;;  %v494_v16 = vrot.slane %v370_v15, %v2630_v61 }
  0xa0   :  { %v417_v14 = vadd.f32 %v415_v41, %v407_v19  ;;  %v418_v58 = vadd.f32 %v416_v7, %v408_v29  ;;  %v456_v7 = vmul.f32 %v454_v1, %v2538_v43  ;;  %v465_v29 = vmul.f32 %v464_v21, %v2541_v46 }
  0xa2   :  { %v427_v45 = vadd.f32 %v425_v47, %v417_v14  ;;  %v428_v25 = vadd.f32 %v426_v10, %v418_v58  ;;  %v466_v47 = vmul.f32 %v464_v21, %v2547_v50  ;;  %v475_v58 = vmul.f32 %v474_v17, %v2553_v54 }
  0xa4   :  { %v437_v49 = vadd.f32 %v435_v13, %v427_v45  ;;  %v438_v2 = vadd.f32 %v436_v0, %v428_v25  ;;  %v476_v13 = vmul.f32 %v474_v17, %v2556_v57  ;;  %v504_v25 = vrot.slane %v370_v15, %v2636_v5 }
  0xa5   :  { %v485_v45 = vmul.f32 %v484_v42, %v2559_v60 }
  0xa6   :  { %v447_v41 = vadd.f32 %v445_v48, %v437_v49  ;;  %v448_v19 = vadd.f32 %v446_v4, %v438_v2  ;;  %v486_v4 = vmul.f32 %v484_v42, %v2562_v63  ;;  %v495_v48 = vmul.f32 %v494_v16, %v2565_v6 }
  0xa7   :  { %v496_v2 = vmul.f32 %v494_v16, %v2568_v12  ;;  %v506_v57 = vmul.f32 %v504_v25, %v2574_v22 }
  0xa8   :  { %v457_v10 = vadd.f32 %v455_v32, %v447_v41  ;;  %v458_v14 = vadd.f32 %v456_v7, %v448_v19  ;;  %v514_v32 = vrot.slane %v370_v15, %v2648_v33  ;;  %v3764_v7 = vld [vmem:[#allocation24_spill] sm:$0xff] }
  0xa9   :  { %v505_v41 = vmul.f32 %v504_v25, %v3764_v7  ;;  %v530_v25 = vmul.f32 %v370_v15, %v2524_v31 }
  0xaa   :  { %v467_v0 = vadd.f32 %v465_v29, %v457_v10  ;;  %v468_v1 = vadd.f32 %v466_v47, %v458_v14  ;;  %v524_v29 = vrot.slane %v370_v15, %v2650_v36  ;;  %v515_v42 = vmul.f32 %v514_v32, %v2577_v28 }
  0xab   :  { %v516_v14 = vmul.f32 %v514_v32, %v2580_v35 }
  0xac   :  { %v477_v49 = vadd.f32 %v475_v58, %v467_v0  ;;  %v478_v21 = vadd.f32 %v476_v13, %v468_v1  ;;  %v525_v16 = vmul.f32 %v524_v29, %v2583_v39  ;;  %v526_v0 = vmul.f32 %v524_v29, %v2586_v44 }
  0xae   :  { %v487_v19 = vadd.f32 %v485_v45, %v477_v49  ;;  %v488_v17 = vadd.f32 %v486_v4, %v478_v21  ;;  %v529_v45 = vmul.f32 %v2715_v51, %v2519_v27 }
  0xb0   :  { %v497_v47 = vadd.f32 %v495_v48, %v487_v19  ;;  %v498_v10 = vadd.f32 %v496_v2, %v488_v17 }
  0xb2   :  { %v507_v58 = vadd.f32 %v505_v41, %v497_v47  ;;  %v508_v13 = vadd.f32 %v506_v57, %v498_v10 }
  0xb4   :  { %v517_v1 = vadd.f32 %v515_v42, %v507_v58  ;;  %v518_v7 = vadd.f32 %v516_v14, %v508_v13 }
  0xb6   :  { %v527_v4 = vadd.f32 %v525_v16, %v517_v1  ;;  %v528_v48 = vadd.f32 %v526_v0, %v518_v7 }
  0xb8   :  { %v531_v49 = vadd.f32 %v529_v45, %v527_v4  ;;  %v532_v21 = vadd.f32 %v530_v25, %v528_v48  ;;  %v545_v2 = vsub.f32 %v2591_v59, %v527_v4  ;;  %v546_v32 = vsub.f32 %v2593_v62, %v528_v48 }
  0xba   :  { %v533_v57 = vsub.f32 %v2591_v59, %v531_v49  ;;  %v534_v41 = vsub.f32 %v2593_v62, %v532_v21  ;;  %v547_v19 = vmul.f32 %v545_v2, %v2600_v11  ;;  %v548_v17 = vmul.f32 %v546_v32, %v3756_v38 }
  0xbc   :  { %v535_v29 = vand.u32 2147483647, %v533_v57  ;;  %v536_v51 = vand.u32 2147483647, %v534_v41  ;;  %v549_v15 = vsel %vm2607_vm2, %v547_v19, 0.0  ;;  %v550_v7 = vsel %vm2612_vm3, %v548_v17, 0.0 }
  0xbd   :  { %v551_v47 = vadd.f32 %v550_v7, %v549_v15  ;;  %v3766_v7 = vld [vmem:[#allocation16_spill] sm:$0xff] }
  0xbe   :  { %v537_v10 = vadd.f32 %v536_v51, %v535_v29  ;;  %v3765_v51 = vld [vmem:[#allocation15_spill] sm:$0xff] }
  0xbf   :  { %v552_v42 = vrot.slane %v551_v47, 4 }
  0xc0   :  { %v538_v14 = vrot.slane %v537_v10, 4 }
  0xc1   :  { %v553_v58 = vadd.f32 %v552_v42, %v551_v47 }
  0xc2   :  { %v539_v13 = vadd.f32 %v538_v14, %v537_v10  ;;  %v3767_v10 = vld [vmem:[#allocation17_spill] sm:$0xff] }
  0xc3   :  { %v554_v16 = vrot.slane %v553_v58, 2 }
  0xc4   :  { %v540_v0 = vrot.slane %v539_v13, 2 }
  0xc5   :  { %v555_v1 = vadd.f32 %v554_v16, %v553_v58 }
  0xc6   :  { %v541_v45 = vadd.f32 %v540_v0, %v539_v13  ;;  %v3768_v13 = vld [vmem:[#allocation18_spill] sm:$0xff] }
  0xc7   :  { %v556_v25 = vrot.slane %v555_v1, 1 }
  0xc8   :  { %v542_v4 = vrot.slane %v541_v45, 1 }
  0xc9   :  { %v557_v48 = vadd.f32 %v556_v25, %v555_v1 }
  0xca   :  { %v543_v49 = vadd.f32 %v542_v4, %v541_v45 }
  0xcb   :  { %v558_v21 = vsub.f32 %v547_v19, %v557_v48  ;;  %v559_v58 = vsub.f32 %v548_v17, %v557_v48  ;;  %v3771_v48 = vld [vmem:[#allocation21_spill] sm:$0xff] }
  0xcc   :  { %544 = vst [vmem:[#allocation9 + $0x1] sm:$0x1] %v543_v49  ;;  %v3769_v49 = vld [vmem:[#allocation19_spill] sm:$0xff] }
  0xcd   :  { %v2790_v2 = vsel %vm76_vm0, %v558_v21, 0.0 }
  0xce   :  { %v567_v32 = vrot.slane %v2790_v2, %v2622_v52  ;;  %v575_v57 = vrot.slane %v2790_v2, %v2624_v53  ;;  %v585_v41 = vrot.slane %v2790_v2, %v2626_v55  ;;  %v595_v29 = vrot.slane %v2790_v2, %v2628_v56 }
  0xcf   :  { %v605_v19 = vrot.slane %v2790_v2, %v2630_v61  ;;  %v615_v1 = vrot.slane %v2790_v2, %v2636_v5 }
  0xd0   :  { %v568_v15 = vmul.f32 %v567_v32, %v3765_v51  ;;  %v569_v47 = vmul.f32 %v567_v32, %v3766_v7  ;;  %v576_v42 = vmul.f32 %v575_v57, %v3767_v10  ;;  %v577_v14 = vmul.f32 %v575_v57, %v2489_v3  ;;  %v3770_v3 = vld [vmem:[#allocation20_spill] sm:$0xff] }
  0xd1   :  { %v586_v16 = vmul.f32 %v585_v41, %v3768_v13  ;;  %v587_v0 = vmul.f32 %v585_v41, %v2496_v8  ;;  %v596_v4 = vmul.f32 %v595_v29, %v2498_v9  ;;  %v597_v21 = vmul.f32 %v595_v29, %v3769_v49 }
  0xd2   :  { %v578_v45 = vadd.f32 %v576_v42, %v568_v15  ;;  %v579_v25 = vadd.f32 %v577_v14, %v569_v47  ;;  %v625_v32 = vrot.slane %v2790_v2, %v2648_v33  ;;  %v606_v17 = vmul.f32 %v605_v19, %v3770_v3 }
  0xd3   :  { %v607_v57 = vmul.f32 %v605_v19, %v3771_v48  ;;  %v561_v8 = vsel %vm77_vm1, %v559_v58, 0.0  ;;  %v635_v41 = vrot.slane %v2790_v2, %v2650_v36  ;;  %v616_v9 = vmul.f32 %v615_v1, %v2511_v20 }
  0xd4   :  { %v588_v51 = vadd.f32 %v586_v16, %v578_v45  ;;  %v589_v7 = vadd.f32 %v587_v0, %v579_v25  ;;  %v617_v29 = vmul.f32 %v615_v1, %v2514_v23  ;;  %v626_v10 = vmul.f32 %v625_v32, %v2517_v26 }
  0xd5   :  { %v627_v13 = vmul.f32 %v625_v32, %v2522_v30  ;;  %v645_v19 = vrot.slane %v561_v8, %v2622_v52  ;;  %v636_v16 = vmul.f32 %v635_v41, %v2527_v34  ;;  %v637_v45 = vmul.f32 %v635_v41, %v2530_v37 }
  0xd6   :  { %v598_v15 = vadd.f32 %v596_v4, %v588_v51  ;;  %v599_v47 = vadd.f32 %v597_v21, %v589_v7  ;;  %v655_v25 = vrot.slane %v561_v8, %v2624_v53  ;;  %v665_v20 = vrot.slane %v561_v8, %v2626_v55 }
  0xd7   :  { %v646_v26 = vmul.f32 %v645_v19, %v2534_v40  ;;  %v647_v1 = vmul.f32 %v645_v19, %v2538_v43  ;;  %v675_v30 = vrot.slane %v561_v8, %v2628_v56  ;;  %v685_v37 = vrot.slane %v561_v8, %v2630_v61 }
  0xd8   :  { %v608_v42 = vadd.f32 %v606_v17, %v598_v15  ;;  %v609_v14 = vadd.f32 %v607_v57, %v599_v47  ;;  %v656_v34 = vmul.f32 %v655_v25, %v2541_v46  ;;  %v657_v32 = vmul.f32 %v655_v25, %v2547_v50  ;;  %v3772_v17 = vld [vmem:[#allocation23_spill] sm:$0xff] }
  0xd9   :  { %v666_v3 = vmul.f32 %v665_v20, %v2553_v54  ;;  %v667_v48 = vmul.f32 %v665_v20, %v3772_v17  ;;  %v695_v40 = vrot.slane %v561_v8, %v2636_v5  ;;  %v676_v41 = vmul.f32 %v675_v30, %v2559_v60 }
  0xda   :  { %v618_v58 = vadd.f32 %v616_v9, %v608_v42  ;;  %v619_v0 = vadd.f32 %v617_v29, %v609_v14  ;;  %v677_v15 = vmul.f32 %v675_v30, %v2562_v63  ;;  %v686_v46 = vmul.f32 %v685_v37, %v2565_v6 }
  0xdb   :  { %v687_v9 = vmul.f32 %v685_v37, %v2568_v12  ;;  %v705_v29 = vrot.slane %v561_v8, %v2648_v33  ;;  %v715_v19 = vrot.slane %v561_v8, %v2650_v36 }
  0xdc   :  { %v628_v4 = vadd.f32 %v626_v10, %v618_v58  ;;  %v629_v23 = vadd.f32 %v627_v13, %v619_v0  ;;  %v3773_v10 = vld [vmem:[#allocation24_spill] sm:$0xff]  ;;  %v697_v13 = vmul.f32 %v695_v40, %v2574_v22  ;;  %v721_v22 = vmul.f32 %v561_v8, %v2524_v31 }
  0xdd   :  { %v696_v54 = vmul.f32 %v695_v40, %v3773_v10  ;;  %v706_v63 = vmul.f32 %v705_v29, %v2577_v28  ;;  %v707_v6 = vmul.f32 %v705_v29, %v2580_v35  ;;  %v716_v12 = vmul.f32 %v715_v19, %v2583_v39  ;;  %v2863_v29 = vld [vmem:[#allocation2] sm:$0xff] }
  0xde   :  { %v638_v49 = vadd.f32 %v636_v16, %v628_v4  ;;  %v639_v21 = vadd.f32 %v637_v45, %v629_v23  ;;  %v717_v45 = vmul.f32 %v715_v19, %v2586_v44  ;;  %v720_v4 = vmul.f32 %v2790_v2, %v2519_v27 }
  0xe0   :  { %v648_v51 = vadd.f32 %v646_v26, %v638_v49  ;;  %v649_v7 = vadd.f32 %v647_v1, %v639_v21 }
  0xe2   :  { %v658_v57 = vadd.f32 %v656_v34, %v648_v51  ;;  %v659_v43 = vadd.f32 %v657_v32, %v649_v7 }
  0xe4   :  { %v668_v47 = vadd.f32 %v666_v3, %v658_v57  ;;  %v669_v50 = vadd.f32 %v667_v48, %v659_v43 }
  0xe6   :  { %v678_v42 = vadd.f32 %v676_v41, %v668_v47  ;;  %v679_v14 = vadd.f32 %v677_v15, %v669_v50 }
  0xe8   :  { %v688_v16 = vadd.f32 %v686_v46, %v678_v42  ;;  %v689_v60 = vadd.f32 %v687_v9, %v679_v14  ;;  %v2871_v42 = vld [vmem:[#allocation2 + $0x10] sm:$0xff]  ;;  %v2873_v14 = vld [vmem:[#allocation2 + $0x18] sm:$0xff] }
  0xea   :  { %v698_v58 = vadd.f32 %v696_v54, %v688_v16  ;;  %v699_v0 = vadd.f32 %v697_v13, %v689_v60  ;;  %v2869_v54 = vld [vmem:[#allocation2 + $0x8] sm:$0xff]  ;;  %v2879_v16 = vld [vmem:[#allocation2 + $0x20] sm:$0xff] }
  0xeb   :  { %v2881_v60 = vld [vmem:[#allocation2 + $0x28] sm:$0xff] }
  0xec   :  { %v708_v25 = vadd.f32 %v706_v63, %v698_v58  ;;  %v709_v20 = vadd.f32 %v707_v6, %v699_v0  ;;  %v2887_v58 = vld [vmem:[#allocation2 + $0x30] sm:$0xff]  ;;  %v2889_v0 = vld [vmem:[#allocation2 + $0x38] sm:$0xff] }
  0xee   :  { %v718_v23 = vadd.f32 %v716_v12, %v708_v25  ;;  %v719_v26 = vadd.f32 %v717_v45, %v709_v20 }
  0xf0   :  { %v722_v1 = vadd.f32 %v720_v4, %v718_v23  ;;  %v723_v30 = vadd.f32 %v721_v22, %v719_v26  ;;  %v736_v28 = vsub.f32 %v2591_v59, %v718_v23  ;;  %v737_v35 = vsub.f32 %v2593_v62, %v719_v26 }
  0xf2   :  { %v724_v49 = vsub.f32 %v2591_v59, %v722_v1  ;;  %v725_v39 = vsub.f32 %v2593_v62, %v723_v30  ;;  %v738_v44 = vmul.f32 %v736_v28, %v2600_v11  ;;  %v739_v21 = vmul.f32 %v737_v35, %v3756_v38  ;;  %v2899_v1 = vld [vmem:[#allocation2 + $0x40] sm:$0xff]  ;;  %v2901_v30 = vld [vmem:[#allocation2 + $0x48] sm:$0xff] }
  0xf3   :  { %3774 = vst [vmem:[#allocation25_spill] sm:$0xff] %v2899_v1  ;;  %3775 = vst [vmem:[#allocation26_spill] sm:$0xff] %v2901_v30 }
  0xf4   :  { %v726_v34 = vand.u32 2147483647, %v724_v49  ;;  %v727_v2 = vand.u32 2147483647, %v725_v39  ;;  %v740_v8 = vsel %vm2607_vm2, %v738_v44, 0.0  ;;  %v741_v32 = vsel %vm2612_vm3, %v739_v21, 0.0 }
  0xf5   :  { %v742_v37 = vadd.f32 %v741_v32, %v740_v8 }
  0xf6   :  { %v728_v51 = vadd.f32 %v727_v2, %v726_v34  ;;  %v2907_v34 = vld [vmem:[#allocation2 + $0x50] sm:$0xff] }
  0xf7   :  { %v743_v7 = vrot.slane %v742_v37, 4 }
  0xf8   :  { %v729_v3 = vrot.slane %v728_v51, 4 }
  0xf9   :  { %v744_v17 = vadd.f32 %v743_v7, %v742_v37  ;;  %v2915_v7 = vld [vmem:[#allocation2 + $0x60] sm:$0xff] }
  0xfa   :  { %v730_v48 = vadd.f32 %v729_v3, %v728_v51  ;;  %3777 = vst [vmem:[#allocation15_spill] sm:$0xff] %v2915_v7 }
  0xfb   :  { %v745_v40 = vrot.slane %v744_v17, 2 }
  0xfc   :  { %v731_v57 = vrot.slane %v730_v48, 2 }
  0xfd   :  { %v746_v43 = vadd.f32 %v745_v40, %v744_v17  ;;  %v2921_v17 = vld [vmem:[#allocation2 + $0x68] sm:$0xff] }
  0xfe   :  { %v732_v41 = vadd.f32 %v731_v57, %v730_v48  ;;  %3778 = vst [vmem:[#allocation16_spill] sm:$0xff] %v2921_v17 }
  0xff   :  { %v747_v15 = vrot.slane %v746_v43, 1 }
 0x100   :  { %v733_v46 = vrot.slane %v732_v41, 1 }
 0x101   :  { %v748_v47 = vadd.f32 %v747_v15, %v746_v43  ;;  %v2927_v15 = vld [vmem:[#allocation2 + $0x70] sm:$0xff] }
 0x102   :  { %v734_v50 = vadd.f32 %v733_v46, %v732_v41  ;;  %3779 = vst [vmem:[#allocation17_spill] sm:$0xff] %v2927_v15 }
 0x103   :  { %v749_v9 = vsub.f32 %v738_v44, %v748_v47  ;;  %v750_v22 = vsub.f32 %v739_v21, %v748_v47  ;;  %v2909_v21 = vld [vmem:[#allocation2 + $0x58] sm:$0xff] }
 0x104   :  { %735 = vst [vmem:[#allocation9 + $0x2] sm:$0x1] %v734_v50  ;;  %3776 = vst [vmem:[#allocation27_spill] sm:$0xff] %v2909_v21  ;;  %v2930_v47 = vld [vmem:[#allocation2 + $0x78] sm:$0xff] }
 0x105   :  { %v2867_v10 = vsel %vm76_vm0, %v749_v9, 0.0  ;;  %v2919_v3 = vsel %vm77_vm1, %v750_v22, 0.0  ;;  %3780 = vst [vmem:[#allocation18_spill] sm:$0xff] %v2930_v47  ;;  %v2943_v22 = vld [vmem:[#allocation2 + $0x90] sm:$0xff] }
 0x106   :  { %v758_v13 = vrot.slane %v2867_v10, %v2622_v52  ;;  %v766_v19 = vrot.slane %v2867_v10, %v2624_v53  ;;  %v776_v63 = vrot.slane %v2867_v10, %v2626_v55  ;;  %v786_v6 = vrot.slane %v2867_v10, %v2628_v56  ;;  %3783 = vst [vmem:[#allocation21_spill] sm:$0xff] %v2943_v22 }
 0x107   :  { %v796_v12 = vrot.slane %v2867_v10, %v2630_v61  ;;  %v806_v28 = vrot.slane %v2867_v10, %v2636_v5  ;;  %v816_v2 = vrot.slane %v2867_v10, %v2648_v33  ;;  %v826_v48 = vrot.slane %v2867_v10, %v2650_v36 }
 0x108   :  { %v759_v45 = vmul.f32 %v758_v13, %v2863_v29  ;;  %v760_v25 = vmul.f32 %v758_v13, %v2869_v54  ;;  %v767_v20 = vmul.f32 %v766_v19, %v2871_v42  ;;  %v768_v4 = vmul.f32 %v766_v19, %v2873_v14 }
 0x109   :  { %v777_v23 = vmul.f32 %v776_v63, %v2879_v16  ;;  %v778_v26 = vmul.f32 %v776_v63, %v2881_v60  ;;  %v787_v39 = vmul.f32 %v786_v6, %v2887_v58  ;;  %v788_v44 = vmul.f32 %v786_v6, %v2889_v0  ;;  %v2936_v6 = vld [vmem:[#allocation2 + $0x80] sm:$0xff] }
 0x10a   :  { %v769_v35 = vadd.f32 %v767_v20, %v759_v45  ;;  %v770_v49 = vadd.f32 %v768_v4, %v760_v25  ;;  %v797_v37 = vmul.f32 %v796_v12, %v2899_v1  ;;  %v798_v51 = vmul.f32 %v796_v12, %v2901_v30  ;;  %3781 = vst [vmem:[#allocation19_spill] sm:$0xff] %v2936_v6  ;;  %v2938_v12 = vld [vmem:[#allocation2 + $0x88] sm:$0xff] }
 0x10b   :  { %v807_v43 = vmul.f32 %v806_v28, %v2907_v34  ;;  %v808_v41 = vmul.f32 %v806_v28, %v2909_v21  ;;  %v817_v46 = vmul.f32 %v816_v2, %v2915_v7  ;;  %v818_v13 = vmul.f32 %v816_v2, %v2921_v17  ;;  %3782 = vst [vmem:[#allocation20_spill] sm:$0xff] %v2938_v12  ;;  %v2953_v2 = vld [vmem:[#allocation2 + $0xa8] sm:$0xff] }
 0x10c   :  { %v779_v8 = vadd.f32 %v777_v23, %v769_v35  ;;  %v780_v32 = vadd.f32 %v778_v26, %v770_v49  ;;  %v836_v19 = vrot.slane %v2919_v3, %v2622_v52  ;;  %v827_v63 = vmul.f32 %v826_v48, %v2927_v15  ;;  %v2945_v23 = vld [vmem:[#allocation2 + $0x98] sm:$0xff]  ;;  %3786 = vst [vmem:[#allocation28_spill] sm:$0xff] %v2953_v2 }
 0x10d   :  { %v828_v20 = vmul.f32 %v826_v48, %v2930_v47  ;;  %v846_v4 = vrot.slane %v2919_v3, %v2624_v53  ;;  %3784 = vst [vmem:[#allocation23_spill] sm:$0xff] %v2945_v23  ;;  %v856_v26 = vrot.slane %v2919_v3, %v2626_v55 }
 0x10e   :  { %v789_v40 = vadd.f32 %v787_v39, %v779_v8  ;;  %v790_v57 = vadd.f32 %v788_v44, %v780_v32  ;;  %v837_v49 = vmul.f32 %v836_v19, %v2936_v6  ;;  %v838_v39 = vmul.f32 %v836_v19, %v2938_v12  ;;  %v2951_v44 = vld [vmem:[#allocation2 + $0xa0] sm:$0xff]  ;;  %v2969_v19 = vld [vmem:[#allocation2 + $0xc8] sm:$0xff] }
 0x10f   :  { %3785 = vst [vmem:[#allocation24_spill] sm:$0xff] %v2951_v44  ;;  %v866_v8 = vrot.slane %v2919_v3, %v2628_v56  ;;  %v848_v48 = vmul.f32 %v846_v4, %v2945_v23  ;;  %3790 = vst [vmem:[#allocation32_spill] sm:$0xff] %v2969_v19 }
 0x110   :  { %v799_v50 = vadd.f32 %v797_v37, %v789_v40  ;;  %v800_v9 = vadd.f32 %v798_v51, %v790_v57  ;;  %v847_v51 = vmul.f32 %v846_v4, %v2943_v22  ;;  %v2959_v40 = vld [vmem:[#allocation2 + $0xb0] sm:$0xff]  ;;  %v2961_v57 = vld [vmem:[#allocation2 + $0xb8] sm:$0xff] }
 0x111   :  { %3787 = vst [vmem:[#allocation29_spill] sm:$0xff] %v2959_v40  ;;  %3788 = vst [vmem:[#allocation30_spill] sm:$0xff] %v2961_v57  ;;  %v868_v4 = vmul.f32 %v866_v8, %v2961_v57 }
 0x112   :  { %v809_v45 = vadd.f32 %v807_v43, %v799_v50  ;;  %v810_v25 = vadd.f32 %v808_v41, %v800_v9  ;;  %v876_v43 = vrot.slane %v2919_v3, %v2630_v61  ;;  %v857_v50 = vmul.f32 %v856_v26, %v2951_v44 }
 0x113   :  { %v858_v9 = vmul.f32 %v856_v26, %v2953_v2  ;;  %v3003_v2 = vld [vmem:[#allocation5 + $0x8] sm:$0xff] }
 0x114   :  { %v819_v28 = vadd.f32 %v817_v46, %v809_v45  ;;  %v820_v35 = vadd.f32 %v818_v13, %v810_v25  ;;  %v2967_v13 = vld [vmem:[#allocation2 + $0xc0] sm:$0xff] }
 0x115   :  { %3789 = vst [vmem:[#allocation31_spill] sm:$0xff] %v2967_v13 }
 0x116   :  { %v829_v32 = vadd.f32 %v827_v63, %v819_v28  ;;  %v830_v37 = vadd.f32 %v828_v20, %v820_v35  ;;  %v886_v63 = vrot.slane %v2919_v3, %v2636_v5  ;;  %v867_v20 = vmul.f32 %v866_v8, %v2959_v40  ;;  %v2975_v28 = vld [vmem:[#allocation2 + $0xd0] sm:$0xff] }
 0x117   :  { %3791 = vst [vmem:[#allocation33_spill] sm:$0xff] %v2975_v28  ;;  %v877_v35 = vmul.f32 %v876_v43, %v2967_v13  ;;  %v906_v13 = vrot.slane %v2919_v3, %v2650_v36 }
 0x118   :  { %v839_v41 = vadd.f32 %v837_v49, %v829_v32  ;;  %v840_v46 = vadd.f32 %v838_v39, %v830_v37  ;;  %v2978_v49 = vld [vmem:[#allocation2 + $0xd8] sm:$0xff]  ;;  %v878_v32 = vmul.f32 %v876_v43, %v2969_v19  ;;  %v896_v37 = vrot.slane %v2919_v3, %v2648_v33 }
 0x119   :  { %3792 = vst [vmem:[#allocation34_spill] sm:$0xff] %v2978_v49  ;;  %v888_v57 = vmul.f32 %v886_v63, %v2978_v49 }
 0x11a   :  { %v849_v45 = vadd.f32 %v847_v51, %v839_v41  ;;  %v850_v25 = vadd.f32 %v848_v48, %v840_v46  ;;  %v887_v51 = vmul.f32 %v886_v63, %v2975_v28  ;;  %v2984_v48 = vld [vmem:[#allocation2 + $0xe0] sm:$0xff]  ;;  %v2986_v41 = vld [vmem:[#allocation2 + $0xe8] sm:$0xff] }
 0x11b   :  { %v898_v28 = vmul.f32 %v896_v37, %v2986_v41 }
 0x11c   :  { %v859_v26 = vadd.f32 %v857_v50, %v849_v45  ;;  %v860_v39 = vadd.f32 %v858_v9, %v850_v25  ;;  %v2991_v50 = vld [vmem:[#allocation2 + $0xf0] sm:$0xff]  ;;  %v2993_v9 = vld [vmem:[#allocation2 + $0xf8] sm:$0xff]  ;;  %v897_v25 = vmul.f32 %v896_v37, %v2984_v48 }
 0x11e   :  { %v869_v8 = vadd.f32 %v867_v20, %v859_v26  ;;  %v870_v46 = vadd.f32 %v868_v4, %v860_v39  ;;  %v907_v20 = vmul.f32 %v906_v13, %v2991_v50  ;;  %v908_v4 = vmul.f32 %v906_v13, %v2993_v9  ;;  %v2999_v39 = vld [vmem:[#allocation5] sm:$0xff] }
 0x11f   :  { %v911_v49 = vmul.f32 %v2999_v39, %v2867_v10 }
 0x120   :  { %v879_v43 = vadd.f32 %v877_v35, %v869_v8  ;;  %v880_v45 = vadd.f32 %v878_v32, %v870_v46  ;;  %v912_v35 = vmul.f32 %v3003_v2, %v2919_v3 }
 0x122   :  { %v889_v19 = vadd.f32 %v887_v51, %v879_v43  ;;  %v890_v40 = vadd.f32 %v888_v57, %v880_v45 }
 0x124   :  { %v899_v63 = vadd.f32 %v897_v25, %v889_v19  ;;  %v900_v26 = vadd.f32 %v898_v28, %v890_v40 }
 0x126   :  { %v909_v32 = vadd.f32 %v907_v20, %v899_v63  ;;  %v910_v37 = vadd.f32 %v908_v4, %v900_v26 }
 0x128   :  { %v913_v51 = vadd.f32 %v911_v49, %v909_v32  ;;  %v914_v57 = vadd.f32 %v912_v35, %v910_v37  ;;  %v927_v8 = vsub.f32 %v2591_v59, %v909_v32  ;;  %v928_v13 = vsub.f32 %v2593_v62, %v910_v37 }
 0x12a   :  { %v915_v40 = vsub.f32 %v2591_v59, %v913_v51  ;;  %v916_v19 = vsub.f32 %v2593_v62, %v914_v57  ;;  %v929_v28 = vmul.f32 %v927_v8, %v2600_v11  ;;  %v930_v10 = vmul.f32 %v928_v13, %v3756_v38 }
 0x12c   :  { %v917_v46 = vand.u32 2147483647, %v915_v40  ;;  %v918_v43 = vand.u32 2147483647, %v916_v19  ;;  %v931_v3 = vsel %vm2607_vm2, %v929_v28, 0.0  ;;  %v932_v49 = vsel %vm2612_vm3, %v930_v10, 0.0 }
 0x12d   :  { %v933_v45 = vadd.f32 %v932_v49, %v931_v3 }
 0x12e   :  { %v919_v25 = vadd.f32 %v918_v43, %v917_v46 }
 0x12f   :  { %v934_v20 = vrot.slane %v933_v45, 4 }
 0x130   :  { %v920_v4 = vrot.slane %v919_v25, 4 }
 0x131   :  { %v935_v63 = vadd.f32 %v934_v20, %v933_v45 }
 0x132   :  { %v921_v59 = vadd.f32 %v920_v4, %v919_v25 }
 0x133   :  { %v936_v26 = vrot.slane %v935_v63, 2 }
 0x134   :  { %v922_v62 = vrot.slane %v921_v59, 2 }
 0x135   :  { %v937_v35 = vadd.f32 %v936_v26, %v935_v63 }
 0x136   :  { %v923_v32 = vadd.f32 %v922_v62, %v921_v59 }
 0x137   :  { %v938_v37 = vrot.slane %v937_v35, 1 }
 0x138   :  { %v924_v51 = vrot.slane %v923_v32, 1 }
 0x139   :  { %v939_v57 = vadd.f32 %v938_v37, %v937_v35 }
 0x13a   :  { %v925_v8 = vadd.f32 %v924_v51, %v923_v32 }
 0x13b   :  { %v940_v13 = vsub.f32 %v929_v28, %v939_v57  ;;  %v941_v4 = vsub.f32 %v930_v10, %v939_v57 }
 0x13c   :  { %926 = vst [vmem:[#allocation9 + $0x3] sm:$0x1] %v925_v8 }
 0x13d   :  { %v3019_v40 = vsel %vm76_vm0, %v940_v13, 0.0 }
 0x13e   :  { %v949_v19 = vrot.slane %v3019_v40, %v2622_v52  ;;  %v957_v46 = vrot.slane %v3019_v40, %v2624_v53  ;;  %v967_v43 = vrot.slane %v3019_v40, %v2626_v55  ;;  %v977_v3 = vrot.slane %v3019_v40, %v2628_v56 }
 0x13f   :  { %v987_v28 = vrot.slane %v3019_v40, %v2630_v61  ;;  %v997_v26 = vrot.slane %v3019_v40, %v2636_v5  ;;  %v1007_v51 = vrot.slane %v3019_v40, %v2648_v33 }
 0x140   :  { %v950_v49 = vmul.f32 %v949_v19, %v2863_v29  ;;  %v951_v45 = vmul.f32 %v949_v19, %v2869_v54  ;;  %v958_v25 = vmul.f32 %v957_v46, %v2871_v42  ;;  %v959_v20 = vmul.f32 %v957_v46, %v2873_v14 }
 0x141   :  { %v968_v63 = vmul.f32 %v967_v43, %v2879_v16  ;;  %v969_v59 = vmul.f32 %v967_v43, %v2881_v60  ;;  %v978_v32 = vmul.f32 %v977_v3, %v2887_v58  ;;  %v979_v37 = vmul.f32 %v977_v3, %v2889_v0 }
 0x142   :  { %v960_v62 = vadd.f32 %v958_v25, %v950_v49  ;;  %v961_v35 = vadd.f32 %v959_v20, %v951_v45  ;;  %v988_v10 = vmul.f32 %v987_v28, %v2899_v1  ;;  %v989_v57 = vmul.f32 %v987_v28, %v2901_v30 }
 0x143   :  { %v943_v19 = vsel %vm77_vm1, %v941_v4, 0.0  ;;  %v1017_v46 = vrot.slane %v3019_v40, %v2650_v36  ;;  %v998_v45 = vmul.f32 %v997_v26, %v2907_v34  ;;  %v999_v3 = vmul.f32 %v997_v26, %v2909_v21 }
 0x144   :  { %v970_v8 = vadd.f32 %v968_v63, %v960_v62  ;;  %v971_v13 = vadd.f32 %v969_v59, %v961_v35  ;;  %v1008_v25 = vmul.f32 %v1007_v51, %v2915_v7  ;;  %v1009_v59 = vmul.f32 %v1007_v51, %v2921_v17 }
 0x145   :  { %v1027_v28 = vrot.slane %v943_v19, %v2622_v52  ;;  %v1018_v62 = vmul.f32 %v1017_v46, %v2927_v15  ;;  %v1019_v31 = vmul.f32 %v1017_v46, %v2930_v47  ;;  %v1057_v51 = vrot.slane %v943_v19, %v2628_v56 }
 0x146   :  { %v980_v43 = vadd.f32 %v978_v32, %v970_v8  ;;  %v981_v49 = vadd.f32 %v979_v37, %v971_v13  ;;  %v1037_v32 = vrot.slane %v943_v19, %v2624_v53  ;;  %v1047_v37 = vrot.slane %v943_v19, %v2626_v55 }
 0x147   :  { %v1028_v13 = vmul.f32 %v1027_v28, %v2936_v6  ;;  %v1067_v46 = vrot.slane %v943_v19, %v2630_v61 }
 0x148   :  { %v990_v20 = vadd.f32 %v988_v10, %v980_v43  ;;  %v991_v63 = vadd.f32 %v989_v57, %v981_v49  ;;  %v1029_v10 = vmul.f32 %v1027_v28, %v2938_v12  ;;  %v1038_v49 = vmul.f32 %v1037_v32, %v2943_v22  ;;  %v3794_v12 = vld [vmem:[#allocation29_spill] sm:$0xff] }
 0x149   :  { %v1058_v6 = vmul.f32 %v1057_v51, %v3794_v12 }
 0x14a   :  { %v1000_v4 = vadd.f32 %v998_v45, %v990_v20  ;;  %v1001_v35 = vadd.f32 %v999_v3, %v991_v63  ;;  %v1039_v45 = vmul.f32 %v1037_v32, %v2945_v23  ;;  %v1048_v63 = vmul.f32 %v1047_v37, %v2951_v44  ;;  %v3797_v23 = vld [vmem:[#allocation32_spill] sm:$0xff] }
 0x14b   :  { %v1069_v47 = vmul.f32 %v1067_v46, %v3797_v23 }
 0x14c   :  { %v1010_v8 = vadd.f32 %v1008_v25, %v1000_v4  ;;  %v1011_v26 = vadd.f32 %v1009_v59, %v1001_v35  ;;  %v3793_v25 = vld [vmem:[#allocation28_spill] sm:$0xff]  ;;  %v1077_v4 = vrot.slane %v943_v19, %v2636_v5 }
 0x14d   :  { %v1049_v59 = vmul.f32 %v1047_v37, %v3793_v25  ;;  %v3799_v25 = vld [vmem:[#allocation34_spill] sm:$0xff] }
 0x14e   :  { %v1020_v57 = vadd.f32 %v1018_v62, %v1010_v8  ;;  %v1021_v43 = vadd.f32 %v1019_v31, %v1011_v26  ;;  %v3795_v62 = vld [vmem:[#allocation30_spill] sm:$0xff]  ;;  %v3796_v8 = vld [vmem:[#allocation31_spill] sm:$0xff]  ;;  %v1079_v44 = vmul.f32 %v1077_v4, %v3799_v25 }
 0x14f   :  { %v1059_v31 = vmul.f32 %v1057_v51, %v3795_v62  ;;  %v1068_v26 = vmul.f32 %v1067_v46, %v3796_v8 }
 0x150   :  { %v1030_v3 = vadd.f32 %v1028_v13, %v1020_v57  ;;  %v1031_v20 = vadd.f32 %v1029_v10, %v1021_v43  ;;  %v1087_v13 = vrot.slane %v943_v19, %v2648_v33  ;;  %v3798_v10 = vld [vmem:[#allocation33_spill] sm:$0xff] }
 0x151   :  { %v1078_v57 = vmul.f32 %v1077_v4, %v3798_v10 }
 0x152   :  { %v1040_v35 = vadd.f32 %v1038_v49, %v1030_v3  ;;  %v1041_v28 = vadd.f32 %v1039_v45, %v1031_v20  ;;  %v1097_v49 = vrot.slane %v943_v19, %v2650_v36  ;;  %v1088_v51 = vmul.f32 %v1087_v13, %v2984_v48 }
 0x153   :  { %v1089_v20 = vmul.f32 %v1087_v13, %v2986_v41 }
 0x154   :  { %v1050_v22 = vadd.f32 %v1048_v63, %v1040_v35  ;;  %v1051_v32 = vadd.f32 %v1049_v59, %v1041_v28  ;;  %v1098_v46 = vmul.f32 %v1097_v49, %v2991_v50  ;;  %v1099_v35 = vmul.f32 %v1097_v49, %v2993_v9 }
 0x156   :  { %v1060_v43 = vadd.f32 %v1058_v6, %v1050_v22  ;;  %v1061_v37 = vadd.f32 %v1059_v31, %v1051_v32  ;;  %v1102_v6 = vmul.f32 %v2999_v39, %v3019_v40  ;;  %v1103_v22 = vmul.f32 %v3003_v2, %v943_v19  ;;  %v3082_v32 = vld [vmem:[#allocation7] sm:$0xff] }
 0x158   :  { %v1070_v45 = vadd.f32 %v1068_v26, %v1060_v43  ;;  %v1071_v3 = vadd.f32 %v1069_v47, %v1061_v37 }
 0x15a   :  { %v1080_v63 = vadd.f32 %v1078_v57, %v1070_v45  ;;  %v1081_v59 = vadd.f32 %v1079_v44, %v1071_v3  ;;  %v3085_v44 = vld [vmem:[#allocation7 + $0x8] sm:$0xff] }
 0x15c   :  { %v1090_v28 = vadd.f32 %v1088_v51, %v1080_v63  ;;  %v1091_v10 = vadd.f32 %v1089_v20, %v1081_v59 }
 0x15e   :  { %v1100_v4 = vadd.f32 %v1098_v46, %v1090_v28  ;;  %v1101_v31 = vadd.f32 %v1099_v35, %v1091_v10 }
 0x160   :  { %v1104_v47 = vadd.f32 %v1102_v6, %v1100_v4  ;;  %v1105_v26 = vadd.f32 %v1103_v22, %v1101_v31  ;;  %v1118_v13 = vsub.f32 %v3082_v32, %v1100_v4  ;;  %v1119_v57 = vsub.f32 %v3085_v44, %v1101_v31 }
 0x162   :  { %v1106_v43 = vsub.f32 %v3082_v32, %v1104_v47  ;;  %v1107_v37 = vsub.f32 %v3085_v44, %v1105_v26  ;;  %v1120_v40 = vmul.f32 %v1118_v13, %v2600_v11  ;;  %v1121_v19 = vmul.f32 %v1119_v57, %v3756_v38 }
 0x164   :  { %v1108_v49 = vand.u32 2147483647, %v1106_v43  ;;  %v1109_v10 = vand.u32 2147483647, %v1107_v37  ;;  %v1122_v45 = vsel %vm2607_vm2, %v1120_v40, 0.0  ;;  %v1123_v3 = vsel %vm2612_vm3, %v1121_v19, 0.0 }
 0x165   :  { %v1124_v51 = vadd.f32 %v1123_v3, %v1122_v45 }
 0x166   :  { %v1110_v20 = vadd.f32 %v1109_v10, %v1108_v49 }
 0x167   :  { %v1125_v63 = vrot.slane %v1124_v51, 4 }
 0x168   :  { %v1111_v59 = vrot.slane %v1110_v20, 4 }
 0x169   :  { %v1126_v46 = vadd.f32 %v1125_v63, %v1124_v51 }
 0x16a   :  { %v1112_v35 = vadd.f32 %v1111_v59, %v1110_v20 }
 0x16b   :  { %v1127_v28 = vrot.slane %v1126_v46, 2 }
 0x16c   :  { %v1113_v6 = vrot.slane %v1112_v35, 2 }
 0x16d   :  { %v1128_v22 = vadd.f32 %v1127_v28, %v1126_v46 }
 0x16e   :  { %v1114_v4 = vadd.f32 %v1113_v6, %v1112_v35 }
 0x16f   :  { %v1129_v31 = vrot.slane %v1128_v22, 1 }
 0x170   :  { %v1115_v47 = vrot.slane %v1114_v4, 1 }
 0x171   :  { %v1130_v26 = vadd.f32 %v1129_v31, %v1128_v22 }
 0x172   :  { %v1116_v13 = vadd.f32 %v1115_v47, %v1114_v4 }
 0x173   :  { %v1131_v57 = vsub.f32 %v1120_v40, %v1130_v26  ;;  %v1132_v59 = vsub.f32 %v1121_v19, %v1130_v26 }
 0x174   :  { %1117 = vst [vmem:[#allocation9 + $0x4] sm:$0x1] %v1116_v13 }
 0x175   :  { %v3098_v43 = vsel %vm76_vm0, %v1131_v57, 0.0 }
 0x176   :  { %v1140_v37 = vrot.slane %v3098_v43, %v2622_v52  ;;  %v1148_v49 = vrot.slane %v3098_v43, %v2624_v53  ;;  %v1158_v10 = vrot.slane %v3098_v43, %v2626_v55  ;;  %v1168_v45 = vrot.slane %v3098_v43, %v2628_v56 }
 0x177   :  { %v1178_v40 = vrot.slane %v3098_v43, %v2630_v61  ;;  %v1188_v28 = vrot.slane %v3098_v43, %v2636_v5  ;;  %v1198_v47 = vrot.slane %v3098_v43, %v2648_v33 }
 0x178   :  { %v1141_v3 = vmul.f32 %v1140_v37, %v2863_v29  ;;  %v1142_v51 = vmul.f32 %v1140_v37, %v2869_v54  ;;  %v1149_v20 = vmul.f32 %v1148_v49, %v2871_v42  ;;  %v1150_v63 = vmul.f32 %v1148_v49, %v2873_v14 }
 0x179   :  { %v1159_v46 = vmul.f32 %v1158_v10, %v2879_v16  ;;  %v1160_v35 = vmul.f32 %v1158_v10, %v2881_v60  ;;  %v1169_v4 = vmul.f32 %v1168_v45, %v2887_v58  ;;  %v1170_v31 = vmul.f32 %v1168_v45, %v2889_v0 }
 0x17a   :  { %v1151_v6 = vadd.f32 %v1149_v20, %v1141_v3  ;;  %v1152_v22 = vadd.f32 %v1150_v63, %v1142_v51  ;;  %v1179_v19 = vmul.f32 %v1178_v40, %v2899_v1  ;;  %v1180_v26 = vmul.f32 %v1178_v40, %v2901_v30  ;;  %v3801_v30 = vld [vmem:[#allocation18_spill] sm:$0xff] }
 0x17b   :  { %v1134_v49 = vsel %vm77_vm1, %v1132_v59, 0.0  ;;  %v1208_v10 = vrot.slane %v3098_v43, %v2650_v36  ;;  %v1189_v20 = vmul.f32 %v1188_v28, %v2907_v34  ;;  %v1190_v45 = vmul.f32 %v1188_v28, %v2909_v21 }
 0x17c   :  { %v1161_v13 = vadd.f32 %v1159_v46, %v1151_v6  ;;  %v1162_v57 = vadd.f32 %v1160_v35, %v1152_v22  ;;  %v1199_v63 = vmul.f32 %v1198_v47, %v2915_v7  ;;  %v1200_v6 = vmul.f32 %v1198_v47, %v2921_v17  ;;  %v3804_v17 = vld [vmem:[#allocation21_spill] sm:$0xff] }
 0x17d   :  { %v1218_v40 = vrot.slane %v1134_v49, %v2622_v52  ;;  %v1209_v22 = vmul.f32 %v1208_v10, %v2927_v15  ;;  %v1210_v1 = vmul.f32 %v1208_v10, %v3801_v30  ;;  %v1248_v47 = vrot.slane %v1134_v49, %v2628_v56  ;;  %v3806_v30 = vld [vmem:[#allocation24_spill] sm:$0xff] }
 0x17e   :  { %v1171_v3 = vadd.f32 %v1169_v4, %v1161_v13  ;;  %v1172_v51 = vadd.f32 %v1170_v31, %v1162_v57  ;;  %v1228_v4 = vrot.slane %v1134_v49, %v2624_v53  ;;  %v1238_v31 = vrot.slane %v1134_v49, %v2626_v55  ;;  %v3802_v57 = vld [vmem:[#allocation19_spill] sm:$0xff] }
 0x17f   :  { %v1219_v7 = vmul.f32 %v1218_v40, %v3802_v57  ;;  %v1258_v10 = vrot.slane %v1134_v49, %v2630_v61 }
 0x180   :  { %v1181_v46 = vadd.f32 %v1179_v19, %v1171_v3  ;;  %v1182_v35 = vadd.f32 %v1180_v26, %v1172_v51  ;;  %v3803_v19 = vld [vmem:[#allocation20_spill] sm:$0xff]  ;;  %v1229_v15 = vmul.f32 %v1228_v4, %v3804_v17  ;;  %v1239_v21 = vmul.f32 %v1238_v31, %v3806_v30 }
 0x181   :  { %v1220_v26 = vmul.f32 %v1218_v40, %v3803_v19  ;;  %v1249_v19 = vmul.f32 %v1248_v47, %v3794_v12 }
 0x182   :  { %v1191_v59 = vadd.f32 %v1189_v20, %v1181_v46  ;;  %v1192_v37 = vadd.f32 %v1190_v45, %v1182_v35  ;;  %v3805_v20 = vld [vmem:[#allocation23_spill] sm:$0xff] }
 0x183   :  { %v1230_v45 = vmul.f32 %v1228_v4, %v3805_v20 }
 0x184   :  { %v1201_v13 = vadd.f32 %v1199_v63, %v1191_v59  ;;  %v1202_v28 = vadd.f32 %v1200_v6, %v1192_v37  ;;  %v3807_v63 = vld [vmem:[#allocation28_spill] sm:$0xff]  ;;  %v1268_v6 = vrot.slane %v1134_v49, %v2636_v5 }
 0x185   :  { %v1240_v37 = vmul.f32 %v1238_v31, %v3807_v63 }
 0x186   :  { %v1211_v3 = vadd.f32 %v1209_v22, %v1201_v13  ;;  %v1212_v51 = vadd.f32 %v1210_v1, %v1202_v28  ;;  %v1250_v1 = vmul.f32 %v1248_v47, %v3795_v62  ;;  %v1259_v22 = vmul.f32 %v1258_v10, %v3796_v8 }
 0x187   :  { %v1260_v28 = vmul.f32 %v1258_v10, %v3797_v23  ;;  %v1270_v63 = vmul.f32 %v1268_v6, %v3799_v25 }
 0x188   :  { %v1221_v46 = vadd.f32 %v1219_v7, %v1211_v3  ;;  %v1222_v35 = vadd.f32 %v1220_v26, %v1212_v51  ;;  %v1278_v7 = vrot.slane %v1134_v49, %v2648_v33  ;;  %v3808_v26 = vld [vmem:[#allocation33_spill] sm:$0xff] }
 0x189   :  { %v1269_v3 = vmul.f32 %v1268_v6, %v3808_v26  ;;  %v1294_v6 = vmul.f32 %v3003_v2, %v1134_v49 }
 0x18a   :  { %v1231_v59 = vadd.f32 %v1229_v15, %v1221_v46  ;;  %v1232_v40 = vadd.f32 %v1230_v45, %v1222_v35  ;;  %v1288_v15 = vrot.slane %v1134_v49, %v2650_v36  ;;  %v1279_v47 = vmul.f32 %v1278_v7, %v2984_v48 }
 0x18b   :  { %v1280_v35 = vmul.f32 %v1278_v7, %v2986_v41 }
 0x18c   :  { %v1241_v13 = vadd.f32 %v1239_v21, %v1231_v59  ;;  %v1242_v4 = vadd.f32 %v1240_v37, %v1232_v40  ;;  %v1289_v10 = vmul.f32 %v1288_v15, %v2991_v50  ;;  %v1290_v59 = vmul.f32 %v1288_v15, %v2993_v9 }
 0x18e   :  { %v1251_v51 = vadd.f32 %v1249_v19, %v1241_v13  ;;  %v1252_v31 = vadd.f32 %v1250_v1, %v1242_v4  ;;  %v1293_v19 = vmul.f32 %v2999_v39, %v3098_v43 }
 0x190   :  { %v1261_v45 = vadd.f32 %v1259_v22, %v1251_v51  ;;  %v1262_v46 = vadd.f32 %v1260_v28, %v1252_v31 }
 0x192   :  { %v1271_v21 = vadd.f32 %v1269_v3, %v1261_v45  ;;  %v1272_v37 = vadd.f32 %v1270_v63, %v1262_v46 }
 0x194   :  { %v1281_v40 = vadd.f32 %v1279_v47, %v1271_v21  ;;  %v1282_v26 = vadd.f32 %v1280_v35, %v1272_v37 }
 0x196   :  { %v1291_v1 = vadd.f32 %v1289_v10, %v1281_v40  ;;  %v1292_v22 = vadd.f32 %v1290_v59, %v1282_v26 }
 0x198   :  { %v1295_v13 = vadd.f32 %v1293_v19, %v1291_v1  ;;  %v1296_v4 = vadd.f32 %v1294_v6, %v1292_v22  ;;  %v1309_v28 = vsub.f32 %v3082_v32, %v1291_v1  ;;  %v1310_v7 = vsub.f32 %v3085_v44, %v1292_v22 }
 0x19a   :  { %v1297_v63 = vsub.f32 %v3082_v32, %v1295_v13  ;;  %v1298_v3 = vsub.f32 %v3085_v44, %v1296_v4  ;;  %v1311_v51 = vmul.f32 %v1309_v28, %v2600_v11  ;;  %v1312_v31 = vmul.f32 %v1310_v7, %v3756_v38 }
 0x19c   :  { %v1299_v15 = vand.u32 2147483647, %v1297_v63  ;;  %v1300_v43 = vand.u32 2147483647, %v1298_v3  ;;  %v1313_v49 = vsel %vm2607_vm2, %v1311_v51, 0.0  ;;  %v1314_v26 = vsel %vm2612_vm3, %v1312_v31, 0.0 }
 0x19d   :  { %v1315_v45 = vadd.f32 %v1314_v26, %v1313_v49 }
 0x19e   :  { %v1301_v46 = vadd.f32 %v1300_v43, %v1299_v15 }
 0x19f   :  { %v1316_v47 = vrot.slane %v1315_v45, 4 }
 0x1a0   :  { %v1302_v35 = vrot.slane %v1301_v46, 4 }
 0x1a1   :  { %v1317_v21 = vadd.f32 %v1316_v47, %v1315_v45 }
 0x1a2   :  { %v1303_v37 = vadd.f32 %v1302_v35, %v1301_v46 }
 0x1a3   :  { %v1318_v10 = vrot.slane %v1317_v21, 2 }
 0x1a4   :  { %v1304_v59 = vrot.slane %v1303_v37, 2 }
 0x1a5   :  { %v1319_v40 = vadd.f32 %v1318_v10, %v1317_v21 }
 0x1a6   :  { %v1305_v19 = vadd.f32 %v1304_v59, %v1303_v37 }
 0x1a7   :  { %v1320_v6 = vrot.slane %v1319_v40, 1 }
 0x1a8   :  { %v1306_v1 = vrot.slane %v1305_v19, 1 }
 0x1a9   :  { %v1321_v22 = vadd.f32 %v1320_v6, %v1319_v40 }
 0x1aa   :  { %v1307_v13 = vadd.f32 %v1306_v1, %v1305_v19  ;;  %v3810_v19 = vld [vmem:[#allocation26_spill] sm:$0xff] }
 0x1ab   :  { %v1322_v4 = vsub.f32 %v1311_v51, %v1321_v22  ;;  %v1323_v46 = vsub.f32 %v1312_v31, %v1321_v22 }
 0x1ac   :  { %1308 = vst [vmem:[#allocation9 + $0x5] sm:$0x1] %v1307_v13 }
 0x1ad   :  { %v3173_v28 = vsel %vm76_vm0, %v1322_v4, 0.0 }
 0x1ae   :  { %v1331_v7 = vrot.slane %v3173_v28, %v2622_v52  ;;  %v1339_v63 = vrot.slane %v3173_v28, %v2624_v53  ;;  %v1349_v3 = vrot.slane %v3173_v28, %v2626_v55  ;;  %v1359_v15 = vrot.slane %v3173_v28, %v2628_v56 }
 0x1af   :  { %v1369_v51 = vrot.slane %v3173_v28, %v2630_v61  ;;  %v1379_v21 = vrot.slane %v3173_v28, %v2636_v5  ;;  %v1399_v1 = vrot.slane %v3173_v28, %v2650_v36 }
 0x1b0   :  { %v1332_v43 = vmul.f32 %v1331_v7, %v2863_v29  ;;  %v1333_v49 = vmul.f32 %v1331_v7, %v2869_v54  ;;  %v1340_v26 = vmul.f32 %v1339_v63, %v2871_v42  ;;  %v1341_v45 = vmul.f32 %v1339_v63, %v2873_v14  ;;  %v3809_v14 = vld [vmem:[#allocation25_spill] sm:$0xff]  ;;  %v3813_v7 = vld [vmem:[#allocation15_spill] sm:$0xff] }
 0x1b1   :  { %v1350_v47 = vmul.f32 %v1349_v3, %v2879_v16  ;;  %v1351_v35 = vmul.f32 %v1349_v3, %v2881_v60  ;;  %v1360_v59 = vmul.f32 %v1359_v15, %v2887_v58  ;;  %v1361_v29 = vmul.f32 %v1359_v15, %v2889_v0  ;;  %v3812_v0 = vld [vmem:[#allocation27_spill] sm:$0xff] }
 0x1b2   :  { %v1342_v37 = vadd.f32 %v1340_v26, %v1332_v43  ;;  %v1343_v10 = vadd.f32 %v1341_v45, %v1333_v49  ;;  %v1389_v54 = vrot.slane %v3173_v28, %v2648_v33  ;;  %v1370_v31 = vmul.f32 %v1369_v51, %v3809_v14  ;;  %v3814_v43 = vld [vmem:[#allocation16_spill] sm:$0xff]  ;;  %v3815_v26 = vld [vmem:[#allocation17_spill] sm:$0xff] }
 0x1b3   :  { %v1371_v16 = vmul.f32 %v1369_v51, %v3810_v19  ;;  %v1325_v60 = vsel %vm77_vm1, %v1323_v46, 0.0  ;;  %v1380_v58 = vmul.f32 %v1379_v21, %v2907_v34  ;;  %v1381_v4 = vmul.f32 %v1379_v21, %v3812_v0  ;;  %v3818_v0 = vld [vmem:[#allocation28_spill] sm:$0xff] }
 0x1b4   :  { %v1352_v42 = vadd.f32 %v1350_v47, %v1342_v37  ;;  %v1353_v40 = vadd.f32 %v1351_v35, %v1343_v10  ;;  %v1390_v63 = vmul.f32 %v1389_v54, %v3813_v7  ;;  %v1391_v49 = vmul.f32 %v1389_v54, %v3814_v43  ;;  %v3816_v35 = vld [vmem:[#allocation18_spill] sm:$0xff] }
 0x1b5   :  { %v1409_v51 = vrot.slane %v1325_v60, %v2622_v52  ;;  %v1400_v45 = vmul.f32 %v1399_v1, %v3815_v26  ;;  %v1401_v37 = vmul.f32 %v1399_v1, %v3816_v35  ;;  %v1419_v10 = vrot.slane %v1325_v60, %v2624_v53  ;;  %v3819_v26 = vld [vmem:[#allocation33_spill] sm:$0xff] }
 0x1b6   :  { %v1362_v22 = vadd.f32 %v1360_v59, %v1352_v42  ;;  %v1363_v13 = vadd.f32 %v1361_v29, %v1353_v40  ;;  %v1429_v34 = vrot.slane %v1325_v60, %v2626_v55  ;;  %v3817_v42 = vld [vmem:[#allocation20_spill] sm:$0xff]  ;;  %v1439_v54 = vrot.slane %v1325_v60, %v2628_v56 }
 0x1b7   :  { %v1410_v29 = vmul.f32 %v1409_v51, %v3802_v57  ;;  %v1411_v40 = vmul.f32 %v1409_v51, %v3817_v42  ;;  %v1420_v19 = vmul.f32 %v1419_v10, %v3804_v17  ;;  %v1449_v1 = vrot.slane %v1325_v60, %v2630_v61 }
 0x1b8   :  { %v1372_v3 = vadd.f32 %v1370_v31, %v1362_v22  ;;  %v1373_v15 = vadd.f32 %v1371_v16, %v1363_v13  ;;  %v1421_v16 = vmul.f32 %v1419_v10, %v3805_v20  ;;  %v1459_v57 = vrot.slane %v1325_v60, %v2636_v5 }
 0x1b9   :  { %v1450_v17 = vmul.f32 %v1449_v1, %v3796_v8  ;;  %v1469_v51 = vrot.slane %v1325_v60, %v2648_v33  ;;  %v1479_v35 = vrot.slane %v1325_v60, %v2650_v36  ;;  %v1484_v42 = vmul.f32 %v2999_v39, %v3173_v28 }
 0x1ba   :  { %v1382_v46 = vadd.f32 %v1380_v58, %v1372_v3  ;;  %v1383_v47 = vadd.f32 %v1381_v4, %v1373_v15  ;;  %v1430_v58 = vmul.f32 %v1429_v34, %v3806_v30  ;;  %v1431_v4 = vmul.f32 %v1429_v34, %v3818_v0 }
 0x1bb   :  { %v1440_v3 = vmul.f32 %v1439_v54, %v3794_v12  ;;  %v1441_v15 = vmul.f32 %v1439_v54, %v3795_v62  ;;  %v1460_v30 = vmul.f32 %v1459_v57, %v3819_v26  ;;  %v1470_v62 = vmul.f32 %v1469_v51, %v2984_v48 }
 0x1bc   :  { %v1392_v59 = vadd.f32 %v1390_v63, %v1382_v46  ;;  %v1393_v21 = vadd.f32 %v1391_v49, %v1383_v47  ;;  %v1451_v49 = vmul.f32 %v1449_v1, %v3797_v23  ;;  %v1461_v47 = vmul.f32 %v1459_v57, %v3799_v25 }
 0x1bd   :  { %v1471_v8 = vmul.f32 %v1469_v51, %v2986_v41  ;;  %v1480_v23 = vmul.f32 %v1479_v35, %v2991_v50  ;;  %v1485_v25 = vmul.f32 %v3003_v2, %v1325_v60 }
 0x1be   :  { %v1402_v14 = vadd.f32 %v1400_v45, %v1392_v59  ;;  %v1403_v31 = vadd.f32 %v1401_v37, %v1393_v21  ;;  %v1481_v59 = vmul.f32 %v1479_v35, %v2993_v9  ;;  %v3256_v35 = vld [vmem:[#allocation2 + $0x18] sm:$0xff] }
 0x1c0   :  { %v1412_v22 = vadd.f32 %v1410_v29, %v1402_v14  ;;  %v1413_v13 = vadd.f32 %v1411_v40, %v1403_v31 }
 0x1c2   :  { %v1422_v7 = vadd.f32 %v1420_v19, %v1412_v22  ;;  %v1423_v63 = vadd.f32 %v1421_v16, %v1413_v13 }
 0x1c4   :  { %v1432_v43 = vadd.f32 %v1430_v58, %v1422_v7  ;;  %v1433_v20 = vadd.f32 %v1431_v4, %v1423_v63 }
 0x1c6   :  { %v1442_v45 = vadd.f32 %v1440_v3, %v1432_v43  ;;  %v1443_v46 = vadd.f32 %v1441_v15, %v1433_v20 }
 0x1c8   :  { %v1452_v37 = vadd.f32 %v1450_v17, %v1442_v45  ;;  %v1453_v12 = vadd.f32 %v1451_v49, %v1443_v46  ;;  %v3252_v46 = vld [vmem:[#allocation2 + $0x8] sm:$0xff] }
 0x1ca   :  { %v1462_v10 = vadd.f32 %v1460_v30, %v1452_v37  ;;  %v1463_v34 = vadd.f32 %v1461_v47, %v1453_v12  ;;  %v3246_v30 = vld [vmem:[#allocation2] sm:$0xff]  ;;  %v3254_v47 = vld [vmem:[#allocation2 + $0x10] sm:$0xff] }
 0x1cc   :  { %v1472_v21 = vadd.f32 %v1470_v62, %v1462_v10  ;;  %v1473_v29 = vadd.f32 %v1471_v8, %v1463_v34  ;;  %v3262_v62 = vld [vmem:[#allocation2 + $0x20] sm:$0xff]  ;;  %v3264_v8 = vld [vmem:[#allocation2 + $0x28] sm:$0xff] }
 0x1ce   :  { %v1482_v40 = vadd.f32 %v1480_v23, %v1472_v21  ;;  %v1483_v54 = vadd.f32 %v1481_v59, %v1473_v29  ;;  %v3270_v23 = vld [vmem:[#allocation2 + $0x30] sm:$0xff]  ;;  %v3272_v59 = vld [vmem:[#allocation2 + $0x38] sm:$0xff] }
 0x1d0   :  { %v1486_v14 = vadd.f32 %v1484_v42, %v1482_v40  ;;  %v1487_v31 = vadd.f32 %v1485_v25, %v1483_v54  ;;  %v1500_v48 = vsub.f32 %v3082_v32, %v1482_v40  ;;  %v1501_v41 = vsub.f32 %v3085_v44, %v1483_v54 }
 0x1d2   :  { %v1488_v19 = vsub.f32 %v3082_v32, %v1486_v14  ;;  %v1489_v50 = vsub.f32 %v3085_v44, %v1487_v31  ;;  %v1502_v9 = vmul.f32 %v1500_v48, %v2600_v11  ;;  %v1503_v16 = vmul.f32 %v1501_v41, %v3756_v38  ;;  %v3282_v48 = vld [vmem:[#allocation2 + $0x40] sm:$0xff]  ;;  %v3284_v41 = vld [vmem:[#allocation2 + $0x48] sm:$0xff] }
 0x1d3   :  { %3820 = vst [vmem:[#allocation29_spill] sm:$0xff] %v3284_v41 }
 0x1d4   :  { %v1490_v1 = vand.u32 2147483647, %v1488_v19  ;;  %v1491_v28 = vand.u32 2147483647, %v1489_v50  ;;  %v1504_v60 = vsel %vm2607_vm2, %v1502_v9, 0.0  ;;  %v1505_v22 = vsel %vm2612_vm3, %v1503_v16, 0.0 }
 0x1d5   :  { %v1506_v13 = vadd.f32 %v1505_v22, %v1504_v60  ;;  %v3290_v60 = vld [vmem:[#allocation2 + $0x50] sm:$0xff] }
 0x1d6   :  { %v1492_v58 = vadd.f32 %v1491_v28, %v1490_v1 }
 0x1d7   :  { %v1507_v0 = vrot.slane %v1506_v13, 4 }
 0x1d8   :  { %v1493_v4 = vrot.slane %v1492_v58, 4 }
 0x1d9   :  { %v1508_v57 = vadd.f32 %v1507_v0, %v1506_v13 }
 0x1da   :  { %v1494_v7 = vadd.f32 %v1493_v4, %v1492_v58 }
 0x1db   :  { %v1509_v63 = vrot.slane %v1508_v57, 2 }
 0x1dc   :  { %v1495_v3 = vrot.slane %v1494_v7, 2 }
 0x1dd   :  { %v1510_v15 = vadd.f32 %v1509_v63, %v1508_v57  ;;  %v3298_v57 = vld [vmem:[#allocation2 + $0x60] sm:$0xff]  ;;  %v3304_v63 = vld [vmem:[#allocation2 + $0x68] sm:$0xff] }
 0x1de   :  { %v1496_v17 = vadd.f32 %v1495_v3, %v1494_v7  ;;  %3822 = vst [vmem:[#allocation31_spill] sm:$0xff] %v3298_v57  ;;  %3823 = vst [vmem:[#allocation32_spill] sm:$0xff] %v3304_v63 }
 0x1df   :  { %v1511_v43 = vrot.slane %v1510_v15, 1 }
 0x1e0   :  { %v1497_v20 = vrot.slane %v1496_v17, 1 }
 0x1e1   :  { %v1512_v49 = vadd.f32 %v1511_v43, %v1510_v15 }
 0x1e2   :  { %v1498_v51 = vadd.f32 %v1497_v20, %v1496_v17 }
 0x1e3   :  { %v1513_v26 = vsub.f32 %v1502_v9, %v1512_v49  ;;  %v1514_v54 = vsub.f32 %v1503_v16, %v1512_v49  ;;  %v3292_v16 = vld [vmem:[#allocation2 + $0x58] sm:$0xff]  ;;  %v3310_v49 = vld [vmem:[#allocation2 + $0x70] sm:$0xff] }
 0x1e4   :  { %1499 = vst [vmem:[#allocation9 + $0x6] sm:$0x1] %v1498_v51  ;;  %3821 = vst [vmem:[#allocation30_spill] sm:$0xff] %v3292_v16 }
 0x1e5   :  { %v3250_v45 = vsel %vm76_vm0, %v1513_v26, 0.0  ;;  %v3302_v7 = vsel %vm77_vm1, %v1514_v54, 0.0  ;;  %3824 = vst [vmem:[#allocation34_spill] sm:$0xff] %v3310_v49  ;;  %v3313_v26 = vld [vmem:[#allocation2 + $0x78] sm:$0xff] }
 0x1e6   :  { %v1522_v37 = vrot.slane %v3250_v45, %v2622_v52  ;;  %v1530_v12 = vrot.slane %v3250_v45, %v2624_v53  ;;  %v1540_v10 = vrot.slane %v3250_v45, %v2626_v55  ;;  %v1550_v34 = vrot.slane %v3250_v45, %v2628_v56  ;;  %3825 = vst [vmem:[#allocation19_spill] sm:$0xff] %v3313_v26 }
 0x1e7   :  { %v1560_v21 = vrot.slane %v3250_v45, %v2630_v61  ;;  %v1570_v19 = vrot.slane %v3250_v45, %v2636_v5  ;;  %v1580_v22 = vrot.slane %v3250_v45, %v2648_v33  ;;  %v1590_v3 = vrot.slane %v3250_v45, %v2650_v36 }
 0x1e8   :  { %v1523_v29 = vmul.f32 %v1522_v37, %v3246_v30  ;;  %v1524_v42 = vmul.f32 %v1522_v37, %v3252_v46  ;;  %v1531_v25 = vmul.f32 %v1530_v12, %v3254_v47  ;;  %v1532_v40 = vmul.f32 %v1530_v12, %v3256_v35 }
 0x1e9   :  { %v1541_v14 = vmul.f32 %v1540_v10, %v3262_v62  ;;  %v1542_v31 = vmul.f32 %v1540_v10, %v3264_v8  ;;  %v1551_v1 = vmul.f32 %v1550_v34, %v3270_v23  ;;  %v1552_v28 = vmul.f32 %v1550_v34, %v3272_v59 }
 0x1ea   :  { %v1533_v50 = vadd.f32 %v1531_v25, %v1523_v29  ;;  %v1534_v9 = vadd.f32 %v1532_v40, %v1524_v42  ;;  %v1561_v0 = vmul.f32 %v1560_v21, %v3282_v48  ;;  %v1562_v4 = vmul.f32 %v1560_v21, %v3284_v41  ;;  %v3319_v29 = vld [vmem:[#allocation2 + $0x80] sm:$0xff]  ;;  %v3321_v42 = vld [vmem:[#allocation2 + $0x88] sm:$0xff] }
 0x1eb   :  { %v1571_v43 = vmul.f32 %v1570_v19, %v3290_v60  ;;  %v1572_v20 = vmul.f32 %v1570_v19, %v3292_v16  ;;  %v1581_v51 = vmul.f32 %v1580_v22, %v3298_v57  ;;  %v1582_v10 = vmul.f32 %v1580_v22, %v3304_v63  ;;  %3826 = vst [vmem:[#allocation21_spill] sm:$0xff] %v3319_v29  ;;  %v3328_v19 = vld [vmem:[#allocation2 + $0x98] sm:$0xff] }
 0x1ec   :  { %v1543_v13 = vadd.f32 %v1541_v14, %v1533_v50  ;;  %v1544_v58 = vadd.f32 %v1542_v31, %v1534_v9  ;;  %v1600_v34 = vrot.slane %v3302_v7, %v2622_v52  ;;  %v1591_v21 = vmul.f32 %v1590_v3, %v3310_v49  ;;  %3827 = vst [vmem:[#allocation23_spill] sm:$0xff] %v3321_v42  ;;  %v3326_v31 = vld [vmem:[#allocation2 + $0x90] sm:$0xff] }
 0x1ed   :  { %v1592_v54 = vmul.f32 %v1590_v3, %v3313_v26  ;;  %v1610_v14 = vrot.slane %v3302_v7, %v2624_v53  ;;  %3828 = vst [vmem:[#allocation24_spill] sm:$0xff] %v3326_v31  ;;  %3829 = vst [vmem:[#allocation25_spill] sm:$0xff] %v3328_v19  ;;  %v1620_v50 = vrot.slane %v3302_v7, %v2626_v55 }
 0x1ee   :  { %v1553_v15 = vadd.f32 %v1551_v1, %v1543_v13  ;;  %v1554_v17 = vadd.f32 %v1552_v28, %v1544_v58  ;;  %v1601_v28 = vmul.f32 %v1600_v34, %v3319_v29  ;;  %v1602_v22 = vmul.f32 %v1600_v34, %v3321_v42  ;;  %v3334_v13 = vld [vmem:[#allocation2 + $0xa0] sm:$0xff]  ;;  %v3336_v58 = vld [vmem:[#allocation2 + $0xa8] sm:$0xff] }
 0x1ef   :  { %3830 = vst [vmem:[#allocation26_spill] sm:$0xff] %v3334_v13  ;;  %3831 = vst [vmem:[#allocation22_spill] sm:$0xff] %v3336_v58  ;;  %v1622_v34 = vmul.f32 %v1620_v50, %v3336_v58  ;;  %v1660_v58 = vrot.slane %v3302_v7, %v2648_v33 }
 0x1f0   :  { %v1563_v37 = vadd.f32 %v1561_v0, %v1553_v15  ;;  %v1564_v12 = vadd.f32 %v1562_v4, %v1554_v17  ;;  %v1630_v0 = vrot.slane %v3302_v7, %v2628_v56  ;;  %v1611_v15 = vmul.f32 %v1610_v14, %v3326_v31 }
 0x1f1   :  { %v1612_v17 = vmul.f32 %v1610_v14, %v3328_v19  ;;  %v3358_v19 = vld [vmem:[#allocation2 + $0xd0] sm:$0xff] }
 0x1f2   :  { %v1573_v25 = vadd.f32 %v1571_v43, %v1563_v37  ;;  %v1574_v40 = vadd.f32 %v1572_v20, %v1564_v12  ;;  %v3342_v43 = vld [vmem:[#allocation2 + $0xb0] sm:$0xff]  ;;  %v3344_v20 = vld [vmem:[#allocation2 + $0xb8] sm:$0xff]  ;;  %3836 = vst [vmem:[#allocation18_spill] sm:$0xff] %v3358_v19 }
 0x1f3   :  { %3832 = vst [vmem:[#allocation27_spill] sm:$0xff] %v3342_v43  ;;  %3833 = vst [vmem:[#allocation15_spill] sm:$0xff] %v3344_v20 }
 0x1f4   :  { %v1583_v9 = vadd.f32 %v1581_v51, %v1573_v25  ;;  %v1584_v1 = vadd.f32 %v1582_v10, %v1574_v40  ;;  %v1640_v51 = vrot.slane %v3302_v7, %v2630_v61  ;;  %v1621_v10 = vmul.f32 %v1620_v50, %v3334_v13  ;;  %v3350_v25 = vld [vmem:[#allocation2 + $0xc0] sm:$0xff] }
 0x1f5   :  { %3834 = vst [vmem:[#allocation16_spill] sm:$0xff] %v3350_v25  ;;  %v1650_v40 = vrot.slane %v3302_v7, %v2636_v5 }
 0x1f6   :  { %v1593_v4 = vadd.f32 %v1591_v21, %v1583_v9  ;;  %v1594_v3 = vadd.f32 %v1592_v54, %v1584_v1  ;;  %v3352_v21 = vld [vmem:[#allocation2 + $0xc8] sm:$0xff]  ;;  %v1631_v9 = vmul.f32 %v1630_v0, %v3342_v43  ;;  %v1632_v1 = vmul.f32 %v1630_v0, %v3344_v20 }
 0x1f7   :  { %3835 = vst [vmem:[#allocation17_spill] sm:$0xff] %v3352_v21 }
 0x1f8   :  { %v1603_v37 = vadd.f32 %v1601_v28, %v1593_v4  ;;  %v1604_v12 = vadd.f32 %v1602_v22, %v1594_v3  ;;  %v1641_v28 = vmul.f32 %v1640_v51, %v3350_v25  ;;  %v3361_v22 = vld [vmem:[#allocation2 + $0xd8] sm:$0xff]  ;;  %v1642_v3 = vmul.f32 %v1640_v51, %v3352_v21 }
 0x1f9   :  { %3837 = vst [vmem:[#allocation20_spill] sm:$0xff] %v3361_v22  ;;  %v1652_v20 = vmul.f32 %v1650_v40, %v3361_v22  ;;  %v1670_v25 = vrot.slane %v3302_v7, %v2650_v36  ;;  %v1676_v22 = vmul.f32 %v3003_v2, %v3302_v7 }
 0x1fa   :  { %v1613_v54 = vadd.f32 %v1611_v15, %v1603_v37  ;;  %v1614_v14 = vadd.f32 %v1612_v17, %v1604_v12  ;;  %v1651_v15 = vmul.f32 %v1650_v40, %v3358_v19  ;;  %v3367_v17 = vld [vmem:[#allocation2 + $0xe0] sm:$0xff]  ;;  %v3369_v37 = vld [vmem:[#allocation2 + $0xe8] sm:$0xff] }
 0x1fb   :  { %v1662_v19 = vmul.f32 %v1660_v58, %v3369_v37 }
 0x1fc   :  { %v1623_v50 = vadd.f32 %v1621_v10, %v1613_v54  ;;  %v1624_v4 = vadd.f32 %v1622_v34, %v1614_v14  ;;  %v3374_v10 = vld [vmem:[#allocation2 + $0xf0] sm:$0xff]  ;;  %v3376_v34 = vld [vmem:[#allocation2 + $0xf8] sm:$0xff]  ;;  %v1661_v14 = vmul.f32 %v1660_v58, %v3367_v17 }
 0x1fe   :  { %v1633_v0 = vadd.f32 %v1631_v9, %v1623_v50  ;;  %v1634_v12 = vadd.f32 %v1632_v1, %v1624_v4  ;;  %v1671_v9 = vmul.f32 %v1670_v25, %v3374_v10  ;;  %v1672_v1 = vmul.f32 %v1670_v25, %v3376_v34 }
 0x1ff   :  { %v1675_v4 = vmul.f32 %v2999_v39, %v3250_v45 }
 0x200   :  { %v1643_v51 = vadd.f32 %v1641_v28, %v1633_v0  ;;  %v1644_v54 = vadd.f32 %v1642_v3, %v1634_v12 }
 0x202   :  { %v1653_v21 = vadd.f32 %v1651_v15, %v1643_v51  ;;  %v1654_v43 = vadd.f32 %v1652_v20, %v1644_v54 }
 0x204   :  { %v1663_v40 = vadd.f32 %v1661_v14, %v1653_v21  ;;  %v1664_v50 = vadd.f32 %v1662_v19, %v1654_v43 }
 0x206   :  { %v1673_v28 = vadd.f32 %v1671_v9, %v1663_v40  ;;  %v1674_v3 = vadd.f32 %v1672_v1, %v1664_v50 }
 0x208   :  { %v1677_v0 = vadd.f32 %v1675_v4, %v1673_v28  ;;  %v1678_v12 = vadd.f32 %v1676_v22, %v1674_v3  ;;  %v1691_v58 = vsub.f32 %v3082_v32, %v1673_v28  ;;  %v1692_v20 = vsub.f32 %v3085_v44, %v1674_v3 }
 0x20a   :  { %v1679_v15 = vsub.f32 %v3082_v32, %v1677_v0  ;;  %v1680_v25 = vsub.f32 %v3085_v44, %v1678_v12  ;;  %v1693_v19 = vmul.f32 %v1691_v58, %v2600_v11  ;;  %v1694_v43 = vmul.f32 %v1692_v20, %v3756_v38 }
 0x20c   :  { %v1681_v39 = vand.u32 2147483647, %v1679_v15  ;;  %v1682_v45 = vand.u32 2147483647, %v1680_v25  ;;  %v1695_v2 = vsel %vm2607_vm2, %v1693_v19, 0.0  ;;  %v1696_v7 = vsel %vm2612_vm3, %v1694_v43, 0.0 }
 0x20d   :  { %v1697_v21 = vadd.f32 %v1696_v7, %v1695_v2 }
 0x20e   :  { %v1683_v22 = vadd.f32 %v1682_v45, %v1681_v39 }
 0x20f   :  { %v1698_v51 = vrot.slane %v1697_v21, 4 }
 0x210   :  { %v1684_v54 = vrot.slane %v1683_v22, 4 }
 0x211   :  { %v1699_v14 = vadd.f32 %v1698_v51, %v1697_v21 }
 0x212   :  { %v1685_v9 = vadd.f32 %v1684_v54, %v1683_v22 }
 0x213   :  { %v1700_v1 = vrot.slane %v1699_v14, 2 }
 0x214   :  { %v1686_v40 = vrot.slane %v1685_v9, 2 }
 0x215   :  { %v1701_v50 = vadd.f32 %v1700_v1, %v1699_v14 }
 0x216   :  { %v1687_v4 = vadd.f32 %v1686_v40, %v1685_v9 }
 0x217   :  { %v1702_v28 = vrot.slane %v1701_v50, 1 }
 0x218   :  { %v1688_v3 = vrot.slane %v1687_v4, 1 }
 0x219   :  { %v1703_v0 = vadd.f32 %v1702_v28, %v1701_v50 }
 0x21a   :  { %v1689_v12 = vadd.f32 %v1688_v3, %v1687_v4 }
 0x21b   :  { %v1704_v58 = vsub.f32 %v1693_v19, %v1703_v0  ;;  %v1705_v51 = vsub.f32 %v1694_v43, %v1703_v0 }
 0x21c   :  { %1690 = vst [vmem:[#allocation9 + $0x7] sm:$0x1] %v1689_v12 }
 0x21d   :  { %v3398_v20 = vsel %vm76_vm0, %v1704_v58, 0.0  ;;  %v1707_v58 = vsel %vm77_vm1, %v1705_v51, 0.0 }
 0x21e   :  { %v1713_v15 = vrot.slane %v3398_v20, %v2622_v52  ;;  %v1721_v25 = vrot.slane %v3398_v20, %v2624_v53  ;;  %v1731_v39 = vrot.slane %v3398_v20, %v2626_v55  ;;  %v1741_v45 = vrot.slane %v3398_v20, %v2628_v56 }
 0x21f   :  { %v1751_v19 = vrot.slane %v3398_v20, %v2630_v61  ;;  %v1761_v9 = vrot.slane %v3398_v20, %v2636_v5  ;;  %v1771_v28 = vrot.slane %v3398_v20, %v2648_v33 }
 0x220   :  { %v1714_v2 = vmul.f32 %v1713_v15, %v3246_v30  ;;  %v1715_v7 = vmul.f32 %v1713_v15, %v3252_v46  ;;  %v1722_v21 = vmul.f32 %v1721_v25, %v3254_v47  ;;  %v1723_v22 = vmul.f32 %v1721_v25, %v3256_v35 }
 0x221   :  { %v1732_v54 = vmul.f32 %v1731_v39, %v3262_v62  ;;  %v1733_v14 = vmul.f32 %v1731_v39, %v3264_v8  ;;  %v1742_v50 = vmul.f32 %v1741_v45, %v3270_v23  ;;  %v1743_v4 = vmul.f32 %v1741_v45, %v3272_v59 }
 0x222   :  { %v1724_v1 = vadd.f32 %v1722_v21, %v1714_v2  ;;  %v1725_v40 = vadd.f32 %v1723_v22, %v1715_v7  ;;  %v1752_v43 = vmul.f32 %v1751_v19, %v3282_v48  ;;  %v1753_v0 = vmul.f32 %v1751_v19, %v3284_v41 }
 0x223   :  { %v1781_v15 = vrot.slane %v3398_v20, %v2650_v36  ;;  %v1762_v2 = vmul.f32 %v1761_v9, %v3290_v60  ;;  %v1763_v45 = vmul.f32 %v1761_v9, %v3292_v16  ;;  %v1772_v7 = vmul.f32 %v1771_v28, %v3298_v57 }
 0x224   :  { %v1734_v3 = vadd.f32 %v1732_v54, %v1724_v1  ;;  %v1735_v12 = vadd.f32 %v1733_v14, %v1725_v40  ;;  %v1773_v54 = vmul.f32 %v1771_v28, %v3304_v63  ;;  %v1791_v19 = vrot.slane %v1707_v58, %v2622_v52 }
 0x225   :  { %v1782_v14 = vmul.f32 %v1781_v15, %v3310_v49  ;;  %v1783_v40 = vmul.f32 %v1781_v15, %v3313_v26  ;;  %v1821_v28 = vrot.slane %v1707_v58, %v2628_v56  ;;  %v1831_v15 = vrot.slane %v1707_v58, %v2630_v61 }
 0x226   :  { %v1744_v25 = vadd.f32 %v1742_v50, %v1734_v3  ;;  %v1745_v39 = vadd.f32 %v1743_v4, %v1735_v12  ;;  %v1801_v50 = vrot.slane %v1707_v58, %v2624_v53  ;;  %v1811_v4 = vrot.slane %v1707_v58, %v2626_v55 }
 0x227   :  { %v1792_v12 = vmul.f32 %v1791_v19, %v3319_v29 }
 0x228   :  { %v1754_v21 = vadd.f32 %v1752_v43, %v1744_v25  ;;  %v1755_v22 = vadd.f32 %v1753_v0, %v1745_v39  ;;  %v1793_v43 = vmul.f32 %v1791_v19, %v3321_v42  ;;  %v1802_v39 = vmul.f32 %v1801_v50, %v3326_v31  ;;  %v3840_v42 = vld [vmem:[#allocation27_spill] sm:$0xff] }
 0x229   :  { %v1812_v26 = vmul.f32 %v1811_v4, %v3334_v13  ;;  %v1822_v29 = vmul.f32 %v1821_v28, %v3840_v42 }
 0x22a   :  { %v1764_v51 = vadd.f32 %v1762_v2, %v1754_v21  ;;  %v1765_v1 = vadd.f32 %v1763_v45, %v1755_v22  ;;  %v3838_v2 = vld [vmem:[#allocation25_spill] sm:$0xff] }
 0x22b   :  { %v1803_v45 = vmul.f32 %v1801_v50, %v3838_v2  ;;  %v3843_v2 = vld [vmem:[#allocation17_spill] sm:$0xff] }
 0x22c   :  { %v1774_v3 = vadd.f32 %v1772_v7, %v1764_v51  ;;  %v1775_v9 = vadd.f32 %v1773_v54, %v1765_v1  ;;  %v3839_v7 = vld [vmem:[#allocation22_spill] sm:$0xff]  ;;  %v1841_v51 = vrot.slane %v1707_v58, %v2636_v5  ;;  %v1833_v49 = vmul.f32 %v1831_v15, %v3843_v2 }
 0x22d   :  { %v1813_v54 = vmul.f32 %v1811_v4, %v3839_v7  ;;  %v3845_v7 = vld [vmem:[#allocation20_spill] sm:$0xff] }
 0x22e   :  { %v1784_v0 = vadd.f32 %v1782_v14, %v1774_v3  ;;  %v1785_v25 = vadd.f32 %v1783_v40, %v1775_v9  ;;  %v3841_v14 = vld [vmem:[#allocation15_spill] sm:$0xff]  ;;  %v3842_v3 = vld [vmem:[#allocation16_spill] sm:$0xff]  ;;  %v1843_v13 = vmul.f32 %v1841_v51, %v3845_v7 }
 0x22f   :  { %v1823_v40 = vmul.f32 %v1821_v28, %v3841_v14  ;;  %v1832_v9 = vmul.f32 %v1831_v15, %v3842_v3 }
 0x230   :  { %v1794_v21 = vadd.f32 %v1792_v12, %v1784_v0  ;;  %v1795_v22 = vadd.f32 %v1793_v43, %v1785_v25  ;;  %v1851_v12 = vrot.slane %v1707_v58, %v2648_v33  ;;  %v3844_v43 = vld [vmem:[#allocation18_spill] sm:$0xff] }
 0x231   :  { %v1842_v0 = vmul.f32 %v1841_v51, %v3844_v43  ;;  %v3462_v51 = vld [vmem:[#allocation5 + $0x8] sm:$0xff] }
 0x232   :  { %v1804_v1 = vadd.f32 %v1802_v39, %v1794_v21  ;;  %v1805_v19 = vadd.f32 %v1803_v45, %v1795_v22  ;;  %v1861_v39 = vrot.slane %v1707_v58, %v2650_v36  ;;  %v1852_v28 = vmul.f32 %v1851_v12, %v3367_v17 }
 0x233   :  { %v1853_v22 = vmul.f32 %v1851_v12, %v3369_v37 }
 0x234   :  { %v1814_v31 = vadd.f32 %v1812_v26, %v1804_v1  ;;  %v1815_v50 = vadd.f32 %v1813_v54, %v1805_v19  ;;  %v1862_v15 = vmul.f32 %v1861_v39, %v3374_v10  ;;  %v1863_v1 = vmul.f32 %v1861_v39, %v3376_v34 }
 0x236   :  { %v1824_v25 = vadd.f32 %v1822_v29, %v1814_v31  ;;  %v1825_v4 = vadd.f32 %v1823_v40, %v1815_v50  ;;  %v3458_v29 = vld [vmem:[#allocation5] sm:$0xff] }
 0x237   :  { %v1866_v31 = vmul.f32 %v3458_v29, %v3398_v20 }
 0x238   :  { %v1834_v45 = vadd.f32 %v1832_v9, %v1824_v25  ;;  %v1835_v21 = vadd.f32 %v1833_v49, %v1825_v4  ;;  %v1867_v49 = vmul.f32 %v3462_v51, %v1707_v58 }
 0x23a   :  { %v1844_v26 = vadd.f32 %v1842_v0, %v1834_v45  ;;  %v1845_v54 = vadd.f32 %v1843_v13, %v1835_v21 }
 0x23c   :  { %v1854_v19 = vadd.f32 %v1852_v28, %v1844_v26  ;;  %v1855_v43 = vadd.f32 %v1853_v22, %v1845_v54 }
 0x23e   :  { %v1864_v40 = vadd.f32 %v1862_v15, %v1854_v19  ;;  %v1865_v9 = vadd.f32 %v1863_v1, %v1855_v43 }
 0x240   :  { %v1868_v50 = vadd.f32 %v1866_v31, %v1864_v40  ;;  %v1869_v12 = vadd.f32 %v1867_v49, %v1865_v9  ;;  %v1882_v13 = vsub.f32 %v3082_v32, %v1864_v40  ;;  %v1883_v0 = vsub.f32 %v3085_v44, %v1865_v9 }
 0x242   :  { %v1870_v25 = vsub.f32 %v3082_v32, %v1868_v50  ;;  %v1871_v4 = vsub.f32 %v3085_v44, %v1869_v12  ;;  %v1884_v39 = vmul.f32 %v1882_v13, %v2600_v11  ;;  %v1885_v20 = vmul.f32 %v1883_v0, %v3756_v38 }
 0x244   :  { %v1872_v45 = vand.u32 2147483647, %v1870_v25  ;;  %v1873_v21 = vand.u32 2147483647, %v1871_v4  ;;  %v1886_v58 = vsel %vm2607_vm2, %v1884_v39, 0.0  ;;  %v1887_v43 = vsel %vm2612_vm3, %v1885_v20, 0.0 }
 0x245   :  { %v1888_v28 = vadd.f32 %v1887_v43, %v1886_v58 }
 0x246   :  { %v1874_v22 = vadd.f32 %v1873_v21, %v1872_v45 }
 0x247   :  { %v1889_v26 = vrot.slane %v1888_v28, 4 }
 0x248   :  { %v1875_v54 = vrot.slane %v1874_v22, 4 }
 0x249   :  { %v1890_v15 = vadd.f32 %v1889_v26, %v1888_v28 }
 0x24a   :  { %v1876_v32 = vadd.f32 %v1875_v54, %v1874_v22 }
 0x24b   :  { %v1891_v1 = vrot.slane %v1890_v15, 2 }
 0x24c   :  { %v1877_v44 = vrot.slane %v1876_v32, 2 }
 0x24d   :  { %v1892_v19 = vadd.f32 %v1891_v1, %v1890_v15 }
 0x24e   :  { %v1878_v31 = vadd.f32 %v1877_v44, %v1876_v32 }
 0x24f   :  { %v1893_v49 = vrot.slane %v1892_v19, 1 }
 0x250   :  { %v1879_v40 = vrot.slane %v1878_v31, 1 }
 0x251   :  { %v1894_v9 = vadd.f32 %v1893_v49, %v1892_v19 }
 0x252   :  { %v1880_v50 = vadd.f32 %v1879_v40, %v1878_v31 }
 0x253   :  { %v1895_v12 = vsub.f32 %v1884_v39, %v1894_v9  ;;  %v1896_v22 = vsub.f32 %v1885_v20, %v1894_v9 }
 0x254   :  { %1881 = vst [vmem:[#allocation9 + $0x8] sm:$0x1] %v1880_v50 }
 0x255   :  { %v3477_v13 = vsel %vm76_vm0, %v1895_v12, 0.0  ;;  %v1898_v50 = vsel %vm77_vm1, %v1896_v22, 0.0 }
 0x256   :  { %v1904_v0 = vrot.slane %v3477_v13, %v2622_v52  ;;  %v1912_v25 = vrot.slane %v3477_v13, %v2624_v53  ;;  %v1922_v4 = vrot.slane %v3477_v13, %v2626_v55  ;;  %v1932_v45 = vrot.slane %v3477_v13, %v2628_v56 }
 0x257   :  { %v1942_v39 = vrot.slane %v3477_v13, %v2630_v61  ;;  %v1952_v15 = vrot.slane %v3477_v13, %v2636_v5  ;;  %v1962_v31 = vrot.slane %v3477_v13, %v2648_v33  ;;  %v1972_v12 = vrot.slane %v3477_v13, %v2650_v36 }
 0x258   :  { %v1905_v21 = vmul.f32 %v1904_v0, %v3246_v30  ;;  %v1906_v58 = vmul.f32 %v1904_v0, %v3252_v46  ;;  %v1913_v43 = vmul.f32 %v1912_v25, %v3254_v47  ;;  %v1914_v28 = vmul.f32 %v1912_v25, %v3256_v35 }
 0x259   :  { %v1923_v26 = vmul.f32 %v1922_v4, %v3262_v62  ;;  %v1924_v54 = vmul.f32 %v1922_v4, %v3264_v8  ;;  %v1933_v44 = vmul.f32 %v1932_v45, %v3270_v23  ;;  %v1934_v19 = vmul.f32 %v1932_v45, %v3272_v59 }
 0x25a   :  { %v1915_v32 = vadd.f32 %v1913_v43, %v1905_v21  ;;  %v1916_v1 = vadd.f32 %v1914_v28, %v1906_v58  ;;  %v1943_v20 = vmul.f32 %v1942_v39, %v3282_v48  ;;  %v1944_v9 = vmul.f32 %v1942_v39, %v3284_v41 }
 0x25b   :  { %v1953_v4 = vmul.f32 %v1952_v15, %v3290_v60  ;;  %v1954_v45 = vmul.f32 %v1952_v15, %v3292_v16  ;;  %v1963_v21 = vmul.f32 %v1962_v31, %v3298_v57  ;;  %v1964_v28 = vmul.f32 %v1962_v31, %v3304_v63  ;;  %v3850_v63 = vld [vmem:[#allocation24_spill] sm:$0xff] }
 0x25c   :  { %v1925_v49 = vadd.f32 %v1923_v26, %v1915_v32  ;;  %v1926_v40 = vadd.f32 %v1924_v54, %v1916_v1  ;;  %v1982_v39 = vrot.slane %v1898_v50, %v2622_v52  ;;  %v3846_v26 = vld [vmem:[#allocation34_spill] sm:$0xff]  ;;  %v3847_v1 = vld [vmem:[#allocation19_spill] sm:$0xff]  ;;  %v2012_v31 = vrot.slane %v1898_v50, %v2628_v56 }
 0x25d   :  { %v1973_v54 = vmul.f32 %v1972_v12, %v3846_v26  ;;  %v1974_v41 = vmul.f32 %v1972_v12, %v3847_v1  ;;  %v2022_v12 = vrot.slane %v1898_v50, %v2630_v61  ;;  %v3852_v1 = vld [vmem:[#allocation26_spill] sm:$0xff] }
 0x25e   :  { %v1935_v0 = vadd.f32 %v1933_v44, %v1925_v49  ;;  %v1936_v25 = vadd.f32 %v1934_v19, %v1926_v40  ;;  %v1992_v44 = vrot.slane %v1898_v50, %v2624_v53  ;;  %v2002_v19 = vrot.slane %v1898_v50, %v2626_v55  ;;  %v3848_v40 = vld [vmem:[#allocation21_spill] sm:$0xff] }
 0x25f   :  { %v1983_v57 = vmul.f32 %v1982_v39, %v3848_v40 }
 0x260   :  { %v1945_v58 = vadd.f32 %v1943_v20, %v1935_v0  ;;  %v1946_v43 = vadd.f32 %v1944_v9, %v1936_v25  ;;  %v3849_v20 = vld [vmem:[#allocation23_spill] sm:$0xff]  ;;  %v1993_v26 = vmul.f32 %v1992_v44, %v3850_v63  ;;  %v2003_v16 = vmul.f32 %v2002_v19, %v3852_v1 }
 0x261   :  { %v1984_v9 = vmul.f32 %v1982_v39, %v3849_v20  ;;  %v2013_v20 = vmul.f32 %v2012_v31, %v3840_v42 }
 0x262   :  { %v1955_v22 = vadd.f32 %v1953_v4, %v1945_v58  ;;  %v1956_v32 = vadd.f32 %v1954_v45, %v1946_v43  ;;  %v3851_v4 = vld [vmem:[#allocation25_spill] sm:$0xff] }
 0x263   :  { %v1994_v45 = vmul.f32 %v1992_v44, %v3851_v4 }
 0x264   :  { %v1965_v49 = vadd.f32 %v1963_v21, %v1955_v22  ;;  %v1966_v15 = vadd.f32 %v1964_v28, %v1956_v32  ;;  %v3853_v21 = vld [vmem:[#allocation22_spill] sm:$0xff]  ;;  %v2032_v22 = vrot.slane %v1898_v50, %v2636_v5 }
 0x265   :  { %v2004_v28 = vmul.f32 %v2002_v19, %v3853_v21 }
 0x266   :  { %v1975_v0 = vadd.f32 %v1973_v54, %v1965_v49  ;;  %v1976_v25 = vadd.f32 %v1974_v41, %v1966_v15  ;;  %v2014_v41 = vmul.f32 %v2012_v31, %v3841_v14  ;;  %v2023_v54 = vmul.f32 %v2022_v12, %v3842_v3 }
 0x267   :  { %v2024_v15 = vmul.f32 %v2022_v12, %v3843_v2  ;;  %v2034_v21 = vmul.f32 %v2032_v22, %v3845_v7 }
 0x268   :  { %v1985_v58 = vadd.f32 %v1983_v57, %v1975_v0  ;;  %v1986_v43 = vadd.f32 %v1984_v9, %v1976_v25  ;;  %v2042_v57 = vrot.slane %v1898_v50, %v2648_v33  ;;  %v3854_v9 = vld [vmem:[#allocation18_spill] sm:$0xff] }
 0x269   :  { %v2033_v0 = vmul.f32 %v2032_v22, %v3854_v9  ;;  %v2058_v22 = vmul.f32 %v3462_v51, %v1898_v50 }
 0x26a   :  { %v1995_v32 = vadd.f32 %v1993_v26, %v1985_v58  ;;  %v1996_v39 = vadd.f32 %v1994_v45, %v1986_v43  ;;  %v2052_v26 = vrot.slane %v1898_v50, %v2650_v36  ;;  %v2043_v31 = vmul.f32 %v2042_v57, %v3367_v17 }
 0x26b   :  { %v2044_v43 = vmul.f32 %v2042_v57, %v3369_v37 }
 0x26c   :  { %v2005_v49 = vadd.f32 %v2003_v16, %v1995_v32  ;;  %v2006_v44 = vadd.f32 %v2004_v28, %v1996_v39  ;;  %v2053_v12 = vmul.f32 %v2052_v26, %v3374_v10  ;;  %v2054_v32 = vmul.f32 %v2052_v26, %v3376_v34 }
 0x26e   :  { %v2015_v25 = vadd.f32 %v2013_v20, %v2005_v49  ;;  %v2016_v19 = vadd.f32 %v2014_v41, %v2006_v44  ;;  %v2057_v20 = vmul.f32 %v3458_v29, %v3477_v13 }
 0x270   :  { %v2025_v45 = vadd.f32 %v2023_v54, %v2015_v25  ;;  %v2026_v58 = vadd.f32 %v2024_v15, %v2016_v19  ;;  %v3540_v15 = vld [vmem:[#allocation7] sm:$0xff] }
 0x272   :  { %v2035_v16 = vadd.f32 %v2033_v0, %v2025_v45  ;;  %v2036_v28 = vadd.f32 %v2034_v21, %v2026_v58  ;;  %v3543_v21 = vld [vmem:[#allocation7 + $0x8] sm:$0xff] }
 0x274   :  { %v2045_v39 = vadd.f32 %v2043_v31, %v2035_v16  ;;  %v2046_v9 = vadd.f32 %v2044_v43, %v2036_v28 }
 0x276   :  { %v2055_v41 = vadd.f32 %v2053_v12, %v2045_v39  ;;  %v2056_v54 = vadd.f32 %v2054_v32, %v2046_v9 }
 0x278   :  { %v2059_v49 = vadd.f32 %v2057_v20, %v2055_v41  ;;  %v2060_v44 = vadd.f32 %v2058_v22, %v2056_v54  ;;  %v2073_v57 = vsub.f32 %v3540_v15, %v2055_v41  ;;  %v2074_v0 = vsub.f32 %v3543_v21, %v2056_v54 }
 0x27a   :  { %v2061_v25 = vsub.f32 %v3540_v15, %v2059_v49  ;;  %v2062_v19 = vsub.f32 %v3543_v21, %v2060_v44  ;;  %v2075_v13 = vmul.f32 %v2073_v57, %v2600_v11  ;;  %v2076_v50 = vmul.f32 %v2074_v0, %v3756_v38 }
 0x27c   :  { %v2063_v26 = vand.u32 2147483647, %v2061_v25  ;;  %v2064_v9 = vand.u32 2147483647, %v2062_v19  ;;  %v2077_v45 = vsel %vm2607_vm2, %v2075_v13, 0.0  ;;  %v2078_v58 = vsel %vm2612_vm3, %v2076_v50, 0.0 }
 0x27d   :  { %v2079_v31 = vadd.f32 %v2078_v58, %v2077_v45 }
 0x27e   :  { %v2065_v43 = vadd.f32 %v2064_v9, %v2063_v26 }
 0x27f   :  { %v2080_v16 = vrot.slane %v2079_v31, 4 }
 0x280   :  { %v2066_v28 = vrot.slane %v2065_v43, 4 }
 0x281   :  { %v2081_v12 = vadd.f32 %v2080_v16, %v2079_v31 }
 0x282   :  { %v2067_v32 = vadd.f32 %v2066_v28, %v2065_v43 }
 0x283   :  { %v2082_v39 = vrot.slane %v2081_v12, 2 }
 0x284   :  { %v2068_v20 = vrot.slane %v2067_v32, 2 }
 0x285   :  { %v2083_v22 = vadd.f32 %v2082_v39, %v2081_v12 }
 0x286   :  { %v2069_v11 = vadd.f32 %v2068_v20, %v2067_v32 }
 0x287   :  { %v2084_v41 = vrot.slane %v2083_v22, 1 }
 0x288   :  { %v2070_v38 = vrot.slane %v2069_v11, 1 }
 0x289   :  { %v2085_v54 = vadd.f32 %v2084_v41, %v2083_v22 }
 0x28a   :  { %v2071_v24 = vadd.f32 %v2070_v38, %v2069_v11 }
 0x28b   :  { %v2086_v49 = vsub.f32 %v2075_v13, %v2085_v54  ;;  %v2087_v44 = vsub.f32 %v2076_v50, %v2085_v54 }
 0x28c   :  { %2072 = vst [vmem:[#allocation9 + $0x9] sm:$0x1] %v2071_v24 }
 0x28d   :  { %v3556_v18 = vsel %vm76_vm0, %v2086_v49, 0.0  ;;  %v3560_v57 = vsel %vm77_vm1, %v2087_v44, 0.0 }
 0x28e   :  { %v2095_v0 = vrot.slane %v3556_v18, %v2622_v52  ;;  %v2103_v25 = vrot.slane %v3556_v18, %v2624_v53  ;;  %v2113_v19 = vrot.slane %v3556_v18, %v2626_v55  ;;  %v2123_v13 = vrot.slane %v3556_v18, %v2628_v56  ;;  %2264 = vst [vmem:[#allocation8] sm:$0xff] %v3556_v18 }
 0x28f   :  { %2265 = vst [vmem:[#allocation8 + $0x8] sm:$0xff] %v3560_v57  ;;  %v2133_v27 = vrot.slane %v3556_v18, %v2630_v61 }
 0x290   :  { %2391 = shalt.err (!%p2388_p5)
}
 0x291   :  { %2277 = dma.vmem_to_hbm [thread:$0]  %s2272_s9, 256, %s3650_s4, [#allocation4], %s2430_s23, %s2430_s23, %s2431_s24   ;;  %v2096_v6 = vmul.f32 %v2095_v0, %v3246_v30  ;;  %v2097_v50 = vmul.f32 %v2095_v0, %v3252_v46  ;;  %v2104_v26 = vmul.f32 %v2103_v25, %v3254_v47  ;;  %v2105_v9 = vmul.f32 %v2103_v25, %v3256_v35  ;;  %v3855_v32 = vld [vmem:[#allocation29_spill] sm:$0xff]  ;;  %v3856_v11 = vld [vmem:[#allocation30_spill] sm:$0xff]  ;;  %v3857_v41 = vld [vmem:[#allocation31_spill] sm:$0xff] }
 0x292   :  { %v2114_v45 = vmul.f32 %v2113_v19, %v3262_v62  ;;  %v2115_v58 = vmul.f32 %v2113_v19, %v3264_v8  ;;  %v2143_v31 = vrot.slane %v3556_v18, %v2636_v5  ;;  %v2124_v28 = vmul.f32 %v2123_v13, %v3270_v23  ;;  %v3858_v24 = vld [vmem:[#allocation32_spill] sm:$0xff]  ;;  %v3859_v44 = vld [vmem:[#allocation34_spill] sm:$0xff]  ;;  %s2434_s4 = smov [#allocation9]  }
 0x293   :  { %v2106_v43 = vadd.f32 %v2104_v26, %v2096_v6  ;;  %v2107_v16 = vadd.f32 %v2105_v9, %v2097_v50  ;;  %v2125_v12 = vmul.f32 %v2123_v13, %v3272_v59  ;;  %v2153_v30 = vrot.slane %v3556_v18, %v2648_v33  ;;  %v3860_v13 = vld [vmem:[#allocation19_spill] sm:$0xff]  ;;  %s2283_s13 = sshll.u32 %s2434_s4, 4  ;;  %s2284_s13 = int_to_ptr.vmem [resolvable:$true] %s2283_s13 }
 0x294   :  { %v2134_v35 = vmul.f32 %v2133_v27, %v3282_v48  ;;  %v2135_v62 = vmul.f32 %v2133_v27, %v3855_v32  ;;  %v2163_v8 = vrot.slane %v3556_v18, %v2650_v36  ;;  %v2144_v22 = vmul.f32 %v2143_v31, %v3290_v60  ;;  %s2400_s14 = scalar_lea.vmem %s2284_s13, 256  ;;  %p2405_p7 = scmp.lt.s32.totalorder %s2284_s13, %s2284_s13 }
 0x295   :  { %v2116_v46 = vadd.f32 %v2114_v45, %v2106_v43  ;;  %v2117_v47 = vadd.f32 %v2115_v58, %v2107_v16  ;;  %v2145_v23 = vmul.f32 %v2143_v31, %v3856_v11  ;;  %v2154_v59 = vmul.f32 %v2153_v30, %v3857_v41  ;;  %v3861_v45 = vld [vmem:[#allocation23_spill] sm:$0xff]  ;;  %p2401_p6 = scmp.ne.s32.totalorder %s2284_s13, %s2400_s14  ;;  %p2406_p8 = scmp.lt.s32.totalorder %s2400_s14, %s2400_s14 }
 0x296   :  { %v2155_v49 = vmul.f32 %v2153_v30, %v3858_v24  ;;  %v2173_v48 = vrot.slane %v3560_v57, %v2622_v52  ;;  %v2164_v0 = vmul.f32 %v2163_v8, %v3859_v44  ;;  %v2165_v27 = vmul.f32 %v2163_v8, %v3860_v13 }
 0x297   :  { %v2126_v39 = vadd.f32 %v2124_v28, %v2116_v46  ;;  %v2127_v20 = vadd.f32 %v2125_v12, %v2117_v47  ;;  %v2183_v60 = vrot.slane %v3560_v57, %v2624_v53  ;;  %v2193_v6 = vrot.slane %v3560_v57, %v2626_v55  ;;  %v3862_v46 = vld [vmem:[#allocation22_spill] sm:$0xff]  ;;  %p2407_p9 = por %p2406_p8, %p2405_p7 }
 0x298   :  { %v2174_v9 = vmul.f32 %v2173_v48, %v3848_v40  ;;  %v2175_v58 = vmul.f32 %v2173_v48, %v3861_v45  ;;  %v2203_v52 = vrot.slane %v3560_v57, %v2628_v56  ;;  %v2213_v53 = vrot.slane %v3560_v57, %v2630_v61 }
 0x299   :  { %v2136_v38 = vadd.f32 %v2134_v35, %v2126_v39  ;;  %v2137_v54 = vadd.f32 %v2135_v62, %v2127_v20  ;;  %v2184_v16 = vmul.f32 %v2183_v60, %v3850_v63  ;;  %v2185_v28 = vmul.f32 %v2183_v60, %v3851_v4  ;;  %v3863_v39 = vld [vmem:[#allocation18_spill] sm:$0xff]  ;;  %p2408_p10 = pnand %p2407_p9, %p2401_p6 }
 0x29a   :  { %v2194_v30 = vmul.f32 %v2193_v6, %v3852_v1  ;;  %v2195_v40 = vmul.f32 %v2193_v6, %v3862_v46  ;;  %v2223_v47 = vrot.slane %v3560_v57, %v2636_v5  ;;  %v2204_v32 = vmul.f32 %v2203_v52, %v3840_v42 }
 0x29b   :  { %v2146_v25 = vadd.f32 %v2144_v22, %v2136_v38  ;;  %v2147_v19 = vadd.f32 %v2145_v23, %v2137_v54  ;;  %v2205_v63 = vmul.f32 %v2203_v52, %v3841_v14  ;;  %v2214_v4 = vmul.f32 %v2213_v53, %v3842_v3 }
 0x29c   :  { %v2215_v61 = vmul.f32 %v2213_v53, %v3843_v2  ;;  %v2233_v1 = vrot.slane %v3560_v57, %v2648_v33  ;;  %v2224_v20 = vmul.f32 %v2223_v47, %v3863_v39  ;;  %v2225_v5 = vmul.f32 %v2223_v47, %v3845_v7 }
 0x29d   :  { %v2156_v50 = vadd.f32 %v2154_v59, %v2146_v25  ;;  %v2157_v26 = vadd.f32 %v2155_v49, %v2147_v19  ;;  %v2243_v42 = vrot.slane %v3560_v57, %v2650_v36  ;;  %v2248_v7 = vmul.f32 %v3458_v29, %v3556_v18 }
 0x29e   :  { %v2234_v3 = vmul.f32 %v2233_v1, %v3367_v17  ;;  %v2235_v41 = vmul.f32 %v2233_v1, %v3369_v37  ;;  %v2249_v36 = vmul.f32 %v3462_v51, %v3560_v57 }
 0x29f   :  { %v2166_v31 = vadd.f32 %v2164_v0, %v2156_v50  ;;  %v2167_v43 = vadd.f32 %v2165_v27, %v2157_v26  ;;  %v2244_v38 = vmul.f32 %v2243_v42, %v3374_v10  ;;  %v2245_v33 = vmul.f32 %v2243_v42, %v3376_v34 }
 0x2a1   :  { %v2176_v12 = vadd.f32 %v2174_v9, %v2166_v31  ;;  %v2177_v55 = vadd.f32 %v2175_v58, %v2167_v43 }
 0x2a3   :  { %v2186_v35 = vadd.f32 %v2184_v16, %v2176_v12  ;;  %v2187_v56 = vadd.f32 %v2185_v28, %v2177_v55 }
 0x2a5   :  { %v2196_v62 = vadd.f32 %v2194_v30, %v2186_v35  ;;  %v2197_v8 = vadd.f32 %v2195_v40, %v2187_v56 }
 0x2a7   :  { %v2206_v22 = vadd.f32 %v2204_v32, %v2196_v62  ;;  %v2207_v11 = vadd.f32 %v2205_v63, %v2197_v8 }
 0x2a9   :  { %v2216_v23 = vadd.f32 %v2214_v4, %v2206_v22  ;;  %v2217_v14 = vadd.f32 %v2215_v61, %v2207_v11 }
 0x2ab   :  { %v2226_v59 = vadd.f32 %v2224_v20, %v2216_v23  ;;  %v2227_v2 = vadd.f32 %v2225_v5, %v2217_v14 }
 0x2ad   :  { %v2236_v54 = vadd.f32 %v2234_v3, %v2226_v59  ;;  %v2237_v24 = vadd.f32 %v2235_v41, %v2227_v2 }
 0x2af   :  { %v2246_v49 = vadd.f32 %v2244_v38, %v2236_v54  ;;  %v2247_v48 = vadd.f32 %v2245_v33, %v2237_v24 }
 0x2b1   :  { %v2250_v44 = vadd.f32 %v2248_v7, %v2246_v49  ;;  %v2251_v17 = vadd.f32 %v2249_v36, %v2247_v48 }
 0x2b3   :  { %v2252_v37 = vsub.f32 %v3540_v15, %v2250_v44  ;;  %v2253_v0 = vsub.f32 %v3543_v21, %v2251_v17 }
 0x2b5   :  { %v2254_v25 = vand.u32 2147483647, %v2252_v37  ;;  %v2255_v10 = vand.u32 2147483647, %v2253_v0 }
 0x2b7   :  { %v2256_v19 = vadd.f32 %v2255_v10, %v2254_v25 }
 0x2b9   :  { %v2257_v34 = vrot.slane %v2256_v19, 4 }
 0x2bb   :  { %v2258_v13 = vadd.f32 %v2257_v34, %v2256_v19 }
 0x2bd   :  { %v2259_v27 = vrot.slane %v2258_v13, 2 }
 0x2bf   :  { %v2260_v60 = vadd.f32 %v2259_v27, %v2258_v13 }
 0x2c1   :  { %v2261_v29 = vrot.slane %v2260_v60, 1 }
 0x2c3   :  { %v2262_v18 = vadd.f32 %v2261_v29, %v2260_v60 }
 0x2c5   :  { %2263 = vst [vmem:[#allocation9 + $0xa] sm:$0x1] %v2262_v18 }
 0x2c6   :  { %2411 = shalt.err (!%p2408_p10)
}
 0x2c7   :  { %2289 = dma.vmem_to_hbm [thread:$0]  %s2284_s13, 256, %s3651_s5, [#allocation10], %s2430_s23, %s2430_s23, %s2431_s24  }
 0x2c8   :  { %2424 = dma.done.wait [#allocation4], 256  }
 0x2c9   :  { %2425 = vsyncadd [#allocation4], 4294967040 }
 0x2ca   :  { %2426 = dma.done.wait [#allocation10], 256  }
 0x2cb   :  { %2427 = vsyncadd [#allocation10], 4294967040 }
 0x2cc   :  { %2296 = vsyncpa [#allocation3], 1 }
 0x2cd   :  { %2297 = vsyncpa [#allocation6], 1 }
 0x2ce   :  { %2298 = vsyncpa [#allocation4], 1 }
 0x2cf   :  { %2299 = vsyncpa [#allocation10], 1 }

</bundles_post_ra>
